<compile_context>
chip_gen: v7x
topology: tpu7x:2x2x1
jax: 0.10.0
libtpu: 0.0.40
codegen_flags: <defaults>
</compile_context>

<pallas_src>
import functools

import jax
import jax.numpy as jnp
from jax import lax
from jax.experimental import pallas as pl
from jax.experimental.pallas import tpu as pltpu


LANE = 128   # lane tile width
SUB = 8      # sublane tile height


def _round_up(n, m):
    return ((n + m - 1) // m) * m


def _elu(x):
    # nn.ELU(alpha=1.0); ELU(0) == 0 so zero-padded lanes stay zero.
    return jnp.where(x > 0.0, x, jnp.exp(jnp.minimum(x, 0.0)) - 1.0)


def _sigmoid(x):
    # exact identity sigmoid(x) = 0.5*(1 + tanh(x/2)); tanh runs on the EUP (no VPU divide).
    return 0.5 * (jnp.tanh(0.5 * x) + 1.0)


def _softmax_last(x):
    # exact normalization (outside the serial recurrence, so the divide is cheap).
    m = jnp.max(x, axis=-1, keepdims=True)
    e = jnp.exp(x - m)
    return e / jnp.sum(e, axis=-1, keepdims=True)


def _layer_norm_masked(x, gamma, beta, n_valid, mask, eps=1e-5):
    # LayerNorm over the first n_valid lanes of a lane-padded (..., Hp) tensor.
    # Padded lanes of x are zero on entry; gamma/beta are zero there, so the output stays
    # zero in padded lanes and the (BP, Hp) store remains lane-dense.
    inv_n = 1.0 / n_valid
    mean = jnp.sum(x, axis=-1, keepdims=True) * inv_n
    d = (x - mean) * mask
    var = jnp.sum(d * d, axis=-1, keepdims=True) * inv_n
    return (x - mean) * lax.rsqrt(var + eps) * gamma + beta


def context_encoder_kernel(
    h_dim,
    # per-batch-tile inputs
    x_ref, emb_ref,
    # VSN params (ws1 pre-split into feature / static-embedding rows)
    wv_ref, bv_ref, ws1x_ref, ws1e_ref, bs1_ref, ws2_ref, bs2_ref,
    # LSTM params (state init + gates; bih+bhh pre-folded into bg)
    wh0_ref, bh0_ref, wc0_ref, bc0_ref, wih_ref, whh_ref, bg_ref,
    # layer norm 1
    ln1w_ref, ln1b_ref,
    # FFN2 (wf1 pre-split into a_t / static-embedding rows)
    wf1a_ref, wf1e_ref, bf1_ref, wf2_ref, bf2_ref,
    # layer norm 2
    ln2w_ref, ln2b_ref,
    # output
    out_ref,
):
    S, Bp, F = x_ref.shape
    Hp = whh_ref.shape[0]          # lane-padded hidden size (multiple of 128)
    H = h_dim                      # true hidden size (static Python int)
    hf = float(H)

    x3 = x_ref[...]                              # (S, Bp, F), seq-major
    x2 = x3.reshape(S * Bp, F)                   # free: Bp is a multiple of 8 sublanes
    x2b = x2.astype(jnp.bfloat16)
    emb = emb_ref[...].astype(jnp.bfloat16)      # (Bp, E) pre-gathered static embedding rows

    lane_mask = (lax.broadcasted_iota(jnp.int32, (1, Hp), 1) < H).astype(jnp.float32)

    # --- Variable Selection Network (static-embedding term hoisted off the token axis) ---
    emb_h = jnp.dot(emb, ws1e_ref[...], preferred_element_type=jnp.float32)          # (Bp, Hp)
    h1 = jnp.dot(x2b, ws1x_ref[...], preferred_element_type=jnp.float32)             # (S*Bp, Hp)
    h1 = _elu(h1.reshape(S, Bp, Hp) + emb_h[None] + bs1_ref[...])                    # (S, Bp, Hp)
    logits = (jnp.dot(h1.reshape(S * Bp, Hp).astype(jnp.bfloat16), ws2_ref[...],
                      preferred_element_type=jnp.float32) + bs2_ref[...])            # (S*Bp, F)
    sel = _softmax_last(logits)                                                      # (S*Bp, F)
    # weighted sum of per-feature value projections:
    #   out[n] = sum_f sel[n,f]*(x[n,f]*Wv[f] + bv[f]) = (sel*x)@Wv + sel@bv
    xprime = (jnp.dot((sel * x2).astype(jnp.bfloat16), wv_ref[...],
                      preferred_element_type=jnp.float32)
              + jnp.dot(sel.astype(jnp.bfloat16), bv_ref[...],
                        preferred_element_type=jnp.float32))                         # (S*Bp, Hp)

    # --- LSTM: input-to-hidden matmul + both biases hoisted out of the recurrence ---
    gates_x = (jnp.dot(xprime.astype(jnp.bfloat16), wih_ref[...],
                       preferred_element_type=jnp.float32)
               + bg_ref[...]).reshape(S, Bp, 4 * Hp)                                 # (S, Bp, 4Hp)
    xprime3 = xprime.reshape(S, Bp, Hp)

    h = jnp.dot(emb, wh0_ref[...], preferred_element_type=jnp.float32) + bh0_ref[...]
    c = jnp.dot(emb, wc0_ref[...], preferred_element_type=jnp.float32) + bc0_ref[...]
    whh = whh_ref[...]                                                               # bf16 (Hp, 4Hp)

    # small static unroll (fine for short S); gate slices are whole 128-lane tiles.
    for t in range(S):
        gates = gates_x[t] + jnp.dot(h.astype(jnp.bfloat16), whh,
                                     preferred_element_type=jnp.float32)             # (Bp, 4Hp)
        i_g = _sigmoid(gates[:, 0 * Hp:1 * Hp])
        f_g = _sigmoid(gates[:, 1 * Hp:2 * Hp])
        g_g = jnp.tanh(gates[:, 2 * Hp:3 * Hp])
        o_g = _sigmoid(gates[:, 3 * Hp:4 * Hp])
        c = f_g * c + i_g * g_g
        h = o_g * jnp.tanh(c)

    x_last = xprime3[S - 1]                                                          # (Bp, Hp)

    # --- residual + layer norm 1 ---
    a_t = _layer_norm_masked(h + x_last, ln1w_ref[...], ln1b_ref[...], hf, lane_mask)

    # --- FFN2 (lane-concat removed via split weight rows; dropout = identity in eval) ---
    ffn_h = _elu(jnp.dot(a_t.astype(jnp.bfloat16), wf1a_ref[...],
                         preferred_element_type=jnp.float32)
                 + jnp.dot(emb, wf1e_ref[...], preferred_element_type=jnp.float32)
                 + bf1_ref[...])
    ffn_out = (jnp.dot(ffn_h.astype(jnp.bfloat16), wf2_ref[...],
                       preferred_element_type=jnp.float32) + bf2_ref[...])

    # --- residual + layer norm 2; lane-dense (Bp, Hp) store ---
    out_ref[...] = _layer_norm_masked(ffn_out + a_t, ln2w_ref[...], ln2b_ref[...], hf, lane_mask)


def _full_spec(a):
    zeros = (0,) * a.ndim
    return pl.BlockSpec(a.shape, lambda i, _z=zeros: _z)


def _choose_bp(batch):
    # Up to 128 batch rows per tile (full MXU rows on all generations); small batches just
    # round up to a sublane multiple. Batches >= 256 give >= 2 grid tiles for v7x's two TCs.
    if batch >= 128:
        return 128
    return max(SUB, _round_up(batch, SUB))


def _pad_cols(a, cols):
    return jnp.pad(a, ((0, 0), (0, cols - a.shape[1])))


def _pad_rows(a, rows):
    return jnp.pad(a, ((0, rows - a.shape[0]), (0, 0)))


def _pad_gates(w, h, hp):
    # (K, 4H) -> (K, 4Hp): each gate's column block zero-padded to a full lane-tile multiple.
    parts = [jnp.pad(w[:, g * h:(g + 1) * h], ((0, 0), (0, hp - h))) for g in range(4)]
    return jnp.concatenate(parts, axis=1)


def context_encoder(x_seq, s, params, *, d_h):
    """x_seq: (B, S, F) f32, s: (B,) int32 -> (B, d_h) f32."""
    B, S, F = x_seq.shape
    H = d_h
    Hp = _round_up(H, LANE)
    E = params["emb_table"].shape[1]

    BP = _choose_bp(B)
    Bpad = _round_up(B, BP)
    n_tiles = Bpad // BP

    # seq-major 3-D layout; batch padded to a multiple of the batch tile.
    x_p = jnp.pad(x_seq.astype(jnp.float32), ((0, Bpad - B), (0, 0), (0, 0)))
    x3 = jnp.transpose(x_p, (1, 0, 2))                                   # (S, Bpad, F)

    s_p = jnp.pad(s.astype(jnp.int32), (0, Bpad - B))
    # Embedding table stays in HBM; only the needed rows are gathered (no one-hot matmul,
    # no VMEM-resident table).
    emb_rows = jnp.take(params["emb_table"].astype(jnp.float32), s_p, axis=0)   # (Bpad, E)

    bf16, f32 = jnp.bfloat16, jnp.float32

    # concat-avoiding weight splits (cheap XLA-level slices)
    ws1 = params["vsn_ws1"]
    ws1_x, ws1_e = ws1[:F], ws1[F:]
    wf1 = params["ffn_w1"]
    wf1_a, wf1_e = wf1[:H], wf1[H:]

    weights = (
        _pad_cols(params["vsn_wv"], Hp).astype(bf16),                          # wv
        _pad_cols(params["vsn_bv"], Hp).astype(bf16),                          # bv
        _pad_cols(ws1_x, Hp).astype(bf16),                                     # ws1x
        _pad_cols(ws1_e, Hp).astype(bf16),                                     # ws1e
        _pad_cols(params["vsn_bs1"], Hp).astype(f32),                          # bs1
        _pad_rows(params["vsn_ws2"], Hp).astype(bf16),                         # ws2
        params["vsn_bs2"].astype(f32),                                         # bs2
        _pad_cols(params["lstm_wh0"], Hp).astype(bf16),                        # wh0
        _pad_cols(params["lstm_bh0"], Hp).astype(f32),                         # bh0
        _pad_cols(params["lstm_wc0"], Hp).astype(bf16),                        # wc0
        _pad_cols(params["lstm_bc0"], Hp).astype(f32),                         # bc0
        _pad_rows(_pad_gates(params["lstm_wih"], H, Hp), Hp).astype(bf16),     # wih
        _pad_rows(_pad_gates(params["lstm_whh"], H, Hp), Hp).astype(bf16),     # whh
        _pad_gates(params["lstm_bih"] + params["lstm_bhh"], H, Hp).astype(f32),  # bg (folded)
        _pad_cols(params["ln1_w"], Hp).astype(f32),                            # ln1w (0 in pad lanes)
        _pad_cols(params["ln1_b"], Hp).astype(f32),                            # ln1b
        _pad_rows(_pad_cols(wf1_a, Hp), Hp).astype(bf16),                      # wf1a
        _pad_cols(wf1_e, Hp).astype(bf16),                                     # wf1e
        _pad_cols(params["ffn_b1"], Hp).astype(f32),                           # bf1
        _pad_rows(_pad_cols(params["ffn_w2"], Hp), Hp).astype(bf16),           # wf2
        _pad_cols(params["ffn_b2"], Hp).astype(f32),                           # bf2
        _pad_cols(params["ln2_w"], Hp).astype(f32),                            # ln2w
        _pad_cols(params["ln2_b"], Hp).astype(f32),                            # ln2b
    )

    in_specs = [
        pl.BlockSpec((S, BP, F), lambda i: (0, i, 0)),    # x: one batch tile per grid step
        pl.BlockSpec((BP, E), lambda i: (i, 0)),          # gathered embedding rows per tile
    ] + [_full_spec(w) for w in weights]

    out = pl.pallas_call(
        functools.partial(context_encoder_kernel, H),
        grid=(n_tiles,),
        out_shape=jax.ShapeDtypeStruct((Bpad, Hp), jnp.float32),
        in_specs=in_specs,
        out_specs=pl.BlockSpec((BP, Hp), lambda i: (i, 0)),
        compiler_params=pltpu.CompilerParams(
            dimension_semantics=("parallel",),
            vmem_limit_bytes=48 * 1024 * 1024,
        ),
    )(x3, emb_rows, *weights)

    return out[:B, :H]


def init_params(key, num_features, num_embeddings, embedding_dim, d_h):
    F, V, E, H = num_features, num_embeddings, embedding_dim, d_h
    ks = jax.random.split(key, 12)

    def w(k, shape, scale=0.1):
        return (scale * jax.random.normal(k, shape)).astype(jnp.float32)

    z = lambda shape: jnp.zeros(shape, jnp.float32)
    o = lambda shape: jnp.ones(shape, jnp.float32)

    return dict(
        emb_table=w(ks[0], (V, E), 1.0),
        # VSN
        vsn_wv=w(ks[1], (F, H)),
        vsn_bv=w(ks[2], (F, H)),
        vsn_ws1=w(ks[3], (F + E, H)),
        vsn_bs1=z((1, H)),
        vsn_ws2=w(ks[4], (H, F)),
        vsn_bs2=z((1, F)),
        # LSTM
        lstm_wh0=w(ks[5], (E, H)),
        lstm_bh0=z((1, H)),
        lstm_wc0=w(ks[6], (E, H)),
        lstm_bc0=z((1, H)),
        lstm_wih=w(ks[7], (H, 4 * H)),
        lstm_bih=z((1, 4 * H)),
        lstm_whh=w(ks[8], (H, 4 * H)),
        lstm_bhh=z((1, 4 * H)),
        # LayerNorm 1 (nn.LayerNorm defaults)
        ln1_w=o((1, H)),
        ln1_b=z((1, H)),
        # FFN2
        ffn_w1=w(ks[9], (H + E, H)),
        ffn_b1=z((1, H)),
        ffn_w2=w(ks[10], (H, H)),
        ffn_b2=z((1, H)),
        # LayerNorm 2
        ln2_w=o((1, H)),
        ln2_b=z((1, H)),
    )


if __name__ == "__main__":
    # small shapes consistent with the module's forward
    B, S, F = 2, 8, 4           # batch, seq_len, num_features
    V, E, H = 10, 8, 32         # num_embeddings, embedding_dim, d_h

    key = jax.random.PRNGKey(0)
    k_x, k_s, k_p = jax.random.split(key, 3)
    x_seq = jax.random.normal(k_x, (B, S, F), jnp.float32)
    s = jax.random.randint(k_s, (B,), 0, V, jnp.int32)
    params = init_params(k_p, F, V, E, H)

    out = context_encoder(x_seq, s, params, d_h=H)
    out = jax.block_until_ready(out)

    assert out.shape == (B, H), out.shape
    assert bool(jnp.all(jnp.isfinite(out)))
    print("KERNEL_OK")
</pallas_src>

<mosaic_0001>
module attributes {stable_mosaic.version = 11 : i64} {
  func.func @context_encoder_kernel(%arg0: i32, %arg1: memref<8x8x4xf32, #tpu.memory_space<vmem>>, %arg2: memref<8x8xf32, #tpu.memory_space<vmem>>, %arg3: memref<4x128xbf16, #tpu.memory_space<vmem>>, %arg4: memref<4x128xbf16, #tpu.memory_space<vmem>>, %arg5: memref<4x128xbf16, #tpu.memory_space<vmem>>, %arg6: memref<8x128xbf16, #tpu.memory_space<vmem>>, %arg7: memref<1x128xf32, #tpu.memory_space<vmem>>, %arg8: memref<128x4xbf16, #tpu.memory_space<vmem>>, %arg9: memref<1x4xf32, #tpu.memory_space<vmem>>, %arg10: memref<8x128xbf16, #tpu.memory_space<vmem>>, %arg11: memref<1x128xf32, #tpu.memory_space<vmem>>, %arg12: memref<8x128xbf16, #tpu.memory_space<vmem>>, %arg13: memref<1x128xf32, #tpu.memory_space<vmem>>, %arg14: memref<128x512xbf16, #tpu.memory_space<vmem>>, %arg15: memref<128x512xbf16, #tpu.memory_space<vmem>>, %arg16: memref<1x512xf32, #tpu.memory_space<vmem>>, %arg17: memref<1x128xf32, #tpu.memory_space<vmem>>, %arg18: memref<1x128xf32, #tpu.memory_space<vmem>>, %arg19: memref<128x128xbf16, #tpu.memory_space<vmem>>, %arg20: memref<8x128xbf16, #tpu.memory_space<vmem>>, %arg21: memref<1x128xf32, #tpu.memory_space<vmem>>, %arg22: memref<128x128xbf16, #tpu.memory_space<vmem>>, %arg23: memref<1x128xf32, #tpu.memory_space<vmem>>, %arg24: memref<1x128xf32, #tpu.memory_space<vmem>>, %arg25: memref<1x128xf32, #tpu.memory_space<vmem>>, %arg26: memref<8x128xf32, #tpu.memory_space<vmem>>) attributes {dimension_semantics = [#tpu.dimension_semantics<parallel>], iteration_bounds = array<i64: 1>, scalar_prefetch = 0 : i64, scratch_operands = 0 : i64, tpu.core_type = #tpu.core_type<tc>, window_params = [{transform_indices = @transform_0, window_bounds = array<i64: 8, 8, 4>}, {transform_indices = @transform_1, window_bounds = array<i64: 8, 8>}, {pipeline_mode = #tpu.pipeline_mode<synchronous>, transform_indices = @transform_2, window_bounds = array<i64: 4, 128>}, {pipeline_mode = #tpu.pipeline_mode<synchronous>, transform_indices = @transform_3, window_bounds = array<i64: 4, 128>}, {pipeline_mode = #tpu.pipeline_mode<synchronous>, transform_indices = @transform_4, window_bounds = array<i64: 4, 128>}, {pipeline_mode = #tpu.pipeline_mode<synchronous>, transform_indices = @transform_5, window_bounds = array<i64: 8, 128>}, {pipeline_mode = #tpu.pipeline_mode<synchronous>, transform_indices = @transform_6, window_bounds = array<i64: 1, 128>}, {pipeline_mode = #tpu.pipeline_mode<synchronous>, transform_indices = @transform_7, window_bounds = array<i64: 128, 4>}, {pipeline_mode = #tpu.pipeline_mode<synchronous>, transform_indices = @transform_8, window_bounds = array<i64: 1, 4>}, {pipeline_mode = #tpu.pipeline_mode<synchronous>, transform_indices = @transform_9, window_bounds = array<i64: 8, 128>}, {pipeline_mode = #tpu.pipeline_mode<synchronous>, transform_indices = @transform_10, window_bounds = array<i64: 1, 128>}, {pipeline_mode = #tpu.pipeline_mode<synchronous>, transform_indices = @transform_11, window_bounds = array<i64: 8, 128>}, {pipeline_mode = #tpu.pipeline_mode<synchronous>, transform_indices = @transform_12, window_bounds = array<i64: 1, 128>}, {pipeline_mode = #tpu.pipeline_mode<synchronous>, transform_indices = @transform_13, window_bounds = array<i64: 128, 512>}, {pipeline_mode = #tpu.pipeline_mode<synchronous>, transform_indices = @transform_14, window_bounds = array<i64: 128, 512>}, {pipeline_mode = #tpu.pipeline_mode<synchronous>, transform_indices = @transform_15, window_bounds = array<i64: 1, 512>}, {pipeline_mode = #tpu.pipeline_mode<synchronous>, transform_indices = @transform_16, window_bounds = array<i64: 1, 128>}, {pipeline_mode = #tpu.pipeline_mode<synchronous>, transform_indices = @transform_17, window_bounds = array<i64: 1, 128>}, {pipeline_mode = #tpu.pipeline_mode<synchronous>, transform_indices = @transform_18, window_bounds = array<i64: 128, 128>}, {pipeline_mode = #tpu.pipeline_mode<synchronous>, transform_indices = @transform_19, window_bounds = array<i64: 8, 128>}, {pipeline_mode = #tpu.pipeline_mode<synchronous>, transform_indices = @transform_20, window_bounds = array<i64: 1, 128>}, {pipeline_mode = #tpu.pipeline_mode<synchronous>, transform_indices = @transform_21, window_bounds = array<i64: 128, 128>}, {pipeline_mode = #tpu.pipeline_mode<synchronous>, transform_indices = @transform_22, window_bounds = array<i64: 1, 128>}, {pipeline_mode = #tpu.pipeline_mode<synchronous>, transform_indices = @transform_23, window_bounds = array<i64: 1, 128>}, {pipeline_mode = #tpu.pipeline_mode<synchronous>, transform_indices = @transform_24, window_bounds = array<i64: 1, 128>}, {transform_indices = @transform_25, window_bounds = array<i64: 8, 128>}]} {
    %c0 = arith.constant 0 : index
    %c0_0 = arith.constant 0 : index
    %c0_1 = arith.constant 0 : index
    %0 = vector.load %arg1[%c0, %c0_0, %c0_1] : memref<8x8x4xf32, #tpu.memory_space<vmem>>, vector<8x8x4xf32>
    %1 = vector.shape_cast %0 : vector<8x8x4xf32> to vector<64x4xf32>
    %2 = arith.truncf %1 : vector<64x4xf32> to vector<64x4xbf16>
    %c0_2 = arith.constant 0 : index
    %c0_3 = arith.constant 0 : index
    %3 = vector.load %arg2[%c0_2, %c0_3] : memref<8x8xf32, #tpu.memory_space<vmem>>, vector<8x8xf32>
    %4 = arith.truncf %3 : vector<8x8xf32> to vector<8x8xbf16>
    %5 = tpu.iota {dimensions = array<i32: 1>} : vector<1x128xi32>
    %c32_i32 = arith.constant 32 : i32
    %6 = vector.broadcast %c32_i32 : i32 to vector<1x128xi32>
    %7 = arith.cmpi slt, %5, %6 : vector<1x128xi32>
    %8 = arith.extui %7 : vector<1x128xi1> to vector<1x128xi32>
    %9 = arith.sitofp %8 : vector<1x128xi32> to vector<1x128xf32>
    %c0_4 = arith.constant 0 : index
    %c0_5 = arith.constant 0 : index
    %10 = vector.load %arg6[%c0_4, %c0_5] : memref<8x128xbf16, #tpu.memory_space<vmem>>, vector<8x128xbf16>
    %cst = arith.constant dense<0.000000e+00> : vector<8x128xf32>
    %11 = tpu.matmul %4, %10, %cst {dimension_numbers = #tpu.dot_dimension_numbers<[1], [0], [0], [1], [0, 0, 1, 1], [], []>} : vector<8x8xbf16>, vector<8x128xbf16>, vector<8x128xf32> -> vector<8x128xf32>
    %c0_6 = arith.constant 0 : index
    %c0_7 = arith.constant 0 : index
    %12 = vector.load %arg5[%c0_6, %c0_7] : memref<4x128xbf16, #tpu.memory_space<vmem>>, vector<4x128xbf16>
    %cst_8 = arith.constant dense<0.000000e+00> : vector<64x128xf32>
    %13 = tpu.matmul %2, %12, %cst_8 {dimension_numbers = #tpu.dot_dimension_numbers<[1], [0], [0], [1], [0, 0, 1, 1], [], []>} : vector<64x4xbf16>, vector<4x128xbf16>, vector<64x128xf32> -> vector<64x128xf32>
    %14 = vector.shape_cast %13 : vector<64x128xf32> to vector<8x8x128xf32>
    %15 = vector.shape_cast %11 : vector<8x128xf32> to vector<1x8x128xf32>
    %16 = vector.broadcast %15 : vector<1x8x128xf32> to vector<8x8x128xf32>
    %17 = arith.addf %14, %16 : vector<8x8x128xf32>
    %c0_9 = arith.constant 0 : index
    %c0_10 = arith.constant 0 : index
    %18 = vector.load %arg7[%c0_9, %c0_10] : memref<1x128xf32, #tpu.memory_space<vmem>>, vector<1x128xf32>
    %19 = vector.shape_cast %18 : vector<1x128xf32> to vector<1x1x128xf32>
    %20 = vector.broadcast %19 : vector<1x1x128xf32> to vector<8x8x128xf32>
    %21 = arith.addf %17, %20 : vector<8x8x128xf32>
    %cst_11 = arith.constant 0.000000e+00 : f32
    %22 = vector.broadcast %cst_11 : f32 to vector<8x8x128xf32>
    %23 = arith.cmpf ogt, %21, %22 : vector<8x8x128xf32>
    %cst_12 = arith.constant 0.000000e+00 : f32
    %24 = vector.broadcast %cst_12 : f32 to vector<8x8x128xf32>
    %25 = arith.minimumf %21, %24 : vector<8x8x128xf32>
    %26 = math.exp %25 : vector<8x8x128xf32>
    %cst_13 = arith.constant 1.000000e+00 : f32
    %27 = vector.broadcast %cst_13 : f32 to vector<8x8x128xf32>
    %28 = arith.subf %26, %27 : vector<8x8x128xf32>
    %29 = arith.select %23, %21, %28 : vector<8x8x128xi1>, vector<8x8x128xf32>
    %30 = vector.shape_cast %29 : vector<8x8x128xf32> to vector<64x128xf32>
    %31 = arith.truncf %30 : vector<64x128xf32> to vector<64x128xbf16>
    %c0_14 = arith.constant 0 : index
    %c0_15 = arith.constant 0 : index
    %32 = vector.load %arg8[%c0_14, %c0_15] : memref<128x4xbf16, #tpu.memory_space<vmem>>, vector<128x4xbf16>
    %cst_16 = arith.constant dense<0.000000e+00> : vector<64x4xf32>
    %33 = tpu.matmul %31, %32, %cst_16 {dimension_numbers = #tpu.dot_dimension_numbers<[1], [0], [0], [1], [0, 0, 1, 1], [], []>} : vector<64x128xbf16>, vector<128x4xbf16>, vector<64x4xf32> -> vector<64x4xf32>
    %c0_17 = arith.constant 0 : index
    %c0_18 = arith.constant 0 : index
    %34 = vector.load %arg9[%c0_17, %c0_18] : memref<1x4xf32, #tpu.memory_space<vmem>>, vector<1x4xf32>
    %35 = vector.broadcast %34 : vector<1x4xf32> to vector<64x4xf32>
    %36 = arith.addf %33, %35 : vector<64x4xf32>
    %cst_19 = arith.constant dense<0xFF800000> : vector<64xf32>
    %37 = vector.multi_reduction <maximumf>, %36, %cst_19 [1] : vector<64x4xf32> to vector<64xf32>
    %38 = vector.shape_cast %37 : vector<64xf32> to vector<64x1xf32>
    %39 = vector.broadcast %38 : vector<64x1xf32> to vector<64x4xf32>
    %40 = arith.subf %36, %39 : vector<64x4xf32>
    %41 = math.exp %40 : vector<64x4xf32>
    %cst_20 = arith.constant dense<0.000000e+00> : vector<64xf32>
    %42 = vector.multi_reduction <add>, %41, %cst_20 [1] : vector<64x4xf32> to vector<64xf32>
    %43 = vector.shape_cast %42 : vector<64xf32> to vector<64x1xf32>
    %44 = vector.broadcast %43 : vector<64x1xf32> to vector<64x4xf32>
    %45 = arith.divf %41, %44 : vector<64x4xf32>
    %46 = arith.mulf %45, %1 : vector<64x4xf32>
    %47 = arith.truncf %46 : vector<64x4xf32> to vector<64x4xbf16>
    %c0_21 = arith.constant 0 : index
    %c0_22 = arith.constant 0 : index
    %48 = vector.load %arg3[%c0_21, %c0_22] : memref<4x128xbf16, #tpu.memory_space<vmem>>, vector<4x128xbf16>
    %cst_23 = arith.constant dense<0.000000e+00> : vector<64x128xf32>
    %49 = tpu.matmul %47, %48, %cst_23 {dimension_numbers = #tpu.dot_dimension_numbers<[1], [0], [0], [1], [0, 0, 1, 1], [], []>} : vector<64x4xbf16>, vector<4x128xbf16>, vector<64x128xf32> -> vector<64x128xf32>
    %50 = arith.truncf %45 : vector<64x4xf32> to vector<64x4xbf16>
    %c0_24 = arith.constant 0 : index
    %c0_25 = arith.constant 0 : index
    %51 = vector.load %arg4[%c0_24, %c0_25] : memref<4x128xbf16, #tpu.memory_space<vmem>>, vector<4x128xbf16>
    %cst_26 = arith.constant dense<0.000000e+00> : vector<64x128xf32>
    %52 = tpu.matmul %50, %51, %cst_26 {dimension_numbers = #tpu.dot_dimension_numbers<[1], [0], [0], [1], [0, 0, 1, 1], [], []>} : vector<64x4xbf16>, vector<4x128xbf16>, vector<64x128xf32> -> vector<64x128xf32>
    %53 = arith.addf %49, %52 : vector<64x128xf32>
    %54 = arith.truncf %53 : vector<64x128xf32> to vector<64x128xbf16>
    %c0_27 = arith.constant 0 : index
    %c0_28 = arith.constant 0 : index
    %55 = vector.load %arg14[%c0_27, %c0_28] : memref<128x512xbf16, #tpu.memory_space<vmem>>, vector<128x512xbf16>
    %cst_29 = arith.constant dense<0.000000e+00> : vector<64x512xf32>
    %56 = tpu.matmul %54, %55, %cst_29 {dimension_numbers = #tpu.dot_dimension_numbers<[1], [0], [0], [1], [0, 0, 1, 1], [], []>} : vector<64x128xbf16>, vector<128x512xbf16>, vector<64x512xf32> -> vector<64x512xf32>
    %c0_30 = arith.constant 0 : index
    %c0_31 = arith.constant 0 : index
    %57 = vector.load %arg16[%c0_30, %c0_31] : memref<1x512xf32, #tpu.memory_space<vmem>>, vector<1x512xf32>
    %58 = vector.broadcast %57 : vector<1x512xf32> to vector<64x512xf32>
    %59 = arith.addf %56, %58 : vector<64x512xf32>
    %60 = vector.shape_cast %59 : vector<64x512xf32> to vector<8x8x512xf32>
    %61 = vector.shape_cast %53 : vector<64x128xf32> to vector<8x8x128xf32>
    %c0_32 = arith.constant 0 : index
    %c0_33 = arith.constant 0 : index
    %62 = vector.load %arg10[%c0_32, %c0_33] : memref<8x128xbf16, #tpu.memory_space<vmem>>, vector<8x128xbf16>
    %cst_34 = arith.constant dense<0.000000e+00> : vector<8x128xf32>
    %63 = tpu.matmul %4, %62, %cst_34 {dimension_numbers = #tpu.dot_dimension_numbers<[1], [0], [0], [1], [0, 0, 1, 1], [], []>} : vector<8x8xbf16>, vector<8x128xbf16>, vector<8x128xf32> -> vector<8x128xf32>
    %c0_35 = arith.constant 0 : index
    %c0_36 = arith.constant 0 : index
    %64 = vector.load %arg11[%c0_35, %c0_36] : memref<1x128xf32, #tpu.memory_space<vmem>>, vector<1x128xf32>
    %65 = vector.broadcast %64 : vector<1x128xf32> to vector<8x128xf32>
    %66 = arith.addf %63, %65 : vector<8x128xf32>
    %c0_37 = arith.constant 0 : index
    %c0_38 = arith.constant 0 : index
    %67 = vector.load %arg12[%c0_37, %c0_38] : memref<8x128xbf16, #tpu.memory_space<vmem>>, vector<8x128xbf16>
    %cst_39 = arith.constant dense<0.000000e+00> : vector<8x128xf32>
    %68 = tpu.matmul %4, %67, %cst_39 {dimension_numbers = #tpu.dot_dimension_numbers<[1], [0], [0], [1], [0, 0, 1, 1], [], []>} : vector<8x8xbf16>, vector<8x128xbf16>, vector<8x128xf32> -> vector<8x128xf32>
    %c0_40 = arith.constant 0 : index
    %c0_41 = arith.constant 0 : index
    %69 = vector.load %arg13[%c0_40, %c0_41] : memref<1x128xf32, #tpu.memory_space<vmem>>, vector<1x128xf32>
    %70 = vector.broadcast %69 : vector<1x128xf32> to vector<8x128xf32>
    %71 = arith.addf %68, %70 : vector<8x128xf32>
    %c0_42 = arith.constant 0 : index
    %c0_43 = arith.constant 0 : index
    %72 = vector.load %arg15[%c0_42, %c0_43] : memref<128x512xbf16, #tpu.memory_space<vmem>>, vector<128x512xbf16>
    %73 = vector.extract_strided_slice %60 {offsets = [0, 0, 0], sizes = [1, 8, 512], strides = [1, 1, 1]} : vector<8x8x512xf32> to vector<1x8x512xf32>
    %74 = vector.shape_cast %73 : vector<1x8x512xf32> to vector<8x512xf32>
    %75 = arith.truncf %66 : vector<8x128xf32> to vector<8x128xbf16>
    %cst_44 = arith.constant dense<0.000000e+00> : vector<8x512xf32>
    %76 = tpu.matmul %75, %72, %cst_44 {dimension_numbers = #tpu.dot_dimension_numbers<[1], [0], [0], [1], [0, 0, 1, 1], [], []>} : vector<8x128xbf16>, vector<128x512xbf16>, vector<8x512xf32> -> vector<8x512xf32>
    %77 = arith.addf %74, %76 : vector<8x512xf32>
    %78 = vector.extract_strided_slice %77 {offsets = [0, 0], sizes = [8, 128], strides = [1, 1]} : vector<8x512xf32> to vector<8x128xf32>
    %cst_45 = arith.constant 5.000000e-01 : f32
    %79 = vector.broadcast %cst_45 : f32 to vector<8x128xf32>
    %80 = arith.mulf %79, %78 : vector<8x128xf32>
    %81 = math.tanh %80 : vector<8x128xf32>
    %cst_46 = arith.constant 1.000000e+00 : f32
    %82 = vector.broadcast %cst_46 : f32 to vector<8x128xf32>
    %83 = arith.addf %81, %82 : vector<8x128xf32>
    %cst_47 = arith.constant 5.000000e-01 : f32
    %84 = vector.broadcast %cst_47 : f32 to vector<8x128xf32>
    %85 = arith.mulf %84, %83 : vector<8x128xf32>
    %86 = vector.extract_strided_slice %77 {offsets = [0, 128], sizes = [8, 128], strides = [1, 1]} : vector<8x512xf32> to vector<8x128xf32>
    %cst_48 = arith.constant 5.000000e-01 : f32
    %87 = vector.broadcast %cst_48 : f32 to vector<8x128xf32>
    %88 = arith.mulf %87, %86 : vector<8x128xf32>
    %89 = math.tanh %88 : vector<8x128xf32>
    %cst_49 = arith.constant 1.000000e+00 : f32
    %90 = vector.broadcast %cst_49 : f32 to vector<8x128xf32>
    %91 = arith.addf %89, %90 : vector<8x128xf32>
    %cst_50 = arith.constant 5.000000e-01 : f32
    %92 = vector.broadcast %cst_50 : f32 to vector<8x128xf32>
    %93 = arith.mulf %92, %91 : vector<8x128xf32>
    %94 = vector.extract_strided_slice %77 {offsets = [0, 256], sizes = [8, 128], strides = [1, 1]} : vector<8x512xf32> to vector<8x128xf32>
    %95 = math.tanh %94 : vector<8x128xf32>
    %96 = vector.extract_strided_slice %77 {offsets = [0, 384], sizes = [8, 128], strides = [1, 1]} : vector<8x512xf32> to vector<8x128xf32>
    %cst_51 = arith.constant 5.000000e-01 : f32
    %97 = vector.broadcast %cst_51 : f32 to vector<8x128xf32>
    %98 = arith.mulf %97, %96 : vector<8x128xf32>
    %99 = math.tanh %98 : vector<8x128xf32>
    %cst_52 = arith.constant 1.000000e+00 : f32
    %100 = vector.broadcast %cst_52 : f32 to vector<8x128xf32>
    %101 = arith.addf %99, %100 : vector<8x128xf32>
    %cst_53 = arith.constant 5.000000e-01 : f32
    %102 = vector.broadcast %cst_53 : f32 to vector<8x128xf32>
    %103 = arith.mulf %102, %101 : vector<8x128xf32>
    %104 = arith.mulf %93, %71 : vector<8x128xf32>
    %105 = arith.mulf %85, %95 : vector<8x128xf32>
    %106 = arith.addf %104, %105 : vector<8x128xf32>
    %107 = math.tanh %106 : vector<8x128xf32>
    %108 = arith.mulf %103, %107 : vector<8x128xf32>
    %109 = vector.extract_strided_slice %60 {offsets = [1, 0, 0], sizes = [1, 8, 512], strides = [1, 1, 1]} : vector<8x8x512xf32> to vector<1x8x512xf32>
    %110 = vector.shape_cast %109 : vector<1x8x512xf32> to vector<8x512xf32>
    %111 = arith.truncf %108 : vector<8x128xf32> to vector<8x128xbf16>
    %cst_54 = arith.constant dense<0.000000e+00> : vector<8x512xf32>
    %112 = tpu.matmul %111, %72, %cst_54 {dimension_numbers = #tpu.dot_dimension_numbers<[1], [0], [0], [1], [0, 0, 1, 1], [], []>} : vector<8x128xbf16>, vector<128x512xbf16>, vector<8x512xf32> -> vector<8x512xf32>
    %113 = arith.addf %110, %112 : vector<8x512xf32>
    %114 = vector.extract_strided_slice %113 {offsets = [0, 0], sizes = [8, 128], strides = [1, 1]} : vector<8x512xf32> to vector<8x128xf32>
    %cst_55 = arith.constant 5.000000e-01 : f32
    %115 = vector.broadcast %cst_55 : f32 to vector<8x128xf32>
    %116 = arith.mulf %115, %114 : vector<8x128xf32>
    %117 = math.tanh %116 : vector<8x128xf32>
    %cst_56 = arith.constant 1.000000e+00 : f32
    %118 = vector.broadcast %cst_56 : f32 to vector<8x128xf32>
    %119 = arith.addf %117, %118 : vector<8x128xf32>
    %cst_57 = arith.constant 5.000000e-01 : f32
    %120 = vector.broadcast %cst_57 : f32 to vector<8x128xf32>
    %121 = arith.mulf %120, %119 : vector<8x128xf32>
    %122 = vector.extract_strided_slice %113 {offsets = [0, 128], sizes = [8, 128], strides = [1, 1]} : vector<8x512xf32> to vector<8x128xf32>
    %cst_58 = arith.constant 5.000000e-01 : f32
    %123 = vector.broadcast %cst_58 : f32 to vector<8x128xf32>
    %124 = arith.mulf %123, %122 : vector<8x128xf32>
    %125 = math.tanh %124 : vector<8x128xf32>
    %cst_59 = arith.constant 1.000000e+00 : f32
    %126 = vector.broadcast %cst_59 : f32 to vector<8x128xf32>
    %127 = arith.addf %125, %126 : vector<8x128xf32>
    %cst_60 = arith.constant 5.000000e-01 : f32
    %128 = vector.broadcast %cst_60 : f32 to vector<8x128xf32>
    %129 = arith.mulf %128, %127 : vector<8x128xf32>
    %130 = vector.extract_strided_slice %113 {offsets = [0, 256], sizes = [8, 128], strides = [1, 1]} : vector<8x512xf32> to vector<8x128xf32>
    %131 = math.tanh %130 : vector<8x128xf32>
    %132 = vector.extract_strided_slice %113 {offsets = [0, 384], sizes = [8, 128], strides = [1, 1]} : vector<8x512xf32> to vector<8x128xf32>
    %cst_61 = arith.constant 5.000000e-01 : f32
    %133 = vector.broadcast %cst_61 : f32 to vector<8x128xf32>
    %134 = arith.mulf %133, %132 : vector<8x128xf32>
    %135 = math.tanh %134 : vector<8x128xf32>
    %cst_62 = arith.constant 1.000000e+00 : f32
    %136 = vector.broadcast %cst_62 : f32 to vector<8x128xf32>
    %137 = arith.addf %135, %136 : vector<8x128xf32>
    %cst_63 = arith.constant 5.000000e-01 : f32
    %138 = vector.broadcast %cst_63 : f32 to vector<8x128xf32>
    %139 = arith.mulf %138, %137 : vector<8x128xf32>
    %140 = arith.mulf %129, %106 : vector<8x128xf32>
    %141 = arith.mulf %121, %131 : vector<8x128xf32>
    %142 = arith.addf %140, %141 : vector<8x128xf32>
    %143 = math.tanh %142 : vector<8x128xf32>
    %144 = arith.mulf %139, %143 : vector<8x128xf32>
    %145 = vector.extract_strided_slice %60 {offsets = [2, 0, 0], sizes = [1, 8, 512], strides = [1, 1, 1]} : vector<8x8x512xf32> to vector<1x8x512xf32>
    %146 = vector.shape_cast %145 : vector<1x8x512xf32> to vector<8x512xf32>
    %147 = arith.truncf %144 : vector<8x128xf32> to vector<8x128xbf16>
    %cst_64 = arith.constant dense<0.000000e+00> : vector<8x512xf32>
    %148 = tpu.matmul %147, %72, %cst_64 {dimension_numbers = #tpu.dot_dimension_numbers<[1], [0], [0], [1], [0, 0, 1, 1], [], []>} : vector<8x128xbf16>, vector<128x512xbf16>, vector<8x512xf32> -> vector<8x512xf32>
    %149 = arith.addf %146, %148 : vector<8x512xf32>
    %150 = vector.extract_strided_slice %149 {offsets = [0, 0], sizes = [8, 128], strides = [1, 1]} : vector<8x512xf32> to vector<8x128xf32>
    %cst_65 = arith.constant 5.000000e-01 : f32
    %151 = vector.broadcast %cst_65 : f32 to vector<8x128xf32>
    %152 = arith.mulf %151, %150 : vector<8x128xf32>
    %153 = math.tanh %152 : vector<8x128xf32>
    %cst_66 = arith.constant 1.000000e+00 : f32
    %154 = vector.broadcast %cst_66 : f32 to vector<8x128xf32>
    %155 = arith.addf %153, %154 : vector<8x128xf32>
    %cst_67 = arith.constant 5.000000e-01 : f32
    %156 = vector.broadcast %cst_67 : f32 to vector<8x128xf32>
    %157 = arith.mulf %156, %155 : vector<8x128xf32>
    %158 = vector.extract_strided_slice %149 {offsets = [0, 128], sizes = [8, 128], strides = [1, 1]} : vector<8x512xf32> to vector<8x128xf32>
    %cst_68 = arith.constant 5.000000e-01 : f32
    %159 = vector.broadcast %cst_68 : f32 to vector<8x128xf32>
    %160 = arith.mulf %159, %158 : vector<8x128xf32>
    %161 = math.tanh %160 : vector<8x128xf32>
    %cst_69 = arith.constant 1.000000e+00 : f32
    %162 = vector.broadcast %cst_69 : f32 to vector<8x128xf32>
    %163 = arith.addf %161, %162 : vector<8x128xf32>
    %cst_70 = arith.constant 5.000000e-01 : f32
    %164 = vector.broadcast %cst_70 : f32 to vector<8x128xf32>
    %165 = arith.mulf %164, %163 : vector<8x128xf32>
    %166 = vector.extract_strided_slice %149 {offsets = [0, 256], sizes = [8, 128], strides = [1, 1]} : vector<8x512xf32> to vector<8x128xf32>
    %167 = math.tanh %166 : vector<8x128xf32>
    %168 = vector.extract_strided_slice %149 {offsets = [0, 384], sizes = [8, 128], strides = [1, 1]} : vector<8x512xf32> to vector<8x128xf32>
    %cst_71 = arith.constant 5.000000e-01 : f32
    %169 = vector.broadcast %cst_71 : f32 to vector<8x128xf32>
    %170 = arith.mulf %169, %168 : vector<8x128xf32>
    %171 = math.tanh %170 : vector<8x128xf32>
    %cst_72 = arith.constant 1.000000e+00 : f32
    %172 = vector.broadcast %cst_72 : f32 to vector<8x128xf32>
    %173 = arith.addf %171, %172 : vector<8x128xf32>
    %cst_73 = arith.constant 5.000000e-01 : f32
    %174 = vector.broadcast %cst_73 : f32 to vector<8x128xf32>
    %175 = arith.mulf %174, %173 : vector<8x128xf32>
    %176 = arith.mulf %165, %142 : vector<8x128xf32>
    %177 = arith.mulf %157, %167 : vector<8x128xf32>
    %178 = arith.addf %176, %177 : vector<8x128xf32>
    %179 = math.tanh %178 : vector<8x128xf32>
    %180 = arith.mulf %175, %179 : vector<8x128xf32>
    %181 = vector.extract_strided_slice %60 {offsets = [3, 0, 0], sizes = [1, 8, 512], strides = [1, 1, 1]} : vector<8x8x512xf32> to vector<1x8x512xf32>
    %182 = vector.shape_cast %181 : vector<1x8x512xf32> to vector<8x512xf32>
    %183 = arith.truncf %180 : vector<8x128xf32> to vector<8x128xbf16>
    %cst_74 = arith.constant dense<0.000000e+00> : vector<8x512xf32>
    %184 = tpu.matmul %183, %72, %cst_74 {dimension_numbers = #tpu.dot_dimension_numbers<[1], [0], [0], [1], [0, 0, 1, 1], [], []>} : vector<8x128xbf16>, vector<128x512xbf16>, vector<8x512xf32> -> vector<8x512xf32>
    %185 = arith.addf %182, %184 : vector<8x512xf32>
    %186 = vector.extract_strided_slice %185 {offsets = [0, 0], sizes = [8, 128], strides = [1, 1]} : vector<8x512xf32> to vector<8x128xf32>
    %cst_75 = arith.constant 5.000000e-01 : f32
    %187 = vector.broadcast %cst_75 : f32 to vector<8x128xf32>
    %188 = arith.mulf %187, %186 : vector<8x128xf32>
    %189 = math.tanh %188 : vector<8x128xf32>
    %cst_76 = arith.constant 1.000000e+00 : f32
    %190 = vector.broadcast %cst_76 : f32 to vector<8x128xf32>
    %191 = arith.addf %189, %190 : vector<8x128xf32>
    %cst_77 = arith.constant 5.000000e-01 : f32
    %192 = vector.broadcast %cst_77 : f32 to vector<8x128xf32>
    %193 = arith.mulf %192, %191 : vector<8x128xf32>
    %194 = vector.extract_strided_slice %185 {offsets = [0, 128], sizes = [8, 128], strides = [1, 1]} : vector<8x512xf32> to vector<8x128xf32>
    %cst_78 = arith.constant 5.000000e-01 : f32
    %195 = vector.broadcast %cst_78 : f32 to vector<8x128xf32>
    %196 = arith.mulf %195, %194 : vector<8x128xf32>
    %197 = math.tanh %196 : vector<8x128xf32>
    %cst_79 = arith.constant 1.000000e+00 : f32
    %198 = vector.broadcast %cst_79 : f32 to vector<8x128xf32>
    %199 = arith.addf %197, %198 : vector<8x128xf32>
    %cst_80 = arith.constant 5.000000e-01 : f32
    %200 = vector.broadcast %cst_80 : f32 to vector<8x128xf32>
    %201 = arith.mulf %200, %199 : vector<8x128xf32>
    %202 = vector.extract_strided_slice %185 {offsets = [0, 256], sizes = [8, 128], strides = [1, 1]} : vector<8x512xf32> to vector<8x128xf32>
    %203 = math.tanh %202 : vector<8x128xf32>
    %204 = vector.extract_strided_slice %185 {offsets = [0, 384], sizes = [8, 128], strides = [1, 1]} : vector<8x512xf32> to vector<8x128xf32>
    %cst_81 = arith.constant 5.000000e-01 : f32
    %205 = vector.broadcast %cst_81 : f32 to vector<8x128xf32>
    %206 = arith.mulf %205, %204 : vector<8x128xf32>
    %207 = math.tanh %206 : vector<8x128xf32>
    %cst_82 = arith.constant 1.000000e+00 : f32
    %208 = vector.broadcast %cst_82 : f32 to vector<8x128xf32>
    %209 = arith.addf %207, %208 : vector<8x128xf32>
    %cst_83 = arith.constant 5.000000e-01 : f32
    %210 = vector.broadcast %cst_83 : f32 to vector<8x128xf32>
    %211 = arith.mulf %210, %209 : vector<8x128xf32>
    %212 = arith.mulf %201, %178 : vector<8x128xf32>
    %213 = arith.mulf %193, %203 : vector<8x128xf32>
    %214 = arith.addf %212, %213 : vector<8x128xf32>
    %215 = math.tanh %214 : vector<8x128xf32>
    %216 = arith.mulf %211, %215 : vector<8x128xf32>
    %217 = vector.extract_strided_slice %60 {offsets = [4, 0, 0], sizes = [1, 8, 512], strides = [1, 1, 1]} : vector<8x8x512xf32> to vector<1x8x512xf32>
    %218 = vector.shape_cast %217 : vector<1x8x512xf32> to vector<8x512xf32>
    %219 = arith.truncf %216 : vector<8x128xf32> to vector<8x128xbf16>
    %cst_84 = arith.constant dense<0.000000e+00> : vector<8x512xf32>
    %220 = tpu.matmul %219, %72, %cst_84 {dimension_numbers = #tpu.dot_dimension_numbers<[1], [0], [0], [1], [0, 0, 1, 1], [], []>} : vector<8x128xbf16>, vector<128x512xbf16>, vector<8x512xf32> -> vector<8x512xf32>
    %221 = arith.addf %218, %220 : vector<8x512xf32>
    %222 = vector.extract_strided_slice %221 {offsets = [0, 0], sizes = [8, 128], strides = [1, 1]} : vector<8x512xf32> to vector<8x128xf32>
    %cst_85 = arith.constant 5.000000e-01 : f32
    %223 = vector.broadcast %cst_85 : f32 to vector<8x128xf32>
    %224 = arith.mulf %223, %222 : vector<8x128xf32>
    %225 = math.tanh %224 : vector<8x128xf32>
    %cst_86 = arith.constant 1.000000e+00 : f32
    %226 = vector.broadcast %cst_86 : f32 to vector<8x128xf32>
    %227 = arith.addf %225, %226 : vector<8x128xf32>
    %cst_87 = arith.constant 5.000000e-01 : f32
    %228 = vector.broadcast %cst_87 : f32 to vector<8x128xf32>
    %229 = arith.mulf %228, %227 : vector<8x128xf32>
    %230 = vector.extract_strided_slice %221 {offsets = [0, 128], sizes = [8, 128], strides = [1, 1]} : vector<8x512xf32> to vector<8x128xf32>
    %cst_88 = arith.constant 5.000000e-01 : f32
    %231 = vector.broadcast %cst_88 : f32 to vector<8x128xf32>
    %232 = arith.mulf %231, %230 : vector<8x128xf32>
    %233 = math.tanh %232 : vector<8x128xf32>
    %cst_89 = arith.constant 1.000000e+00 : f32
    %234 = vector.broadcast %cst_89 : f32 to vector<8x128xf32>
    %235 = arith.addf %233, %234 : vector<8x128xf32>
    %cst_90 = arith.constant 5.000000e-01 : f32
    %236 = vector.broadcast %cst_90 : f32 to vector<8x128xf32>
    %237 = arith.mulf %236, %235 : vector<8x128xf32>
    %238 = vector.extract_strided_slice %221 {offsets = [0, 256], sizes = [8, 128], strides = [1, 1]} : vector<8x512xf32> to vector<8x128xf32>
    %239 = math.tanh %238 : vector<8x128xf32>
    %240 = vector.extract_strided_slice %221 {offsets = [0, 384], sizes = [8, 128], strides = [1, 1]} : vector<8x512xf32> to vector<8x128xf32>
    %cst_91 = arith.constant 5.000000e-01 : f32
    %241 = vector.broadcast %cst_91 : f32 to vector<8x128xf32>
    %242 = arith.mulf %241, %240 : vector<8x128xf32>
    %243 = math.tanh %242 : vector<8x128xf32>
    %cst_92 = arith.constant 1.000000e+00 : f32
    %244 = vector.broadcast %cst_92 : f32 to vector<8x128xf32>
    %245 = arith.addf %243, %244 : vector<8x128xf32>
    %cst_93 = arith.constant 5.000000e-01 : f32
    %246 = vector.broadcast %cst_93 : f32 to vector<8x128xf32>
    %247 = arith.mulf %246, %245 : vector<8x128xf32>
    %248 = arith.mulf %237, %214 : vector<8x128xf32>
    %249 = arith.mulf %229, %239 : vector<8x128xf32>
    %250 = arith.addf %248, %249 : vector<8x128xf32>
    %251 = math.tanh %250 : vector<8x128xf32>
    %252 = arith.mulf %247, %251 : vector<8x128xf32>
    %253 = vector.extract_strided_slice %60 {offsets = [5, 0, 0], sizes = [1, 8, 512], strides = [1, 1, 1]} : vector<8x8x512xf32> to vector<1x8x512xf32>
    %254 = vector.shape_cast %253 : vector<1x8x512xf32> to vector<8x512xf32>
    %255 = arith.truncf %252 : vector<8x128xf32> to vector<8x128xbf16>
    %cst_94 = arith.constant dense<0.000000e+00> : vector<8x512xf32>
    %256 = tpu.matmul %255, %72, %cst_94 {dimension_numbers = #tpu.dot_dimension_numbers<[1], [0], [0], [1], [0, 0, 1, 1], [], []>} : vector<8x128xbf16>, vector<128x512xbf16>, vector<8x512xf32> -> vector<8x512xf32>
    %257 = arith.addf %254, %256 : vector<8x512xf32>
    %258 = vector.extract_strided_slice %257 {offsets = [0, 0], sizes = [8, 128], strides = [1, 1]} : vector<8x512xf32> to vector<8x128xf32>
    %cst_95 = arith.constant 5.000000e-01 : f32
    %259 = vector.broadcast %cst_95 : f32 to vector<8x128xf32>
    %260 = arith.mulf %259, %258 : vector<8x128xf32>
    %261 = math.tanh %260 : vector<8x128xf32>
    %cst_96 = arith.constant 1.000000e+00 : f32
    %262 = vector.broadcast %cst_96 : f32 to vector<8x128xf32>
    %263 = arith.addf %261, %262 : vector<8x128xf32>
    %cst_97 = arith.constant 5.000000e-01 : f32
    %264 = vector.broadcast %cst_97 : f32 to vector<8x128xf32>
    %265 = arith.mulf %264, %263 : vector<8x128xf32>
    %266 = vector.extract_strided_slice %257 {offsets = [0, 128], sizes = [8, 128], strides = [1, 1]} : vector<8x512xf32> to vector<8x128xf32>
    %cst_98 = arith.constant 5.000000e-01 : f32
    %267 = vector.broadcast %cst_98 : f32 to vector<8x128xf32>
    %268 = arith.mulf %267, %266 : vector<8x128xf32>
    %269 = math.tanh %268 : vector<8x128xf32>
    %cst_99 = arith.constant 1.000000e+00 : f32
    %270 = vector.broadcast %cst_99 : f32 to vector<8x128xf32>
    %271 = arith.addf %269, %270 : vector<8x128xf32>
    %cst_100 = arith.constant 5.000000e-01 : f32
    %272 = vector.broadcast %cst_100 : f32 to vector<8x128xf32>
    %273 = arith.mulf %272, %271 : vector<8x128xf32>
    %274 = vector.extract_strided_slice %257 {offsets = [0, 256], sizes = [8, 128], strides = [1, 1]} : vector<8x512xf32> to vector<8x128xf32>
    %275 = math.tanh %274 : vector<8x128xf32>
    %276 = vector.extract_strided_slice %257 {offsets = [0, 384], sizes = [8, 128], strides = [1, 1]} : vector<8x512xf32> to vector<8x128xf32>
    %cst_101 = arith.constant 5.000000e-01 : f32
    %277 = vector.broadcast %cst_101 : f32 to vector<8x128xf32>
    %278 = arith.mulf %277, %276 : vector<8x128xf32>
    %279 = math.tanh %278 : vector<8x128xf32>
    %cst_102 = arith.constant 1.000000e+00 : f32
    %280 = vector.broadcast %cst_102 : f32 to vector<8x128xf32>
    %281 = arith.addf %279, %280 : vector<8x128xf32>
    %cst_103 = arith.constant 5.000000e-01 : f32
    %282 = vector.broadcast %cst_103 : f32 to vector<8x128xf32>
    %283 = arith.mulf %282, %281 : vector<8x128xf32>
    %284 = arith.mulf %273, %250 : vector<8x128xf32>
    %285 = arith.mulf %265, %275 : vector<8x128xf32>
    %286 = arith.addf %284, %285 : vector<8x128xf32>
    %287 = math.tanh %286 : vector<8x128xf32>
    %288 = arith.mulf %283, %287 : vector<8x128xf32>
    %289 = vector.extract_strided_slice %60 {offsets = [6, 0, 0], sizes = [1, 8, 512], strides = [1, 1, 1]} : vector<8x8x512xf32> to vector<1x8x512xf32>
    %290 = vector.shape_cast %289 : vector<1x8x512xf32> to vector<8x512xf32>
    %291 = arith.truncf %288 : vector<8x128xf32> to vector<8x128xbf16>
    %cst_104 = arith.constant dense<0.000000e+00> : vector<8x512xf32>
    %292 = tpu.matmul %291, %72, %cst_104 {dimension_numbers = #tpu.dot_dimension_numbers<[1], [0], [0], [1], [0, 0, 1, 1], [], []>} : vector<8x128xbf16>, vector<128x512xbf16>, vector<8x512xf32> -> vector<8x512xf32>
    %293 = arith.addf %290, %292 : vector<8x512xf32>
    %294 = vector.extract_strided_slice %293 {offsets = [0, 0], sizes = [8, 128], strides = [1, 1]} : vector<8x512xf32> to vector<8x128xf32>
    %cst_105 = arith.constant 5.000000e-01 : f32
    %295 = vector.broadcast %cst_105 : f32 to vector<8x128xf32>
    %296 = arith.mulf %295, %294 : vector<8x128xf32>
    %297 = math.tanh %296 : vector<8x128xf32>
    %cst_106 = arith.constant 1.000000e+00 : f32
    %298 = vector.broadcast %cst_106 : f32 to vector<8x128xf32>
    %299 = arith.addf %297, %298 : vector<8x128xf32>
    %cst_107 = arith.constant 5.000000e-01 : f32
    %300 = vector.broadcast %cst_107 : f32 to vector<8x128xf32>
    %301 = arith.mulf %300, %299 : vector<8x128xf32>
    %302 = vector.extract_strided_slice %293 {offsets = [0, 128], sizes = [8, 128], strides = [1, 1]} : vector<8x512xf32> to vector<8x128xf32>
    %cst_108 = arith.constant 5.000000e-01 : f32
    %303 = vector.broadcast %cst_108 : f32 to vector<8x128xf32>
    %304 = arith.mulf %303, %302 : vector<8x128xf32>
    %305 = math.tanh %304 : vector<8x128xf32>
    %cst_109 = arith.constant 1.000000e+00 : f32
    %306 = vector.broadcast %cst_109 : f32 to vector<8x128xf32>
    %307 = arith.addf %305, %306 : vector<8x128xf32>
    %cst_110 = arith.constant 5.000000e-01 : f32
    %308 = vector.broadcast %cst_110 : f32 to vector<8x128xf32>
    %309 = arith.mulf %308, %307 : vector<8x128xf32>
    %310 = vector.extract_strided_slice %293 {offsets = [0, 256], sizes = [8, 128], strides = [1, 1]} : vector<8x512xf32> to vector<8x128xf32>
    %311 = math.tanh %310 : vector<8x128xf32>
    %312 = vector.extract_strided_slice %293 {offsets = [0, 384], sizes = [8, 128], strides = [1, 1]} : vector<8x512xf32> to vector<8x128xf32>
    %cst_111 = arith.constant 5.000000e-01 : f32
    %313 = vector.broadcast %cst_111 : f32 to vector<8x128xf32>
    %314 = arith.mulf %313, %312 : vector<8x128xf32>
    %315 = math.tanh %314 : vector<8x128xf32>
    %cst_112 = arith.constant 1.000000e+00 : f32
    %316 = vector.broadcast %cst_112 : f32 to vector<8x128xf32>
    %317 = arith.addf %315, %316 : vector<8x128xf32>
    %cst_113 = arith.constant 5.000000e-01 : f32
    %318 = vector.broadcast %cst_113 : f32 to vector<8x128xf32>
    %319 = arith.mulf %318, %317 : vector<8x128xf32>
    %320 = arith.mulf %309, %286 : vector<8x128xf32>
    %321 = arith.mulf %301, %311 : vector<8x128xf32>
    %322 = arith.addf %320, %321 : vector<8x128xf32>
    %323 = math.tanh %322 : vector<8x128xf32>
    %324 = arith.mulf %319, %323 : vector<8x128xf32>
    %325 = vector.extract_strided_slice %60 {offsets = [7, 0, 0], sizes = [1, 8, 512], strides = [1, 1, 1]} : vector<8x8x512xf32> to vector<1x8x512xf32>
    %326 = vector.shape_cast %325 : vector<1x8x512xf32> to vector<8x512xf32>
    %327 = arith.truncf %324 : vector<8x128xf32> to vector<8x128xbf16>
    %cst_114 = arith.constant dense<0.000000e+00> : vector<8x512xf32>
    %328 = tpu.matmul %327, %72, %cst_114 {dimension_numbers = #tpu.dot_dimension_numbers<[1], [0], [0], [1], [0, 0, 1, 1], [], []>} : vector<8x128xbf16>, vector<128x512xbf16>, vector<8x512xf32> -> vector<8x512xf32>
    %329 = arith.addf %326, %328 : vector<8x512xf32>
    %330 = vector.extract_strided_slice %329 {offsets = [0, 0], sizes = [8, 128], strides = [1, 1]} : vector<8x512xf32> to vector<8x128xf32>
    %cst_115 = arith.constant 5.000000e-01 : f32
    %331 = vector.broadcast %cst_115 : f32 to vector<8x128xf32>
    %332 = arith.mulf %331, %330 : vector<8x128xf32>
    %333 = math.tanh %332 : vector<8x128xf32>
    %cst_116 = arith.constant 1.000000e+00 : f32
    %334 = vector.broadcast %cst_116 : f32 to vector<8x128xf32>
    %335 = arith.addf %333, %334 : vector<8x128xf32>
    %cst_117 = arith.constant 5.000000e-01 : f32
    %336 = vector.broadcast %cst_117 : f32 to vector<8x128xf32>
    %337 = arith.mulf %336, %335 : vector<8x128xf32>
    %338 = vector.extract_strided_slice %329 {offsets = [0, 128], sizes = [8, 128], strides = [1, 1]} : vector<8x512xf32> to vector<8x128xf32>
    %cst_118 = arith.constant 5.000000e-01 : f32
    %339 = vector.broadcast %cst_118 : f32 to vector<8x128xf32>
    %340 = arith.mulf %339, %338 : vector<8x128xf32>
    %341 = math.tanh %340 : vector<8x128xf32>
    %cst_119 = arith.constant 1.000000e+00 : f32
    %342 = vector.broadcast %cst_119 : f32 to vector<8x128xf32>
    %343 = arith.addf %341, %342 : vector<8x128xf32>
    %cst_120 = arith.constant 5.000000e-01 : f32
    %344 = vector.broadcast %cst_120 : f32 to vector<8x128xf32>
    %345 = arith.mulf %344, %343 : vector<8x128xf32>
    %346 = vector.extract_strided_slice %329 {offsets = [0, 256], sizes = [8, 128], strides = [1, 1]} : vector<8x512xf32> to vector<8x128xf32>
    %347 = math.tanh %346 : vector<8x128xf32>
    %348 = vector.extract_strided_slice %329 {offsets = [0, 384], sizes = [8, 128], strides = [1, 1]} : vector<8x512xf32> to vector<8x128xf32>
    %cst_121 = arith.constant 5.000000e-01 : f32
    %349 = vector.broadcast %cst_121 : f32 to vector<8x128xf32>
    %350 = arith.mulf %349, %348 : vector<8x128xf32>
    %351 = math.tanh %350 : vector<8x128xf32>
    %cst_122 = arith.constant 1.000000e+00 : f32
    %352 = vector.broadcast %cst_122 : f32 to vector<8x128xf32>
    %353 = arith.addf %351, %352 : vector<8x128xf32>
    %cst_123 = arith.constant 5.000000e-01 : f32
    %354 = vector.broadcast %cst_123 : f32 to vector<8x128xf32>
    %355 = arith.mulf %354, %353 : vector<8x128xf32>
    %356 = arith.mulf %345, %322 : vector<8x128xf32>
    %357 = arith.mulf %337, %347 : vector<8x128xf32>
    %358 = arith.addf %356, %357 : vector<8x128xf32>
    %359 = math.tanh %358 : vector<8x128xf32>
    %360 = arith.mulf %355, %359 : vector<8x128xf32>
    %361 = vector.extract_strided_slice %61 {offsets = [7, 0, 0], sizes = [1, 8, 128], strides = [1, 1, 1]} : vector<8x8x128xf32> to vector<1x8x128xf32>
    %362 = vector.shape_cast %361 : vector<1x8x128xf32> to vector<8x128xf32>
    %363 = arith.addf %360, %362 : vector<8x128xf32>
    %c0_124 = arith.constant 0 : index
    %c0_125 = arith.constant 0 : index
    %364 = vector.load %arg17[%c0_124, %c0_125] : memref<1x128xf32, #tpu.memory_space<vmem>>, vector<1x128xf32>
    %c0_126 = arith.constant 0 : index
    %c0_127 = arith.constant 0 : index
    %365 = vector.load %arg18[%c0_126, %c0_127] : memref<1x128xf32, #tpu.memory_space<vmem>>, vector<1x128xf32>
    %cst_128 = arith.constant dense<0.000000e+00> : vector<8xf32>
    %366 = vector.multi_reduction <add>, %363, %cst_128 [1] : vector<8x128xf32> to vector<8xf32>
    %367 = vector.shape_cast %366 : vector<8xf32> to vector<8x1xf32>
    %cst_129 = arith.constant 3.125000e-02 : f32
    %368 = vector.broadcast %cst_129 : f32 to vector<8x1xf32>
    %369 = arith.mulf %367, %368 : vector<8x1xf32>
    %370 = vector.broadcast %369 : vector<8x1xf32> to vector<8x128xf32>
    %371 = arith.subf %363, %370 : vector<8x128xf32>
    %372 = vector.broadcast %9 : vector<1x128xf32> to vector<8x128xf32>
    %373 = arith.mulf %371, %372 : vector<8x128xf32>
    %374 = arith.mulf %373, %373 : vector<8x128xf32>
    %cst_130 = arith.constant dense<0.000000e+00> : vector<8xf32>
    %375 = vector.multi_reduction <add>, %374, %cst_130 [1] : vector<8x128xf32> to vector<8xf32>
    %376 = vector.shape_cast %375 : vector<8xf32> to vector<8x1xf32>
    %cst_131 = arith.constant 3.125000e-02 : f32
    %377 = vector.broadcast %cst_131 : f32 to vector<8x1xf32>
    %378 = arith.mulf %376, %377 : vector<8x1xf32>
    %379 = vector.broadcast %369 : vector<8x1xf32> to vector<8x128xf32>
    %380 = arith.subf %363, %379 : vector<8x128xf32>
    %cst_132 = arith.constant 9.99999974E-6 : f32
    %381 = vector.broadcast %cst_132 : f32 to vector<8x1xf32>
    %382 = arith.addf %378, %381 : vector<8x1xf32>
    %383 = math.rsqrt %382 : vector<8x1xf32>
    %384 = vector.broadcast %383 : vector<8x1xf32> to vector<8x128xf32>
    %385 = arith.mulf %380, %384 : vector<8x128xf32>
    %386 = vector.broadcast %364 : vector<1x128xf32> to vector<8x128xf32>
    %387 = arith.mulf %385, %386 : vector<8x128xf32>
    %388 = vector.broadcast %365 : vector<1x128xf32> to vector<8x128xf32>
    %389 = arith.addf %387, %388 : vector<8x128xf32>
    %390 = arith.truncf %389 : vector<8x128xf32> to vector<8x128xbf16>
    %c0_133 = arith.constant 0 : index
    %c0_134 = arith.constant 0 : index
    %391 = vector.load %arg19[%c0_133, %c0_134] : memref<128x128xbf16, #tpu.memory_space<vmem>>, vector<128x128xbf16>
    %cst_135 = arith.constant dense<0.000000e+00> : vector<8x128xf32>
    %392 = tpu.matmul %390, %391, %cst_135 {dimension_numbers = #tpu.dot_dimension_numbers<[1], [0], [0], [1], [0, 0, 1, 1], [], []>} : vector<8x128xbf16>, vector<128x128xbf16>, vector<8x128xf32> -> vector<8x128xf32>
    %c0_136 = arith.constant 0 : index
    %c0_137 = arith.constant 0 : index
    %393 = vector.load %arg20[%c0_136, %c0_137] : memref<8x128xbf16, #tpu.memory_space<vmem>>, vector<8x128xbf16>
    %cst_138 = arith.constant dense<0.000000e+00> : vector<8x128xf32>
    %394 = tpu.matmul %4, %393, %cst_138 {dimension_numbers = #tpu.dot_dimension_numbers<[1], [0], [0], [1], [0, 0, 1, 1], [], []>} : vector<8x8xbf16>, vector<8x128xbf16>, vector<8x128xf32> -> vector<8x128xf32>
    %395 = arith.addf %392, %394 : vector<8x128xf32>
    %c0_139 = arith.constant 0 : index
    %c0_140 = arith.constant 0 : index
    %396 = vector.load %arg21[%c0_139, %c0_140] : memref<1x128xf32, #tpu.memory_space<vmem>>, vector<1x128xf32>
    %397 = vector.broadcast %396 : vector<1x128xf32> to vector<8x128xf32>
    %398 = arith.addf %395, %397 : vector<8x128xf32>
    %cst_141 = arith.constant 0.000000e+00 : f32
    %399 = vector.broadcast %cst_141 : f32 to vector<8x128xf32>
    %400 = arith.cmpf ogt, %398, %399 : vector<8x128xf32>
    %cst_142 = arith.constant 0.000000e+00 : f32
    %401 = vector.broadcast %cst_142 : f32 to vector<8x128xf32>
    %402 = arith.minimumf %398, %401 : vector<8x128xf32>
    %403 = math.exp %402 : vector<8x128xf32>
    %cst_143 = arith.constant 1.000000e+00 : f32
    %404 = vector.broadcast %cst_143 : f32 to vector<8x128xf32>
    %405 = arith.subf %403, %404 : vector<8x128xf32>
    %406 = arith.select %400, %398, %405 : vector<8x128xi1>, vector<8x128xf32>
    %407 = arith.truncf %406 : vector<8x128xf32> to vector<8x128xbf16>
    %c0_144 = arith.constant 0 : index
    %c0_145 = arith.constant 0 : index
    %408 = vector.load %arg22[%c0_144, %c0_145] : memref<128x128xbf16, #tpu.memory_space<vmem>>, vector<128x128xbf16>
    %cst_146 = arith.constant dense<0.000000e+00> : vector<8x128xf32>
    %409 = tpu.matmul %407, %408, %cst_146 {dimension_numbers = #tpu.dot_dimension_numbers<[1], [0], [0], [1], [0, 0, 1, 1], [], []>} : vector<8x128xbf16>, vector<128x128xbf16>, vector<8x128xf32> -> vector<8x128xf32>
    %c0_147 = arith.constant 0 : index
    %c0_148 = arith.constant 0 : index
    %410 = vector.load %arg23[%c0_147, %c0_148] : memref<1x128xf32, #tpu.memory_space<vmem>>, vector<1x128xf32>
    %411 = vector.broadcast %410 : vector<1x128xf32> to vector<8x128xf32>
    %412 = arith.addf %409, %411 : vector<8x128xf32>
    %413 = arith.addf %412, %389 : vector<8x128xf32>
    %c0_149 = arith.constant 0 : index
    %c0_150 = arith.constant 0 : index
    %414 = vector.load %arg24[%c0_149, %c0_150] : memref<1x128xf32, #tpu.memory_space<vmem>>, vector<1x128xf32>
    %c0_151 = arith.constant 0 : index
    %c0_152 = arith.constant 0 : index
    %415 = vector.load %arg25[%c0_151, %c0_152] : memref<1x128xf32, #tpu.memory_space<vmem>>, vector<1x128xf32>
    %cst_153 = arith.constant dense<0.000000e+00> : vector<8xf32>
    %416 = vector.multi_reduction <add>, %413, %cst_153 [1] : vector<8x128xf32> to vector<8xf32>
    %417 = vector.shape_cast %416 : vector<8xf32> to vector<8x1xf32>
    %cst_154 = arith.constant 3.125000e-02 : f32
    %418 = vector.broadcast %cst_154 : f32 to vector<8x1xf32>
    %419 = arith.mulf %417, %418 : vector<8x1xf32>
    %420 = vector.broadcast %419 : vector<8x1xf32> to vector<8x128xf32>
    %421 = arith.subf %413, %420 : vector<8x128xf32>
    %422 = vector.broadcast %9 : vector<1x128xf32> to vector<8x128xf32>
    %423 = arith.mulf %421, %422 : vector<8x128xf32>
    %424 = arith.mulf %423, %423 : vector<8x128xf32>
    %cst_155 = arith.constant dense<0.000000e+00> : vector<8xf32>
    %425 = vector.multi_reduction <add>, %424, %cst_155 [1] : vector<8x128xf32> to vector<8xf32>
    %426 = vector.shape_cast %425 : vector<8xf32> to vector<8x1xf32>
    %cst_156 = arith.constant 3.125000e-02 : f32
    %427 = vector.broadcast %cst_156 : f32 to vector<8x1xf32>
    %428 = arith.mulf %426, %427 : vector<8x1xf32>
    %429 = vector.broadcast %419 : vector<8x1xf32> to vector<8x128xf32>
    %430 = arith.subf %413, %429 : vector<8x128xf32>
    %cst_157 = arith.constant 9.99999974E-6 : f32
    %431 = vector.broadcast %cst_157 : f32 to vector<8x1xf32>
    %432 = arith.addf %428, %431 : vector<8x1xf32>
    %433 = math.rsqrt %432 : vector<8x1xf32>
    %434 = vector.broadcast %433 : vector<8x1xf32> to vector<8x128xf32>
    %435 = arith.mulf %430, %434 : vector<8x128xf32>
    %436 = vector.broadcast %414 : vector<1x128xf32> to vector<8x128xf32>
    %437 = arith.mulf %435, %436 : vector<8x128xf32>
    %438 = vector.broadcast %415 : vector<1x128xf32> to vector<8x128xf32>
    %439 = arith.addf %437, %438 : vector<8x128xf32>
    %c0_158 = arith.constant 0 : index
    %c0_159 = arith.constant 0 : index
    %440 = vector.load %arg26[%c0_158, %c0_159] : memref<8x128xf32, #tpu.memory_space<vmem>>, vector<8x128xf32>
    tpu.vector_store %arg26[%c0_158, %c0_159], %439 {strides = array<i32>} : memref<8x128xf32, #tpu.memory_space<vmem>>, vector<8x128xf32>,
    return
  }
  func.func @transform_0(%arg0: i32) -> (i32, i32, i32) {
    %c0_i32 = arith.constant 0 : i32
    %c0_i32_0 = arith.constant 0 : i32
    %c0_i32_1 = arith.constant 0 : i32
    return %c0_i32, %arg0, %c0_i32_0 : i32, i32, i32
  }
  func.func @transform_1(%arg0: i32) -> (i32, i32) {
    %c0_i32 = arith.constant 0 : i32
    %c0_i32_0 = arith.constant 0 : i32
    return %arg0, %c0_i32 : i32, i32
  }
  func.func @transform_2(%arg0: i32) -> (i32, i32) {
    %c0_i32 = arith.constant 0 : i32
    %c0_i32_0 = arith.constant 0 : i32
    %c0_i32_1 = arith.constant 0 : i32
    return %c0_i32, %c0_i32_0 : i32, i32
  }
  func.func @transform_3(%arg0: i32) -> (i32, i32) {
    %c0_i32 = arith.constant 0 : i32
    %c0_i32_0 = arith.constant 0 : i32
    %c0_i32_1 = arith.constant 0 : i32
    return %c0_i32, %c0_i32_0 : i32, i32
  }
  func.func @transform_4(%arg0: i32) -> (i32, i32) {
    %c0_i32 = arith.constant 0 : i32
    %c0_i32_0 = arith.constant 0 : i32
    %c0_i32_1 = arith.constant 0 : i32
    return %c0_i32, %c0_i32_0 : i32, i32
  }
  func.func @transform_5(%arg0: i32) -> (i32, i32) {
    %c0_i32 = arith.constant 0 : i32
    %c0_i32_0 = arith.constant 0 : i32
    %c0_i32_1 = arith.constant 0 : i32
    return %c0_i32, %c0_i32_0 : i32, i32
  }
  func.func @transform_6(%arg0: i32) -> (i32, i32) {
    %c0_i32 = arith.constant 0 : i32
    %c0_i32_0 = arith.constant 0 : i32
    %c0_i32_1 = arith.constant 0 : i32
    return %c0_i32, %c0_i32_0 : i32, i32
  }
  func.func @transform_7(%arg0: i32) -> (i32, i32) {
    %c0_i32 = arith.constant 0 : i32
    %c0_i32_0 = arith.constant 0 : i32
    %c0_i32_1 = arith.constant 0 : i32
    return %c0_i32, %c0_i32_0 : i32, i32
  }
  func.func @transform_8(%arg0: i32) -> (i32, i32) {
    %c0_i32 = arith.constant 0 : i32
    %c0_i32_0 = arith.constant 0 : i32
    %c0_i32_1 = arith.constant 0 : i32
    return %c0_i32, %c0_i32_0 : i32, i32
  }
  func.func @transform_9(%arg0: i32) -> (i32, i32) {
    %c0_i32 = arith.constant 0 : i32
    %c0_i32_0 = arith.constant 0 : i32
    %c0_i32_1 = arith.constant 0 : i32
    return %c0_i32, %c0_i32_0 : i32, i32
  }
  func.func @transform_10(%arg0: i32) -> (i32, i32) {
    %c0_i32 = arith.constant 0 : i32
    %c0_i32_0 = arith.constant 0 : i32
    %c0_i32_1 = arith.constant 0 : i32
    return %c0_i32, %c0_i32_0 : i32, i32
  }
  func.func @transform_11(%arg0: i32) -> (i32, i32) {
    %c0_i32 = arith.constant 0 : i32
    %c0_i32_0 = arith.constant 0 : i32
    %c0_i32_1 = arith.constant 0 : i32
    return %c0_i32, %c0_i32_0 : i32, i32
  }
  func.func @transform_12(%arg0: i32) -> (i32, i32) {
    %c0_i32 = arith.constant 0 : i32
    %c0_i32_0 = arith.constant 0 : i32
    %c0_i32_1 = arith.constant 0 : i32
    return %c0_i32, %c0_i32_0 : i32, i32
  }
  func.func @transform_13(%arg0: i32) -> (i32, i32) {
    %c0_i32 = arith.constant 0 : i32
    %c0_i32_0 = arith.constant 0 : i32
    %c0_i32_1 = arith.constant 0 : i32
    return %c0_i32, %c0_i32_0 : i32, i32
  }
  func.func @transform_14(%arg0: i32) -> (i32, i32) {
    %c0_i32 = arith.constant 0 : i32
    %c0_i32_0 = arith.constant 0 : i32
    %c0_i32_1 = arith.constant 0 : i32
    return %c0_i32, %c0_i32_0 : i32, i32
  }
  func.func @transform_15(%arg0: i32) -> (i32, i32) {
    %c0_i32 = arith.constant 0 : i32
    %c0_i32_0 = arith.constant 0 : i32
    %c0_i32_1 = arith.constant 0 : i32
    return %c0_i32, %c0_i32_0 : i32, i32
  }
  func.func @transform_16(%arg0: i32) -> (i32, i32) {
    %c0_i32 = arith.constant 0 : i32
    %c0_i32_0 = arith.constant 0 : i32
    %c0_i32_1 = arith.constant 0 : i32
    return %c0_i32, %c0_i32_0 : i32, i32
  }
  func.func @transform_17(%arg0: i32) -> (i32, i32) {
    %c0_i32 = arith.constant 0 : i32
    %c0_i32_0 = arith.constant 0 : i32
    %c0_i32_1 = arith.constant 0 : i32
    return %c0_i32, %c0_i32_0 : i32, i32
  }
  func.func @transform_18(%arg0: i32) -> (i32, i32) {
    %c0_i32 = arith.constant 0 : i32
    %c0_i32_0 = arith.constant 0 : i32
    %c0_i32_1 = arith.constant 0 : i32
    return %c0_i32, %c0_i32_0 : i32, i32
  }
  func.func @transform_19(%arg0: i32) -> (i32, i32) {
    %c0_i32 = arith.constant 0 : i32
    %c0_i32_0 = arith.constant 0 : i32
    %c0_i32_1 = arith.constant 0 : i32
    return %c0_i32, %c0_i32_0 : i32, i32
  }
  func.func @transform_20(%arg0: i32) -> (i32, i32) {
    %c0_i32 = arith.constant 0 : i32
    %c0_i32_0 = arith.constant 0 : i32
    %c0_i32_1 = arith.constant 0 : i32
    return %c0_i32, %c0_i32_0 : i32, i32
  }
  func.func @transform_21(%arg0: i32) -> (i32, i32) {
    %c0_i32 = arith.constant 0 : i32
    %c0_i32_0 = arith.constant 0 : i32
    %c0_i32_1 = arith.constant 0 : i32
    return %c0_i32, %c0_i32_0 : i32, i32
  }
  func.func @transform_22(%arg0: i32) -> (i32, i32) {
    %c0_i32 = arith.constant 0 : i32
    %c0_i32_0 = arith.constant 0 : i32
    %c0_i32_1 = arith.constant 0 : i32
    return %c0_i32, %c0_i32_0 : i32, i32
  }
  func.func @transform_23(%arg0: i32) -> (i32, i32) {
    %c0_i32 = arith.constant 0 : i32
    %c0_i32_0 = arith.constant 0 : i32
    %c0_i32_1 = arith.constant 0 : i32
    return %c0_i32, %c0_i32_0 : i32, i32
  }
  func.func @transform_24(%arg0: i32) -> (i32, i32) {
    %c0_i32 = arith.constant 0 : i32
    %c0_i32_0 = arith.constant 0 : i32
    %c0_i32_1 = arith.constant 0 : i32
    return %c0_i32, %c0_i32_0 : i32, i32
  }
  func.func @transform_25(%arg0: i32) -> (i32, i32) {
    %c0_i32 = arith.constant 0 : i32
    %c0_i32_0 = arith.constant 0 : i32
    return %arg0, %c0_i32 : i32, i32
  }
}

</mosaic_0001>

<bundles_post_ra>
// kernel: tpu_custom_call.1
= control target key start
LH: loop header
LB: loop body
LE: loop exit
PB: predicated region body
PF: predicated region fallthrough
CT: control target
= control target key end

     0   :  { %s4227_s0 = inlined_call_operand.vmem [shape: f32[8,8,4], index: 0, kind: input, shape index: {}]   ;;  %s4228_s1 = inlined_call_operand.vmem [shape: f32[8,8], index: 1, kind: input, shape index: {}]   ;;  %s4229_s2 = inlined_call_operand.vmem [shape: bf16[4,128], index: 2, kind: input, shape index: {}]   ;;  %s4230_s3 = inlined_call_operand.vmem [shape: bf16[4,128], index: 3, kind: input, shape index: {}]   ;;  %s4231_s4 = inlined_call_operand.vmem [shape: bf16[4,128], index: 4, kind: input, shape index: {}]   ;;  %s4232_s5 = inlined_call_operand.vmem [shape: bf16[8,128], index: 5, kind: input, shape index: {}]   ;;  %s4233_s6 = inlined_call_operand.vmem [shape: f32[1,128], index: 6, kind: input, shape index: {}]   ;;  %s4234_s7 = inlined_call_operand.vmem [shape: bf16[128,4], index: 7, kind: input, shape index: {}]   ;;  %s4235_s8 = inlined_call_operand.vmem [shape: f32[1,4], index: 8, kind: input, shape index: {}]   ;;  %s4236_s9 = inlined_call_operand.vmem [shape: bf16[8,128], index: 9, kind: input, shape index: {}]   ;;  %s4237_s10 = inlined_call_operand.vmem [shape: f32[1,128], index: 10, kind: input, shape index: {}]   ;;  %s4238_s11 = inlined_call_operand.vmem [shape: bf16[8,128], index: 11, kind: input, shape index: {}]   ;;  %s4239_s12 = inlined_call_operand.vmem [shape: f32[1,128], index: 12, kind: input, shape index: {}]   ;;  %s4240_s13 = inlined_call_operand.hbm [shape: bf16[128,512], index: 13, kind: input, shape index: {}]   ;;  %s4241_s14 = inlined_call_operand.hbm [shape: bf16[128,512], index: 14, kind: input, shape index: {}]   ;;  %s4242_s15 = inlined_call_operand.vmem [shape: f32[1,512], index: 15, kind: input, shape index: {}]   ;;  %s4243_s16 = inlined_call_operand.vmem [shape: f32[1,128], index: 16, kind: input, shape index: {}]   ;;  %s4244_s17 = inlined_call_operand.vmem [shape: f32[1,128], index: 17, kind: input, shape index: {}]   ;;  %s4245_s18 = inlined_call_operand.vmem [shape: bf16[128,128], index: 18, kind: input, shape index: {}]   ;;  %s4246_s19 = inlined_call_operand.vmem [shape: bf16[8,128], index: 19, kind: input, shape index: {}]   ;;  %s4247_s20 = inlined_call_operand.vmem [shape: f32[1,128], index: 20, kind: input, shape index: {}]   ;;  %s4248_s21 = inlined_call_operand.vmem [shape: bf16[128,128], index: 21, kind: input, shape index: {}]   ;;  %s4249_s22 = inlined_call_operand.vmem [shape: f32[1,128], index: 22, kind: input, shape index: {}]   ;;  %s4250_s23 = inlined_call_operand.vmem [shape: f32[1,128], index: 23, kind: input, shape index: {}]   ;;  %s4251_s24 = inlined_call_operand.vmem [shape: f32[1,128], index: 24, kind: input, shape index: {}]   ;;  %s4252_s25 = inlined_call_operand.hbm [shape: f32[8,128], index: 25, kind: output, shape index: {}]  }
   0x1   :  { %4262 = sst [smem:[#allocation34_spill]] %s4227_s0 }
   0x2   :  { %4263 = sst [smem:[#allocation35_spill]] %s4228_s1 }
   0x3   :  { %4264 = sst [smem:[#allocation36_spill]] %s4229_s2 }
   0x4   :  { %4265 = sst [smem:[#allocation37_spill]] %s4230_s3 }
   0x5   :  { %4266 = sst [smem:[#allocation38_spill]] %s4231_s4 }
   0x6   :  { %4267 = sst [smem:[#allocation39_spill]] %s4232_s5 }
   0x7   :  { %4268 = sst [smem:[#allocation40_spill]] %s4233_s6 }
   0x8   :  { %4269 = sst [smem:[#allocation41_spill]] %s4234_s7 }
   0x9   :  { %4270 = sst [smem:[#allocation42_spill]] %s4235_s8 }
   0xa   :  { %4271 = sst [smem:[#allocation43_spill]] %s4236_s9 }
   0xb   :  { %30 = vsyncpa [#allocation3], 0 }
   0xc   :  { %31 = vsyncpa [#allocation6], 0 }
   0xd   :  { %32 = vsyncpa [#allocation4], 0  ;;  %s3258_s29 = smov [#allocation2]   ;;  %s3186_s7 = scalar_lea.hbm %s4240_s13, 4096 }
   0xe   :  { %s64_s2 = sshll.u32 %s3258_s29, 4  ;;  %p3187_p0 = scmp.ne.s32.totalorder %s4240_s13, %s3186_s7  ;;  %s65_s2 = int_to_ptr.vmem [resolvable:$true] %s64_s2 }
   0xf   :  { %p3190_p1 = scmp.lt.u32.totalorder %s3186_s7, %s4240_s13 }
  0x11   :  { %p3192_p2 = pnand %p3190_p1, %p3187_p0 }
  0x13   :  { %3195 = shalt.err (!%p3192_p2)
}
  0x14   :  { %s3196_s27 = scalar_lea.vmem %s65_s2, 4096  ;;  %p3201_p4 = scmp.lt.s32.totalorder %s65_s2, %s65_s2 }
  0x15   :  { %p3197_p3 = scmp.ne.s32.totalorder %s65_s2, %s3196_s27  ;;  %p3202_p5 = scmp.lt.s32.totalorder %s3196_s27, %s3196_s27 }
  0x17   :  { %p3203_p6 = por %p3202_p5, %p3201_p4 }
  0x19   :  { %p3204_p7 = pnand %p3203_p6, %p3197_p3 }
  0x1b   :  { %3207 = shalt.err (!%p3204_p7)
}
  0x1c   :  { %s3259_s4 = smov 256   ;;  %s3260_s28 = smov 16  }
  0x1d   :  { %70 = dma.hbm_to_vmem [thread:$0]  %s4240_s13, 4096, %s65_s2, [#allocation3], %s3259_s4, %s3259_s4, %s3260_s28  }
  0x1e   :  { %s3261_s0 = smov [#allocation5]   ;;  %s3208_s7 = scalar_lea.hbm %s4241_s14, 4096 }
  0x1f   :  { %s76_s29 = sshll.u32 %s3261_s0, 4  ;;  %p3209_p8 = scmp.ne.s32.totalorder %s4241_s14, %s3208_s7  ;;  %s77_s29 = int_to_ptr.vmem [resolvable:$true] %s76_s29 }
  0x20   :  { %p3212_p9 = scmp.lt.u32.totalorder %s3208_s7, %s4241_s14 }
  0x22   :  { %p3214_p10 = pnand %p3212_p9, %p3209_p8 }
  0x24   :  { %3217 = shalt.err (!%p3214_p10)
}
  0x25   :  { %s3218_s27 = scalar_lea.vmem %s77_s29, 4096  ;;  %p3223_p12 = scmp.lt.s32.totalorder %s77_s29, %s77_s29 }
  0x26   :  { %p3219_p11 = scmp.ne.s32.totalorder %s77_s29, %s3218_s27  ;;  %p3224_p13 = scmp.lt.s32.totalorder %s3218_s27, %s3218_s27 }
  0x28   :  { %p3225_p0 = por %p3224_p13, %p3223_p12 }
  0x2a   :  { %p3226_p1 = pnand %p3225_p0, %p3219_p11 }
  0x2c   :  { %3229 = shalt.err (!%p3226_p1)
}
  0x2d   :  { %82 = dma.hbm_to_vmem [thread:$0]  %s4241_s14, 4096, %s77_s29, [#allocation6], %s3259_s4, %s3259_s4, %s3260_s28  }
  0x2e   :  { %3252 = dma.done.wait [#allocation3], 4096  }
  0x2f   :  { %3253 = vsyncadd [#allocation3], 4294963200 }
  0x30   :  { %3254 = dma.done.wait [#allocation6], 4096  }
  0x31   :  { %3255 = vsyncadd [#allocation6], 4294963200  ;;  %v4256_v0 = vmov 0.0   ;;  %vm3263_vm0 = vmmov 0   ;;  %vm192_vm1 = vcmask 1041408   ;;  %vm134_vm2 = vcmask 1043456  }
  0x32   :  { %2763 = vmatprep.subr.bf16.mxu0 %v4256_v0  ;;  %2765 = vmatprep.mubr.msk.bf16.mxu0 %vm3263_vm0, %v4256_v0  ;;  %s4272_s0 = sld [smem:[#allocation38_spill]]  ;;  %s4273_s14 = sld [smem:[#allocation39_spill]]  ;;  %vm179_vm3 = vcmask 31744   ;;  %vm130_vm4 = vcmask 64512  }
  0x33   :  { %s4274_s29 = sld [smem:[#allocation34_spill]]  ;;  %s4275_s8 = sld [smem:[#allocation35_spill]] }
  0x34   :  { %s4277_s1 = sld [smem:[#allocation41_spill]]  ;;  %s4279_s27 = sld [smem:[#allocation42_spill]] }
  0x35   :  { %s4280_s9 = sld [smem:[#allocation37_spill]]  ;;  %s4281_s6 = sld [smem:[#allocation36_spill]] }
  0x36   :  { %s4282_s4 = sld [smem:[#allocation43_spill]] }
  0x38   :  { %v178_v1 = vld [vmem:[%s4272_s0] sm:$0x3] }
  0x39   :  { %v129_v2 = vld [vmem:[%s4273_s14] sm:$0xf]  ;;  %2889 = vmatprep.subr.msk.bf16.mxu1 %vm192_vm1, %v178_v1  ;;  %v194_v5 = vsel %vm192_vm1, %v178_v1, 0  ;;  %v3440_v6 = vld [vmem:[%s4274_s29 + $0x8] sm:$0xff]  ;;  %v3448_v8 = vld [vmem:[%s4274_s29 + $0x10] sm:$0xff] }
  0x3a   :  { %v3432_v3 = vld [vmem:[%s4274_s29] sm:$0xff]  ;;  %v136_v4 = vsel %vm134_vm2, %v129_v2, 0  ;;  %2770 = vmatpush3.bf16.msra.mxu1 %v194_v5  ;;  %v3457_v11 = vld [vmem:[%s4274_s29 + $0x18] sm:$0xff]  ;;  %v3467_v13 = vld [vmem:[%s4274_s29 + $0x28] sm:$0xff] }
  0x3b   :  { %v122_v7 = vld [vmem:[%s4275_s8] sm:$0xff]  ;;  %2764 = vmatpush3.bf16.msra.mxu0 %v136_v4  ;;  %v118_v9 = vpack.c.bf16 %v3440_v6, %v3432_v3  ;;  %v119_v14 = vpack.c.bf16 %v3457_v11, %v3448_v8  ;;  %v3477_v16 = vld [vmem:[%s4274_s29 + $0x30] sm:$0xff]  ;;  %v3482_v17 = vld [vmem:[%s4274_s29 + $0x38] sm:$0xff] }
  0x3c   :  { %v3452_v10 = vpack.c.bf16 %v122_v7, %v122_v7  ;;  %v3462_v12 = vld [vmem:[%s4274_s29 + $0x20] sm:$0xff]  ;;  %v121_v19 = vpack.c.bf16 %v3482_v17, %v3477_v16  ;;  %v2901_v20 = vld [vmem:[%s4277_s1 + $0x8] sm:$0xff]   ;;  %v2902_v21 = vld [vmem:[%s4277_s1 + $0x10] sm:$0xff]   ;;  %s4278_s29 = sld [smem:[#allocation40_spill]] }
  0x3d   :  { %v120_v15 = vpack.c.bf16 %v3467_v13, %v3462_v12  ;;  %2771 = vmatprep.mubr.msk.bf16.mxu1 %vm179_vm3, %v118_v9  ;;  %v2900_v18 = vld [vmem:[%s4277_s1] sm:$0xff]   ;;  %v2903_v22 = vld [vmem:[%s4277_s1 + $0x18] sm:$0xff]   ;;  %v2905_v24 = vld [vmem:[%s4277_s1 + $0x28] sm:$0xff]  }
  0x3e   :  { %4276 = vst [vmem:[#allocation11_spill] sm:$0xff] %v3452_v10  ;;  %2766 = vmatmul.mubr.msk.bf16.vlgmr.msra.gmra.mrb[0].mxu0 %vm130_vm4, %v3452_v10  ;;  %2772 = vmatmul.mubr.msk.bf16.vlgmr.msra.gmra.mrb[0].mxu1 %vm179_vm3, %v119_v14  ;;  %v2904_v23 = vld [vmem:[%s4277_s1 + $0x20] sm:$0xff]   ;;  %v2906_v25 = vld [vmem:[%s4277_s1 + $0x30] sm:$0xff]   ;;  %v2907_v26 = vld [vmem:[%s4277_s1 + $0x38] sm:$0xff]  }
  0x3f   :  { %2775 = vmatprep.mubr.msk.bf16.mxu1 %vm179_vm3, %v120_v15  ;;  %2779 = vmatprep.subr.bf16.mxu0 %v2900_v18 }
  0x40   :  { %2780 = vmatpush3.bf16.msra.mxu0 %v2900_v18 }
  0x41   :  { %2781 = vmatprep.subr.bf16.mxu0 %v2901_v20 }
  0x42   :  { %v2592_v29 = vld [vmem:[%s4278_s29] ss:$0 sm:$0xff] }
  0x44   :  { %2782 = vmatpush3.bf16.msra.mxu0 %v2901_v20 }
  0x45   :  { %2783 = vmatprep.subr.bf16.mxu0 %v2902_v21 }
  0x46   :  { %2776 = vmatmul.mubr.msk.bf16.gmra.mrb[4].mxu1 %vm179_vm3, %v121_v19 }
  0x48   :  { %2784 = vmatpush3.bf16.msra.mxu0 %v2902_v21 }
  0x49   :  { %2785 = vmatprep.subr.bf16.mxu0 %v2903_v22 }
  0x4c   :  { %2786 = vmatpush3.bf16.msra.mxu0 %v2903_v22 }
  0x4d   :  { %2787 = vmatprep.subr.bf16.mxu0 %v2904_v23 }
  0x50   :  { %2788 = vmatpush3.bf16.msra.mxu0 %v2904_v23 }
  0x51   :  { %2789 = vmatprep.subr.bf16.mxu0 %v2905_v24 }
  0x54   :  { %2790 = vmatpush3.bf16.msra.mxu0 %v2905_v24 }
  0x55   :  { %2791 = vmatprep.subr.bf16.mxu0 %v2906_v25 }
  0x58   :  { %2792 = vmatpush3.bf16.msra.mxu0 %v2906_v25 }
  0x59   :  { %2793 = vmatprep.subr.bf16.mxu0 %v2907_v26 }
  0x5c   :  { %2794 = vmatpush3.bf16.msra.mxu0 %v2907_v26 }
 0x111   :  { %v172_v27 = vpop.f32.mrb[0].mxu0  ;;  %v2773_v28 = vpop.f32.mrb[0].mxu1 }
 0x112   :  { %v263_v30 = vadd.f32 %v2773_v28, %v172_v27  ;;  %v2767_v31 = vpop.f32.mrb[1].mxu0  ;;  %v230_v32 = vpop.f32.mrb[1].mxu1 }
 0x113   :  { %v261_v33 = vadd.f32 %v230_v32, %v172_v27  ;;  %v175_v34 = vpop.f32.mrb[2].mxu0  ;;  %v2774_v35 = vpop.f32.mrb[2].mxu1 }
 0x114   :  { %v278_v36 = vadd.f32 %v2592_v29, %v263_v30  ;;  %v264_v37 = vadd.f32 %v2774_v35, %v172_v27  ;;  %v2768_v38 = vpop.f32.mrb[3].mxu0  ;;  %v233_v39 = vpop.f32.mrb[3].mxu1 }
 0x115   :  { %v276_v40 = vadd.f32 %v2592_v29, %v261_v33  ;;  %v262_v41 = vadd.f32 %v233_v39, %v172_v27 }
 0x116   :  { %v294_v42 = vmin.f32 %v278_v36, 0.0  ;;  %v279_v43 = vadd.f32 %v2592_v29, %v264_v37  ;;  %vm286_vm5 = vcmp.gt.f32.partialorder %v278_v36, 0.0 }
 0x117   :  { %v292_v44 = vmin.f32 %v276_v40, 0.0  ;;  %v277_v45 = vadd.f32 %v2592_v29, %v262_v41  ;;  %vm284_vm7 = vcmp.gt.f32.partialorder %v276_v40, 0.0 }
 0x118   :  { %v304_v46 = vmul.f32 1.442695, %v294_v42  ;;  %v295_v47 = vmin.f32 %v279_v43, 0.0  ;;  %vm287_vm6 = vcmp.gt.f32.partialorder %v279_v43, 0.0 }
 0x119   :  { %v300_v48 = vmul.f32 1.442695, %v292_v44  ;;  %v293_v49 = vmin.f32 %v277_v45, 0.0  ;;  %v2777_v50 = vpop.f32.mrb[4].mxu1  ;;  %vm285_vm8 = vcmp.gt.f32.partialorder %v277_v45, 0.0 }
 0x11a   :  { %3020 = vpow2.f32 %v304_v46  ;;  %v306_v51 = vmul.f32 1.442695, %v295_v47  ;;  %v267_v52 = vadd.f32 %v2777_v50, %v172_v27  ;;  %v246_v53 = vpop.f32.mrb[5].mxu1  ;;  %v2601_v46 = vld [vmem:[%s4279_s27] ss:$0 sm:$0xff] }
 0x11b   :  { %3022 = vpow2.f32 %v300_v48  ;;  %v302_v54 = vmul.f32 1.442695, %v293_v49  ;;  %v265_v55 = vadd.f32 %v246_v53, %v172_v27  ;;  %v2778_v56 = vpop.f32.mrb[6].mxu1 }
 0x11c   :  { %3024 = vpow2.f32 %v306_v51  ;;  %v282_v57 = vadd.f32 %v2592_v29, %v267_v52  ;;  %v268_v58 = vadd.f32 %v2778_v56, %v172_v27  ;;  %v249_v59 = vpop.f32.mrb[7].mxu1 }
 0x11d   :  { %3026 = vpow2.f32 %v302_v54  ;;  %v280_v60 = vadd.f32 %v2592_v29, %v265_v55  ;;  %v266_v61 = vadd.f32 %v249_v59, %v172_v27 }
 0x11e   :  { %v298_v62 = vmin.f32 %v282_v57, 0.0  ;;  %v283_v63 = vadd.f32 %v2592_v29, %v268_v58  ;;  %vm290_vm9 = vcmp.gt.f32.partialorder %v282_v57, 0.0 }
 0x11f   :  { %v296_v1 = vmin.f32 %v280_v60, 0.0  ;;  %v281_v2 = vadd.f32 %v2592_v29, %v266_v61  ;;  %vm288_vm11 = vcmp.gt.f32.partialorder %v280_v60, 0.0 }
 0x120   :  { %v312_v4 = vmul.f32 1.442695, %v298_v62  ;;  %v299_v5 = vmin.f32 %v283_v63, 0.0  ;;  %vm291_vm10 = vcmp.gt.f32.partialorder %v283_v63, 0.0 }
 0x121   :  { %v308_v7 = vmul.f32 1.442695, %v296_v1  ;;  %v297_v9 = vmin.f32 %v281_v2, 0.0  ;;  %vm289_vm12 = vcmp.gt.f32.partialorder %v281_v2, 0.0 }
 0x122   :  { %3028 = vpow2.f32 %v312_v4  ;;  %v314_v14 = vmul.f32 1.442695, %v299_v5 }
 0x123   :  { %3030 = vpow2.f32 %v308_v7  ;;  %v310_v15 = vmul.f32 1.442695, %v297_v9 }
 0x124   :  { %v3021_v18 = vpop.eup %3020  ;;  %3032 = vpow2.f32 %v314_v14 }
 0x125   :  { %v3023_v19 = vpop.eup %3022  ;;  %v2595_v20 = vadd.f32 -1.0, %v3021_v18  ;;  %3034 = vpow2.f32 %v310_v15 }
 0x126   :  { %v3025_v21 = vpop.eup %3024  ;;  %v2593_v22 = vadd.f32 -1.0, %v3023_v19 }
 0x127   :  { %v3027_v23 = vpop.eup %3026  ;;  %v2596_v24 = vadd.f32 -1.0, %v3025_v21  ;;  %v326_v26 = vsel %vm286_vm5, %v278_v36, %v2595_v20 }
 0x128   :  { %v2594_v25 = vadd.f32 -1.0, %v3027_v23  ;;  %v324_v28 = vsel %vm284_vm7, %v276_v40, %v2593_v22 }
 0x129   :  { %v327_v27 = vsel %vm287_vm6, %v279_v43, %v2596_v24 }
 0x12a   :  { %v325_v29 = vsel %vm285_vm8, %v277_v45, %v2594_v25  ;;  %v333_v30 = vpack.c.bf16 %v327_v27, %v326_v26 }
 0x12b   :  { %v332_v31 = vpack.c.bf16 %v325_v29, %v324_v28 }
 0x12c   :  { %v3029_v32 = vpop.eup %3028 }
 0x12d   :  { %v3031_v33 = vpop.eup %3030  ;;  %2795 = vmatprep.mubr.bf16.mxu0 %v332_v31  ;;  %v2599_v34 = vadd.f32 -1.0, %v3029_v32 }
 0x12e   :  { %v3033_v35 = vpop.eup %3032  ;;  %2796 = vmatmul.mubr.bf16.vlgmr.msra.gmra.mrb[4].mxu0 %v333_v30  ;;  %v2597_v37 = vadd.f32 -1.0, %v3031_v33 }
 0x12f   :  { %v3035_v38 = vpop.eup %3034  ;;  %v2600_v39 = vadd.f32 -1.0, %v3033_v35  ;;  %v330_v36 = vsel %vm290_vm9, %v282_v57, %v2599_v34 }
 0x130   :  { %v2598_v41 = vadd.f32 -1.0, %v3035_v38  ;;  %v328_v40 = vsel %vm288_vm11, %v280_v60, %v2597_v37 }
 0x131   :  { %v331_v42 = vsel %vm291_vm10, %v283_v63, %v2600_v39 }
 0x132   :  { %v329_v43 = vsel %vm289_vm12, %v281_v2, %v2598_v41  ;;  %v335_v44 = vpack.c.bf16 %v331_v42, %v330_v36 }
 0x133   :  { %v334_v45 = vpack.c.bf16 %v329_v43, %v328_v40 }
 0x135   :  { %2799 = vmatprep.mubr.bf16.mxu0 %v334_v45 }
 0x136   :  { %2800 = vmatmul.mubr.bf16.gmra.mrb[8].mxu0 %v335_v44 }
 0x201   :  { %v2797_v47 = vpop.f32.mrb[4].mxu0 }
 0x202   :  { %v450_v48 = vadd.f32 %v2797_v47, %v2601_v46  ;;  %v441_v49 = vpop.f32.mrb[5].mxu0 }
 0x203   :  { %v442_v50 = vadd.f32 %v2601_v46, %v441_v49  ;;  %v2798_v51 = vpop.f32.mrb[6].mxu0 }
 0x204   :  { %v453_v52 = vadd.f32 %v2798_v51, %v2601_v46  ;;  %v444_v53 = vpop.f32.mrb[7].mxu0  ;;  %v478_v54 = vsel %vm179_vm3, %v450_v48, -inf }
 0x205   :  { %v445_v55 = vadd.f32 %v2601_v46, %v444_v53  ;;  %479 = vmax.xlane.f32.xlu1 %v478_v54  ;;  %v472_v56 = vsel %vm179_vm3, %v442_v50, -inf }
 0x206   :  { %473 = vmax.xlane.f32.xlu0 %v472_v56  ;;  %v481_v57 = vsel %vm179_vm3, %v453_v52, -inf }
 0x207   :  { %v475_v59 = vsel %vm179_vm3, %v445_v55, -inf }
 0x209   :  { %482 = vmax.xlane.f32.xlu1 %v481_v57  ;;  %v2801_v58 = vpop.f32.mrb[8].mxu0  ;;  %v577_v57 = vld [vmem:[%s4280_s9] sm:$0x3] }
 0x20a   :  { %476 = vmax.xlane.f32.xlu0 %v475_v59  ;;  %v457_v60 = vpop.f32.mrb[9].mxu0  ;;  %v466_v1 = vadd.f32 %v2801_v58, %v2601_v46  ;;  %2890 = vmatprep.subr.msk.bf16.mxu1 %vm192_vm1, %v577_v57  ;;  %v591_v58 = vsel %vm192_vm1, %v577_v57, 0  ;;  %v572_v59 = vld [vmem:[%s4281_s6] sm:$0x3] }
 0x20b   :  { %v458_v61 = vadd.f32 %v2601_v46, %v457_v60  ;;  %v2802_v62 = vpop.f32.mrb[10].mxu0  ;;  %2804 = vmatpush3.bf16.msra.mxu1 %v591_v58  ;;  %v2908_v60 = vld [vmem:[#allocation2] ss:$16 sps:$4 sm:$0xff]   ;;  %v2911_v58 = vld [vmem:[#allocation2 + $0x8] ss:$16 sps:$4 sm:$0xff]  }
 0x20c   :  { %v460_v63 = vpop.f32.mrb[11].mxu0  ;;  %v469_v5 = vadd.f32 %v2802_v62, %v2601_v46  ;;  %v490_v9 = vsel %vm179_vm3, %v466_v1, -inf  ;;  %2891 = vmatprep.subr.msk.bf16.mxu1 %vm192_vm1, %v572_v59  ;;  %v2916_v62 = vld [vmem:[#allocation2 + $0x24] ss:$16 sps:$4 sm:$0xff]  }
 0x20d   :  { %v461_v2 = vadd.f32 %v2601_v46, %v460_v63  ;;  %v484_v4 = vsel %vm179_vm3, %v458_v61, -inf  ;;  %v2914_v63 = vld [vmem:[#allocation2 + $0x20] ss:$16 sps:$4 sm:$0xff]  }
 0x20e   :  { %485 = vmax.xlane.f32.xlu0 %v484_v4  ;;  %v493_v14 = vsel %vm179_vm3, %v469_v5, -inf  ;;  %v2928_v4 = vld [vmem:[#allocation2 + $0x64] ss:$16 sps:$4 sm:$0xff]  }
 0x20f   :  { %v487_v7 = vsel %vm179_vm3, %v461_v2, -inf }
 0x210   :  { %488 = vmax.xlane.f32.xlu1 %v487_v7  ;;  %v2934_v7 = vld [vmem:[#allocation2 + $0x84] ss:$16 sps:$4 sm:$0xff]  }
 0x212   :  { %491 = vmax.xlane.f32.xlu0 %v490_v9  ;;  %v2932_v9 = vld [vmem:[#allocation2 + $0x80] ss:$16 sps:$4 sm:$0xff]  }
 0x214   :  { %494 = vmax.xlane.f32.xlu1 %v493_v14  ;;  %v2940_v14 = vld [vmem:[#allocation2 + $0xa4] ss:$16 sps:$4 sm:$0xff]  }
 0x292   :  { %v480_v15 = vpop.xlane.xlu1 %479 }
 0x293   :  { %v498_v18 = vsub.f32 %v450_v48, %v480_v15  ;;  %v474_v19 = vpop.xlane.xlu0 %473  ;;  %v2938_v15 = vld [vmem:[#allocation2 + $0xa0] ss:$16 sps:$4 sm:$0xff]  }
 0x294   :  { %v496_v20 = vsub.f32 %v442_v50, %v474_v19  ;;  %v2944_v19 = vld [vmem:[#allocation2 + $0xc0] ss:$16 sps:$4 sm:$0xff]  }
 0x295   :  { %v508_v21 = vmul.f32 1.442695, %v498_v18  ;;  %v2946_v18 = vld [vmem:[#allocation2 + $0xc4] ss:$16 sps:$4 sm:$0xff]  }
 0x296   :  { %v504_v22 = vmul.f32 1.442695, %v496_v20  ;;  %v483_v23 = vpop.xlane.xlu1 %482 }
 0x297   :  { %v499_v24 = vsub.f32 %v453_v52, %v483_v23  ;;  %v477_v25 = vpop.xlane.xlu0 %476 }
 0x298   :  { %3036 = vpow2.f32 %v504_v22  ;;  %v497_v26 = vsub.f32 %v445_v55, %v477_v25 }
 0x299   :  { %3038 = vpow2.f32 %v508_v21  ;;  %v510_v27 = vmul.f32 1.442695, %v499_v24 }
 0x29a   :  { %v506_v28 = vmul.f32 1.442695, %v497_v26 }
 0x29b   :  { %v486_v29 = vpop.xlane.xlu0 %485 }
 0x29c   :  { %3040 = vpow2.f32 %v506_v28  ;;  %v500_v30 = vsub.f32 %v458_v61, %v486_v29  ;;  %v2910_v61 = vld [vmem:[#allocation2 + $0x4] ss:$16 sps:$4 sm:$0xff]  }
 0x29d   :  { %v489_v31 = vpop.xlane.xlu1 %488  ;;  %3042 = vpow2.f32 %v510_v27  ;;  %956 = vmatprep.subr.bf16.mxu0 %v2910_v61 }
 0x29e   :  { %v512_v32 = vmul.f32 1.442695, %v500_v30  ;;  %v501_v33 = vsub.f32 %v461_v2, %v489_v31  ;;  %957 = vmatpush1.bf16.msra.mxu0 %v2908_v60  ;;  %v2920_v2 = vld [vmem:[#allocation2 + $0x40] ss:$16 sps:$4 sm:$0xff]  }
 0x29f   :  { %v492_v34 = vpop.xlane.xlu0 %491  ;;  %958 = vmatprep.subr.bf16.mxu0 %v2916_v62  ;;  %v2929_v62 = vld [vmem:[#allocation2 + $0x68] ss:$16 sps:$4 sm:$0xff]  }
 0x2a0   :  { %3044 = vpow2.f32 %v512_v32  ;;  %v514_v35 = vmul.f32 1.442695, %v501_v33  ;;  %v502_v37 = vsub.f32 %v466_v1, %v492_v34  ;;  %v2922_v1 = vld [vmem:[#allocation2 + $0x44] ss:$16 sps:$4 sm:$0xff]  }
 0x2a1   :  { %v495_v38 = vpop.xlane.xlu1 %494 }
 0x2a2   :  { %v3529_v39 = vpop.eup %3036  ;;  %3046 = vpow2.f32 %v514_v35  ;;  %v516_v41 = vmul.f32 1.442695, %v502_v37  ;;  %v503_v36 = vsub.f32 %v469_v5, %v495_v38  ;;  %959 = vmatpush1.bf16.msra.mxu0 %v2914_v63  ;;  %v2926_v5 = vld [vmem:[#allocation2 + $0x60] ss:$16 sps:$4 sm:$0xff]   ;;  %v2937_v63 = vld [vmem:[#allocation2 + $0x8c] ss:$16 sps:$4 sm:$0xff]  }
 0x2a3   :  { %v520_v42 = vsel %vm179_vm3, %v3529_v39, 0.0  ;;  %v3533_v40 = vpop.eup %3038  ;;  %960 = vmatprep.subr.bf16.mxu0 %v2922_v1  ;;  %v2935_v1 = vld [vmem:[#allocation2 + $0x88] ss:$16 sps:$4 sm:$0xff]  }
 0x2a4   :  { %3048 = vpow2.f32 %v516_v41  ;;  %v518_v43 = vmul.f32 1.442695, %v503_v36  ;;  %521 = vadd.xlane.f32.xlu0 %v520_v42  ;;  %v526_v46 = vsel %vm179_vm3, %v3533_v40, 0.0  ;;  %v671_v36 = vsel %vm192_vm1, %v572_v59, 0  ;;  %v2913_v42 = vld [vmem:[#allocation2 + $0xc] ss:$16 sps:$4 sm:$0xff]  }
 0x2a5   :  { %v2919_v59 = vld [vmem:[#allocation2 + $0x2c] ss:$16 sps:$4 sm:$0xff]  }
 0x2a6   :  { %v3535_v44 = vpop.eup %3040  ;;  %3050 = vpow2.f32 %v518_v43  ;;  %961 = vmatpush1.bf16.msra.mxu0 %v2920_v2  ;;  %v2943_v2 = vld [vmem:[#allocation2 + $0xac] ss:$16 sps:$4 sm:$0xff]  }
 0x2a7   :  { %v523_v45 = vsel %vm179_vm3, %v3535_v44, 0.0  ;;  %v3541_v47 = vpop.eup %3042  ;;  %962 = vmatprep.subr.bf16.mxu0 %v2928_v4  ;;  %v2949_v4 = vld [vmem:[#allocation2 + $0xcc] ss:$16 sps:$4 sm:$0xff]  }
 0x2a8   :  { %524 = vadd.xlane.f32.xlu1 %v523_v45  ;;  %527 = vadd.xlane.f32.xlu0 %v526_v46  ;;  %v529_v49 = vsel %vm179_vm3, %v3541_v47, 0.0 }
 0x2aa   :  { %v3543_v48 = vpop.eup %3044  ;;  %963 = vmatpush1.bf16.msra.mxu0 %v2926_v5  ;;  %v2950_v5 = vld [vmem:[#allocation2 + $0xe0] ss:$16 sps:$4 sm:$0xff]  }
 0x2ab   :  { %v532_v50 = vsel %vm179_vm3, %v3543_v48, 0.0  ;;  %964 = vmatprep.subr.bf16.mxu0 %v2934_v7  ;;  %v2952_v7 = vld [vmem:[#allocation2 + $0xe4] ss:$16 sps:$4 sm:$0xff]  }
 0x2ac   :  { %v3549_v51 = vpop.eup %3046  ;;  %530 = vadd.xlane.f32.xlu1 %v529_v49  ;;  %533 = vadd.xlane.f32.xlu0 %v532_v50 }
 0x2ad   :  { %v535_v53 = vsel %vm179_vm3, %v3549_v51, 0.0 }
 0x2ae   :  { %v3551_v52 = vpop.eup %3048  ;;  %965 = vmatpush1.bf16.msra.mxu0 %v2932_v9  ;;  %v2955_v9 = vld [vmem:[#allocation2 + $0xec] ss:$16 sps:$4 sm:$0xff]  }
 0x2af   :  { %v538_v54 = vsel %vm179_vm3, %v3551_v52, 0.0  ;;  %966 = vmatprep.subr.bf16.mxu0 %v2940_v14  ;;  %v2953_v14 = vld [vmem:[#allocation2 + $0xe8] ss:$16 sps:$4 sm:$0xff]  }
 0x2b0   :  { %v3557_v55 = vpop.eup %3050  ;;  %536 = vadd.xlane.f32.xlu1 %v535_v53  ;;  %539 = vadd.xlane.f32.xlu0 %v538_v54 }
 0x2b1   :  { %v541_v56 = vsel %vm179_vm3, %v3557_v55, 0.0 }
 0x2b2   :  { %967 = vmatpush1.bf16.msra.mxu0 %v2938_v15  ;;  %v4258_v15 = vmov 0  }
 0x2b3   :  { %968 = vmatprep.subr.bf16.mxu0 %v2946_v18  ;;  %988 = vmatprep.mubr.bf16.mxu0 %v4258_v15 }
 0x2b4   :  { %542 = vadd.xlane.f32.xlu1 %v541_v56 }
 0x2b6   :  { %969 = vmatpush1.bf16.msra.mxu0 %v2944_v19 }
 0x2b7   :  { %970 = vmatprep.subr.bf16.mxu0 %v2952_v7 }
 0x2ba   :  { %971 = vmatpush1.bf16.msra.mxu0 %v2950_v5 }
 0x2bb   :  { %2823 = vmatprep.subr.bf16.mxu0 %v4256_v0 }
 0x331   :  { %v522_v20 = vpop.xlane.xlu0 %521 }
 0x332   :  { %3052 = vrcp.f32 %v522_v20  ;;  %v1102_v20 = vld [vmem:[%s4282_s4] sm:$0xf] }
 0x335   :  { %v525_v21 = vpop.xlane.xlu1 %524  ;;  %v528_v22 = vpop.xlane.xlu0 %527 }
 0x336   :  { %3054 = vrcp.f32 %v525_v21 }
 0x337   :  { %3056 = vrcp.f32 %v528_v22  ;;  %v1153_v22 = vld [vmem:[%s4238_s11] sm:$0xf] }
 0x339   :  { %v531_v23 = vpop.xlane.xlu1 %530  ;;  %v534_v24 = vpop.xlane.xlu0 %533 }
 0x33a   :  { %3058 = vrcp.f32 %v531_v23 }
 0x33b   :  { %3060 = vrcp.f32 %v534_v24 }
 0x33c   :  { %v3053_v27 = vpop.eup %3052 }
 0x33d   :  { %v537_v25 = vpop.xlane.xlu1 %536  ;;  %v540_v26 = vpop.xlane.xlu0 %539  ;;  %v545_v30 = vmul.f32 %v3053_v27, %v3529_v39  ;;  %v1162_v27 = vsel %vm134_vm2, %v1153_v22, 0 }
 0x33e   :  { %3062 = vrcp.f32 %v537_v25 }
 0x33f   :  { %3064 = vrcp.f32 %v540_v26  ;;  %v560_v53 = vmul.f32 %v545_v30, %v3432_v3  ;;  %v2917_v3 = vld [vmem:[#allocation2 + $0x28] ss:$16 sps:$4 sm:$0xff]   ;;  %v1111_v26 = vsel %vm134_vm2, %v1102_v20, 0 }
 0x340   :  { %v3055_v28 = vpop.eup %3054 }
 0x341   :  { %v543_v29 = vpop.xlane.xlu1 %542  ;;  %v547_v31 = vmul.f32 %v3055_v28, %v3535_v44  ;;  %v3057_v32 = vpop.eup %3056 }
 0x342   :  { %3066 = vrcp.f32 %v543_v29  ;;  %v549_v35 = vmul.f32 %v3057_v32, %v3533_v40 }
 0x343   :  { %v573_v33 = vpack.c.bf16 %v547_v31, %v545_v30 }
 0x344   :  { %v3059_v34 = vpop.eup %3058 }
 0x345   :  { %v551_v37 = vmul.f32 %v3059_v34, %v3541_v47  ;;  %2805 = vmatprep.mubr.msk.bf16.mxu1 %vm179_vm3, %v573_v33  ;;  %v3061_v38 = vpop.eup %3060  ;;  %v561_v47 = vmul.f32 %v547_v31, %v3440_v6  ;;  %v562_v6 = vmul.f32 %v549_v35, %v3448_v8  ;;  %v2923_v8 = vld [vmem:[#allocation2 + $0x48] ss:$16 sps:$4 sm:$0xff]   ;;  %v3626_v34 = vld [vmem:[#allocation5 + $0x4] ss:$16 sps:$4 sm:$0xff]  }
 0x346   :  { %v553_v39 = vmul.f32 %v3061_v38, %v3543_v48  ;;  %v3632_v38 = vld [vmem:[#allocation5 + $0x8] ss:$16 sps:$4 sm:$0xff]  }
 0x347   :  { %v574_v41 = vpack.c.bf16 %v551_v37, %v549_v35  ;;  %v568_v56 = vpack.c.bf16 %v561_v47, %v560_v53  ;;  %v563_v48 = vmul.f32 %v551_v37, %v3457_v11  ;;  %v2925_v11 = vld [vmem:[#allocation2 + $0x4c] ss:$16 sps:$4 sm:$0xff]   ;;  %v3630_v37 = vld [vmem:[#allocation5] ss:$16 sps:$4 sm:$0xff]   ;;  %v3674_v53 = vld [vmem:[#allocation5 + $0x84] ss:$16 sps:$4 sm:$0xff]  }
 0x348   :  { %v3063_v43 = vpop.eup %3062  ;;  %v564_v57 = vmul.f32 %v553_v39, %v3462_v12  ;;  %v2931_v12 = vld [vmem:[#allocation2 + $0x6c] ss:$16 sps:$4 sm:$0xff]  }
 0x349   :  { %2806 = vmatmul.mubr.msk.bf16.vlgmr.msra.gmra.mrb[8].mxu1 %vm179_vm3, %v574_v41  ;;  %v555_v44 = vmul.f32 %v3063_v43, %v3549_v51  ;;  %v3065_v45 = vpop.eup %3064  ;;  %v3628_v35 = vld [vmem:[#allocation5 + $0xc] ss:$16 sps:$4 sm:$0xff]   ;;  %v3638_v41 = vld [vmem:[#allocation5 + $0x24] ss:$16 sps:$4 sm:$0xff]   ;;  %v3644_v43 = vld [vmem:[#allocation5 + $0x28] ss:$16 sps:$4 sm:$0xff]  }
 0x34a   :  { %2814 = vmatpush3.bf16.msra.mxu1 %v671_v36  ;;  %v557_v49 = vmul.f32 %v3065_v45, %v3551_v52  ;;  %v569_v52 = vpack.c.bf16 %v563_v48, %v562_v6  ;;  %v3640_v36 = vld [vmem:[#allocation5 + $0x2c] ss:$16 sps:$4 sm:$0xff]   ;;  %v3654_v45 = vld [vmem:[#allocation5 + $0x40] ss:$16 sps:$4 sm:$0xff]   ;;  %v3680_v48 = vld [vmem:[#allocation5 + $0x88] ss:$16 sps:$4 sm:$0xff]  }
 0x34b   :  { %v575_v46 = vpack.c.bf16 %v555_v44, %v553_v39  ;;  %1029 = vmatprep.subr.bf16.mxu1 %v2913_v42  ;;  %v565_v51 = vmul.f32 %v555_v44, %v3467_v13  ;;  %v3642_v42 = vld [vmem:[#allocation5 + $0x20] ss:$16 sps:$4 sm:$0xff]   ;;  %v3650_v39 = vld [vmem:[#allocation5 + $0x44] ss:$16 sps:$4 sm:$0xff]   ;;  %v3652_v44 = vld [vmem:[#allocation5 + $0x4c] ss:$16 sps:$4 sm:$0xff]  }
 0x34c   :  { %v3067_v40 = vpop.eup %3066  ;;  %v566_v13 = vmul.f32 %v557_v49, %v3477_v16  ;;  %v2947_v16 = vld [vmem:[#allocation2 + $0xc8] ss:$16 sps:$4 sm:$0xff]   ;;  %v3664_v47 = vld [vmem:[#allocation5 + $0x6c] ss:$16 sps:$4 sm:$0xff]  }
 0x34d   :  { %2809 = vmatprep.mubr.msk.bf16.mxu1 %vm179_vm3, %v575_v46  ;;  %v559_v50 = vmul.f32 %v3067_v40, %v3557_v55  ;;  %v570_v55 = vpack.c.bf16 %v565_v51, %v564_v57  ;;  %v3656_v46 = vld [vmem:[#allocation5 + $0x48] ss:$16 sps:$4 sm:$0xff]   ;;  %v3662_v40 = vld [vmem:[#allocation5 + $0x64] ss:$16 sps:$4 sm:$0xff]   ;;  %v3688_v6 = vld [vmem:[#allocation5 + $0xac] ss:$16 sps:$4 sm:$0xff]  }
 0x34e   :  { %v3686_v51 = vld [vmem:[#allocation5 + $0xa4] ss:$16 sps:$4 sm:$0xff]   ;;  %v3690_v57 = vld [vmem:[#allocation5 + $0xa0] ss:$16 sps:$4 sm:$0xff]  }
 0x34f   :  { %v576_v54 = vpack.c.bf16 %v559_v50, %v557_v49  ;;  %v567_v60 = vmul.f32 %v559_v50, %v3482_v17  ;;  %v2941_v17 = vld [vmem:[#allocation2 + $0xa8] ss:$16 sps:$4 sm:$0xff]   ;;  %v3666_v49 = vld [vmem:[#allocation5 + $0x60] ss:$16 sps:$4 sm:$0xff]  }
 0x350   :  { %v3668_v50 = vld [vmem:[#allocation5 + $0x68] ss:$16 sps:$4 sm:$0xff]  }
 0x351   :  { %2810 = vmatmul.mubr.msk.bf16.gmra.mrb[12].mxu1 %vm179_vm3, %v576_v54  ;;  %v571_v61 = vpack.c.bf16 %v567_v60, %v566_v13  ;;  %v3676_v54 = vld [vmem:[#allocation5 + $0x8c] ss:$16 sps:$4 sm:$0xff]   ;;  %v3710_v60 = vld [vmem:[#allocation5 + $0xe4] ss:$16 sps:$4 sm:$0xff]   ;;  %v3714_v13 = vld [vmem:[#allocation5 + $0xe0] ss:$16 sps:$4 sm:$0xff]  }
 0x352   :  { %2815 = vmatprep.mubr.msk.bf16.mxu1 %vm179_vm3, %v568_v56  ;;  %v3678_v56 = vld [vmem:[#allocation5 + $0x80] ss:$16 sps:$4 sm:$0xff]  }
 0x359   :  { %2816 = vmatmul.mubr.msk.bf16.vlgmr.msra.gmra.mrb[8].mxu1 %vm179_vm3, %v569_v52  ;;  %v3698_v52 = vld [vmem:[#allocation5 + $0xc4] ss:$16 sps:$4 sm:$0xff]  }
 0x35a   :  { %2819 = vmatprep.mubr.msk.bf16.mxu1 %vm179_vm3, %v570_v55  ;;  %1030 = vmatpush1.bf16.msra.mxu1 %v2911_v58  ;;  %v3692_v58 = vld [vmem:[#allocation5 + $0xa8] ss:$16 sps:$4 sm:$0xff]   ;;  %v3702_v55 = vld [vmem:[#allocation5 + $0xc0] ss:$16 sps:$4 sm:$0xff]  }
 0x35b   :  { %1031 = vmatprep.subr.bf16.mxu1 %v2919_v59  ;;  %v3700_v59 = vld [vmem:[#allocation5 + $0xcc] ss:$16 sps:$4 sm:$0xff]  }
 0x35e   :  { %1032 = vmatpush1.bf16.msra.mxu1 %v2917_v3  ;;  %v3704_v3 = vld [vmem:[#allocation5 + $0xc8] ss:$16 sps:$4 sm:$0xff]  }
 0x35f   :  { %1033 = vmatprep.subr.bf16.mxu1 %v2925_v11  ;;  %v3712_v11 = vld [vmem:[#allocation5 + $0xec] ss:$16 sps:$4 sm:$0xff]  }
 0x361   :  { %2820 = vmatmul.mubr.msk.bf16.gmra.mrb[12].mxu1 %vm179_vm3, %v571_v61  ;;  %v4255_v61 = vlaneseq }
 0x362   :  { %1034 = vmatpush1.bf16.msra.mxu1 %v2923_v8  ;;  %1061 = vmatprep.mubr.bf16.mxu1 %v4258_v15  ;;  %v3716_v8 = vld [vmem:[#allocation5 + $0xe8] ss:$16 sps:$4 sm:$0xff]  }
 0x363   :  { %1035 = vmatprep.subr.bf16.mxu1 %v2931_v12  ;;  %v777_v12 = vshrl.u32 %v4255_v61, 7 }
 0x366   :  { %1036 = vmatpush1.bf16.msra.mxu1 %v2929_v62  ;;  %v778_v62 = vsub.s32 0, %v777_v12 }
 0x367   :  { %1037 = vmatprep.subr.bf16.mxu1 %v2937_v63  ;;  %v786_v63 = vsub.s32 2, %v777_v12 }
 0x36a   :  { %1038 = vmatpush1.bf16.msra.mxu1 %v2935_v1  ;;  %v774_v1 = vld [vmem:[%s4242_s15] sm:$0xf] }
 0x36b   :  { %1039 = vmatprep.subr.bf16.mxu1 %v2943_v2  ;;  %v782_v2 = vsub.s32 1, %v777_v12  ;;  %v3732_v5 = vrot.slane %v774_v1, %v778_v62  ;;  %v3734_v7 = vrot.slane %v774_v1, %v786_v63 }
 0x36e   :  { %1040 = vmatpush1.bf16.msra.mxu1 %v2941_v17  ;;  %v790_v17 = vsub.s32 3, %v777_v12 }
 0x36f   :  { %1041 = vmatprep.subr.bf16.mxu1 %v2949_v4 }
 0x372   :  { %1042 = vmatpush1.bf16.msra.mxu1 %v2947_v16 }
 0x373   :  { %1043 = vmatprep.subr.bf16.mxu1 %v2955_v9 }
 0x376   :  { %1044 = vmatpush1.bf16.msra.mxu1 %v2953_v14 }
 0x377   :  { %2829 = vmatprep.subr.bf16.mxu1 %v4256_v0 }
 0x42c   :  { %v2817_v18 = vpop.f32.mrb[8].mxu1 }
 0x42d   :  { %v707_v19 = vpop.f32.mrb[9].mxu1 }
 0x42e   :  { %v2818_v21 = vpop.f32.mrb[10].mxu1 }
 0x42f   :  { %v739_v23 = vpack.c.bf16 %v2818_v21, %v2817_v18  ;;  %v710_v24 = vpop.f32.mrb[11].mxu1  ;;  %v3740_v18 = vrot.slane %v774_v1, %v782_v2 }
 0x430   :  { %v738_v25 = vpack.c.bf16 %v710_v24, %v707_v19  ;;  %v3742_v19 = vrot.slane %v774_v1, %v790_v17 }
 0x432   :  { %989 = vmatmul.mubr.bf16.vlgmr.msra.gmra.mrb[12].mxu0 %v738_v25  ;;  %1062 = vmatmul.mubr.bf16.vlgmr.msra.gmra.mrb[16].mxu1 %v738_v25 }
 0x433   :  { %2824 = vmatpush3.bf16.msra.mxu0 %v1111_v26  ;;  %998 = vmatprep.mubr.bf16.mxu0 %v4258_v15 }
 0x434   :  { %v2821_v28 = vpop.f32.mrb[12].mxu1  ;;  %1071 = vmatprep.mubr.bf16.mxu1 %v4258_v15  ;;  %2830 = vmatpush3.bf16.msra.mxu1 %v1162_v27 }
 0x435   :  { %v723_v29 = vpop.f32.mrb[13].mxu1  ;;  %1397 = vmatprep.subr.bf16.mxu0 %v3626_v34  ;;  %1438 = vmatprep.subr.bf16.mxu1 %v3628_v35 }
 0x436   :  { %v3609_v30 = vpop.f32.mrb[14].mxu1 }
 0x437   :  { %4283 = vst [vmem:[#allocation12_spill] sm:$0xff] %v3609_v30  ;;  %v741_v31 = vpack.c.bf16 %v3609_v30, %v2821_v28  ;;  %v726_v32 = vpop.f32.mrb[15].mxu1 }
 0x438   :  { %v740_v33 = vpack.c.bf16 %v726_v32, %v723_v29 }
 0x43a   :  { %999 = vmatmul.mubr.bf16.gmra.mrb[16].mxu0 %v739_v23  ;;  %1072 = vmatmul.mubr.bf16.gmra.mrb[20].mxu1 %v739_v23 }
 0x43b   :  { %1008 = vmatprep.mubr.bf16.mxu0 %v4258_v15  ;;  %1081 = vmatprep.mubr.bf16.mxu1 %v4258_v15 }
 0x442   :  { %1009 = vmatmul.mubr.bf16.gmra.mrb[20].mxu0 %v740_v33  ;;  %1082 = vmatmul.mubr.bf16.gmra.mrb[24].mxu1 %v740_v33 }
 0x443   :  { %1018 = vmatprep.mubr.bf16.mxu0 %v4258_v15  ;;  %1091 = vmatprep.mubr.bf16.mxu1 %v4258_v15 }
 0x44a   :  { %1019 = vmatmul.mubr.bf16.gmra.mrb[24].mxu0 %v741_v31  ;;  %1092 = vmatmul.mubr.bf16.gmra.mrb[28].mxu1 %v741_v31 }
 0x44b   :  { %2825 = vmatprep.mubr.msk.bf16.mxu0 %vm3263_vm0, %v4256_v0  ;;  %2831 = vmatprep.mubr.msk.bf16.mxu1 %vm3263_vm0, %v4256_v0 }
 0x452   :  { %2826 = vmatmul.mubr.msk.bf16.vlgmr.msra.gmra.mrb[28].mxu0 %vm130_vm4, %v3452_v10  ;;  %2832 = vmatmul.mubr.msk.bf16.vlgmr.msra.gmra.mrb[32].mxu1 %vm130_vm4, %v3452_v10 }
 0x453   :  { %1429 = vmatprep.mubr.bf16.mxu0 %v4258_v15  ;;  %1470 = vmatprep.mubr.bf16.mxu1 %v4258_v15 }
 0x454   :  { %1398 = vmatpush1.bf16.msra.mxu0 %v3630_v37  ;;  %1439 = vmatpush1.bf16.msra.mxu1 %v3632_v38 }
 0x455   :  { %1399 = vmatprep.subr.bf16.mxu0 %v3638_v41  ;;  %1440 = vmatprep.subr.bf16.mxu1 %v3640_v36 }
 0x458   :  { %1400 = vmatpush1.bf16.msra.mxu0 %v3642_v42  ;;  %1441 = vmatpush1.bf16.msra.mxu1 %v3644_v43 }
 0x459   :  { %1401 = vmatprep.subr.bf16.mxu0 %v3650_v39  ;;  %1442 = vmatprep.subr.bf16.mxu1 %v3652_v44 }
 0x45c   :  { %1402 = vmatpush1.bf16.msra.mxu0 %v3654_v45  ;;  %1443 = vmatpush1.bf16.msra.mxu1 %v3656_v46 }
 0x45d   :  { %1403 = vmatprep.subr.bf16.mxu0 %v3662_v40  ;;  %1444 = vmatprep.subr.bf16.mxu1 %v3664_v47 }
 0x460   :  { %1404 = vmatpush1.bf16.msra.mxu0 %v3666_v49  ;;  %1445 = vmatpush1.bf16.msra.mxu1 %v3668_v50 }
 0x461   :  { %1405 = vmatprep.subr.bf16.mxu0 %v3674_v53  ;;  %1446 = vmatprep.subr.bf16.mxu1 %v3676_v54 }
 0x464   :  { %1406 = vmatpush1.bf16.msra.mxu0 %v3678_v56  ;;  %1447 = vmatpush1.bf16.msra.mxu1 %v3680_v48 }
 0x465   :  { %1407 = vmatprep.subr.bf16.mxu0 %v3686_v51  ;;  %1448 = vmatprep.subr.bf16.mxu1 %v3688_v6 }
 0x468   :  { %1408 = vmatpush1.bf16.msra.mxu0 %v3690_v57  ;;  %1449 = vmatpush1.bf16.msra.mxu1 %v3692_v58 }
 0x469   :  { %1409 = vmatprep.subr.bf16.mxu0 %v3698_v52  ;;  %1450 = vmatprep.subr.bf16.mxu1 %v3700_v59 }
 0x46c   :  { %1410 = vmatpush1.bf16.msra.mxu0 %v3702_v55  ;;  %1451 = vmatpush1.bf16.msra.mxu1 %v3704_v3 }
 0x46d   :  { %1411 = vmatprep.subr.bf16.mxu0 %v3710_v60  ;;  %1452 = vmatprep.subr.bf16.mxu1 %v3712_v11 }
 0x470   :  { %1412 = vmatpush1.bf16.msra.mxu0 %v3714_v13  ;;  %1453 = vmatpush1.bf16.msra.mxu1 %v3716_v8 }
 0x471   :  { %1502 = vmatprep.subr.bf16.mxu0 %v3626_v34  ;;  %1543 = vmatprep.subr.bf16.mxu1 %v3628_v35 }
 0x505   :  { %v3728_v4 = vpop.f32.mrb[12].mxu0  ;;  %v3730_v16 = vpop.f32.mrb[16].mxu1 }
 0x506   :  { %v3736_v9 = vpop.f32.mrb[13].mxu0  ;;  %v3738_v14 = vpop.f32.mrb[17].mxu1 }
 0x507   :  { %v994_v20 = vpop.f32.mrb[14].mxu0  ;;  %v1067_v21 = vpop.f32.mrb[18].mxu1 }
 0x508   :  { %v3745_v22 = vadd.f32 %v994_v20, %v3732_v5  ;;  %v3748_v23 = vadd.f32 %v1067_v21, %v3734_v7  ;;  %v996_v24 = vpop.f32.mrb[15].mxu0  ;;  %v1069_v25 = vpop.f32.mrb[19].mxu1 }
 0x509   :  { %v3751_v26 = vadd.f32 %v996_v24, %v3740_v18  ;;  %v3754_v27 = vadd.f32 %v1069_v25, %v3742_v19 }
 0x50d   :  { %v1000_v28 = vpop.f32.mrb[16].mxu0  ;;  %v1073_v29 = vpop.f32.mrb[20].mxu1 }
 0x50e   :  { %v3757_v31 = vadd.f32 %v1000_v28, %v3732_v5  ;;  %v3760_v32 = vadd.f32 %v1073_v29, %v3734_v7  ;;  %v1002_v33 = vpop.f32.mrb[17].mxu0  ;;  %v1075_v12 = vpop.f32.mrb[21].mxu1 }
 0x50f   :  { %v3763_v62 = vadd.f32 %v1002_v33, %v3740_v18  ;;  %v3766_v63 = vadd.f32 %v1075_v12, %v3742_v19  ;;  %v1004_v1 = vpop.f32.mrb[18].mxu0  ;;  %v1077_v2 = vpop.f32.mrb[22].mxu1 }
 0x510   :  { %v3769_v17 = vadd.f32 %v1004_v1, %v3732_v5  ;;  %v3772_v20 = vadd.f32 %v1077_v2, %v3734_v7  ;;  %v1006_v21 = vpop.f32.mrb[19].mxu0  ;;  %v1079_v24 = vpop.f32.mrb[23].mxu1 }
 0x511   :  { %4284 = vst [vmem:[#allocation13_spill] sm:$0xff] %v3766_v63  ;;  %v3775_v25 = vadd.f32 %v1006_v21, %v3740_v18  ;;  %v3778_v28 = vadd.f32 %v1079_v24, %v3742_v19 }
 0x512   :  { %4285 = vst [vmem:[#allocation14_spill] sm:$0xff] %v3769_v17  ;;  %4286 = vst [vmem:[#allocation15_spill] sm:$0xff] %v3772_v20 }
 0x513   :  { %4287 = vst [vmem:[#allocation16_spill] sm:$0xff] %v3775_v25  ;;  %4288 = vst [vmem:[#allocation17_spill] sm:$0xff] %v3778_v28 }
 0x515   :  { %v1010_v29 = vpop.f32.mrb[20].mxu0  ;;  %v1083_v33 = vpop.f32.mrb[24].mxu1 }
 0x516   :  { %v3781_v12 = vadd.f32 %v1010_v29, %v3732_v5  ;;  %v3784_v61 = vadd.f32 %v1083_v33, %v3734_v7  ;;  %v1012_v1 = vpop.f32.mrb[21].mxu0  ;;  %v1085_v0 = vpop.f32.mrb[25].mxu1 }
 0x517   :  { %v3787_v2 = vadd.f32 %v1012_v1, %v3740_v18  ;;  %v3790_v15 = vadd.f32 %v1085_v0, %v3742_v19  ;;  %v1014_v21 = vpop.f32.mrb[22].mxu0  ;;  %v1087_v10 = vpop.f32.mrb[26].mxu1 }
 0x518   :  { %4289 = vst [vmem:[#allocation18_spill] sm:$0xff] %v3781_v12  ;;  %4290 = vst [vmem:[#allocation19_spill] sm:$0xff] %v3784_v61  ;;  %v3793_v24 = vadd.f32 %v1014_v21, %v3732_v5  ;;  %v3796_v30 = vadd.f32 %v1087_v10, %v3734_v7  ;;  %v1016_v29 = vpop.f32.mrb[23].mxu0  ;;  %v1089_v12 = vpop.f32.mrb[27].mxu1 }
 0x519   :  { %4291 = vst [vmem:[#allocation20_spill] sm:$0xff] %v3787_v2  ;;  %4292 = vst [vmem:[#allocation21_spill] sm:$0xff] %v3790_v15  ;;  %v3799_v33 = vadd.f32 %v1016_v29, %v3740_v18  ;;  %v3802_v61 = vadd.f32 %v1089_v12, %v3742_v19 }
 0x51a   :  { %4293 = vst [vmem:[#allocation22_spill] sm:$0xff] %v3793_v24  ;;  %4294 = vst [vmem:[#allocation23_spill] sm:$0xff] %v3796_v30 }
 0x51b   :  { %4295 = vst [vmem:[#allocation24_spill] sm:$0xff] %v3799_v33  ;;  %4296 = vst [vmem:[#allocation25_spill] sm:$0xff] %v3802_v61 }
 0x51d   :  { %v1020_v1 = vpop.f32.mrb[24].mxu0  ;;  %v1093_v2 = vpop.f32.mrb[28].mxu1 }
 0x51e   :  { %v3805_v0 = vadd.f32 %v1020_v1, %v3732_v5  ;;  %v3808_v15 = vadd.f32 %v1093_v2, %v3734_v7  ;;  %v1022_v21 = vpop.f32.mrb[25].mxu0  ;;  %v1095_v24 = vpop.f32.mrb[29].mxu1 }
 0x51f   :  { %v3811_v10 = vadd.f32 %v1022_v21, %v3740_v18  ;;  %v3814_v30 = vadd.f32 %v1095_v24, %v3742_v19  ;;  %v1024_v29 = vpop.f32.mrb[26].mxu0  ;;  %v1097_v33 = vpop.f32.mrb[30].mxu1  ;;  %v2650_v24 = vld [vmem:[%s4237_s10] ss:$0 sm:$0xff] }
 0x520   :  { %4297 = vst [vmem:[#allocation26_spill] sm:$0xff] %v3805_v0  ;;  %4298 = vst [vmem:[#allocation27_spill] sm:$0xff] %v3808_v15  ;;  %v3817_v12 = vadd.f32 %v1024_v29, %v3732_v5  ;;  %v3820_v61 = vadd.f32 %v1097_v33, %v3734_v7  ;;  %v1026_v1 = vpop.f32.mrb[27].mxu0  ;;  %v1099_v0 = vpop.f32.mrb[31].mxu1 }
 0x521   :  { %4299 = vst [vmem:[#allocation28_spill] sm:$0xff] %v3811_v10  ;;  %4300 = vst [vmem:[#allocation29_spill] sm:$0xff] %v3814_v30  ;;  %v3823_v2 = vadd.f32 %v1026_v1, %v3740_v18  ;;  %v3826_v15 = vadd.f32 %v1099_v0, %v3742_v19  ;;  %v4305_v0 = vmov 0  }
 0x522   :  { %4301 = vst [vmem:[#allocation30_spill] sm:$0xff] %v3817_v12  ;;  %4302 = vst [vmem:[#allocation31_spill] sm:$0xff] %v3820_v61 }
 0x523   :  { %4303 = vst [vmem:[#allocation32_spill] sm:$0xff] %v3823_v2  ;;  %4304 = vst [vmem:[#allocation33_spill] sm:$0xff] %v3826_v15 }
 0x525   :  { %v1147_v21 = vpop.f32.mrb[28].mxu0  ;;  %v3831_v30 = vpop.f32.mrb[32].mxu1 }
 0x526   :  { %v1148_v29 = vadd.f32 %v2650_v24, %v1147_v21  ;;  %v2827_v12 = vpop.f32.mrb[29].mxu0  ;;  %v2833_v10 = vpop.f32.mrb[33].mxu1 }
 0x527   :  { %v1150_v33 = vpop.f32.mrb[30].mxu0  ;;  %v1201_v61 = vpop.f32.mrb[34].mxu1 }
 0x528   :  { %v1236_v28 = vpack.c.bf16 %v1148_v29, %v1148_v29  ;;  %v2828_v25 = vpop.f32.mrb[31].mxu0  ;;  %v2834_v20 = vpop.f32.mrb[35].mxu1  ;;  %v991_v61 = vadd.f32 %v3728_v4, %v3732_v5 }
 0x529   :  { %v1064_v20 = vadd.f32 %v3730_v16, %v3734_v7  ;;  %v993_v25 = vadd.f32 %v3736_v9, %v3740_v18  ;;  %v2652_v18 = vld [vmem:[%s4239_s12] ss:$0 sm:$0xff] }
 0x52a   :  { %1430 = vmatmul.mubr.bf16.vlgmr.msra.gmra.mrb[32].mxu0 %v1236_v28  ;;  %1471 = vmatmul.mubr.bf16.vlgmr.msra.gmra.mrb[36].mxu1 %v1236_v28  ;;  %v1066_v28 = vadd.f32 %v3738_v14, %v3742_v19 }
 0x52b   :  { %1503 = vmatpush1.bf16.msra.mxu0 %v3630_v37  ;;  %1544 = vmatpush1.bf16.msra.mxu1 %v3632_v38 }
 0x52c   :  { %1504 = vmatprep.subr.bf16.mxu0 %v3638_v41  ;;  %1545 = vmatprep.subr.bf16.mxu1 %v3640_v36 }
 0x52d   :  { %1534 = vmatprep.mubr.bf16.mxu0 %v4305_v0  ;;  %1575 = vmatprep.mubr.bf16.mxu1 %v4305_v0 }
 0x52f   :  { %1505 = vmatpush1.bf16.msra.mxu0 %v3642_v42  ;;  %1546 = vmatpush1.bf16.msra.mxu1 %v3644_v43 }
 0x530   :  { %1506 = vmatprep.subr.bf16.mxu0 %v3650_v39  ;;  %1547 = vmatprep.subr.bf16.mxu1 %v3652_v44 }
 0x533   :  { %1507 = vmatpush1.bf16.msra.mxu0 %v3654_v45  ;;  %1548 = vmatpush1.bf16.msra.mxu1 %v3656_v46 }
 0x534   :  { %1508 = vmatprep.subr.bf16.mxu0 %v3662_v40  ;;  %1549 = vmatprep.subr.bf16.mxu1 %v3664_v47 }
 0x537   :  { %1509 = vmatpush1.bf16.msra.mxu0 %v3666_v49  ;;  %1550 = vmatpush1.bf16.msra.mxu1 %v3668_v50 }
 0x538   :  { %1510 = vmatprep.subr.bf16.mxu0 %v3674_v53  ;;  %1551 = vmatprep.subr.bf16.mxu1 %v3676_v54 }
 0x53b   :  { %1511 = vmatpush1.bf16.msra.mxu0 %v3678_v56  ;;  %1552 = vmatpush1.bf16.msra.mxu1 %v3680_v48 }
 0x53c   :  { %1512 = vmatprep.subr.bf16.mxu0 %v3686_v51  ;;  %1553 = vmatprep.subr.bf16.mxu1 %v3688_v6 }
 0x53f   :  { %1513 = vmatpush1.bf16.msra.mxu0 %v3690_v57  ;;  %1554 = vmatpush1.bf16.msra.mxu1 %v3692_v58 }
 0x540   :  { %1514 = vmatprep.subr.bf16.mxu0 %v3698_v52  ;;  %1555 = vmatprep.subr.bf16.mxu1 %v3700_v59 }
 0x543   :  { %1515 = vmatpush1.bf16.msra.mxu0 %v3702_v55  ;;  %1556 = vmatpush1.bf16.msra.mxu1 %v3704_v3 }
 0x544   :  { %1516 = vmatprep.subr.bf16.mxu0 %v3710_v60  ;;  %1557 = vmatprep.subr.bf16.mxu1 %v3712_v11 }
 0x547   :  { %1517 = vmatpush1.bf16.msra.mxu0 %v3714_v13  ;;  %1558 = vmatpush1.bf16.msra.mxu1 %v3716_v8 }
 0x548   :  { %1607 = vmatprep.subr.bf16.mxu0 %v3626_v34  ;;  %1648 = vmatprep.subr.bf16.mxu1 %v3628_v35 }
 0x5fd   :  { %v1431_v10 = vpop.f32.mrb[32].mxu0  ;;  %v1472_v12 = vpop.f32.mrb[36].mxu1 }
 0x5fe   :  { %v1479_v1 = vadd.f32 %v1431_v10, %v991_v61  ;;  %v1481_v24 = vadd.f32 %v1472_v12, %v1064_v20  ;;  %v1433_v21 = vpop.f32.mrb[33].mxu0  ;;  %v1474_v29 = vpop.f32.mrb[37].mxu1 }
 0x5ff   :  { %v1480_v33 = vadd.f32 %v1433_v21, %v993_v25  ;;  %v1482_v15 = vadd.f32 %v1474_v29, %v1066_v28  ;;  %v1435_v2 = vpop.f32.mrb[34].mxu0  ;;  %v1476_v17 = vpop.f32.mrb[38].mxu1 }
 0x600   :  { %v1483_v4 = vmul.f32 0.5, %v1479_v1  ;;  %v1436_v5 = vpop.f32.mrb[35].mxu0  ;;  %v1477_v63 = vpop.f32.mrb[39].mxu1  ;;  %v1199_v17 = vadd.f32 %v2652_v18, %v3831_v30 }
 0x601   :  { %v1487_v16 = vmul.f32 0.5, %v1480_v33  ;;  %v1492_v7 = vmul.f32 0.5, %v1482_v15 }
 0x602   :  { %3068 = vtanh.f32 %v1483_v4 }
 0x603   :  { %3070 = vtanh.f32 %v1487_v16 }
 0x604   :  { %3072 = vtanh.f32 %v1481_v24 }
 0x605   :  { %3074 = vtanh.f32 %v1492_v7 }
 0x60c   :  { %v3069_v9 = vpop.eup %3068 }
 0x60d   :  { %v3071_v14 = vpop.eup %3070  ;;  %v1485_v19 = vadd.f32 1.0, %v3069_v9 }
 0x60e   :  { %v1489_v61 = vadd.f32 1.0, %v3071_v14  ;;  %v3073_v2 = vpop.eup %3072 }
 0x60f   :  { %v1486_v20 = vmul.f32 0.5, %v1485_v19  ;;  %v3075_v15 = vpop.eup %3074 }
 0x610   :  { %v1490_v25 = vmul.f32 0.5, %v1489_v61  ;;  %v1494_v12 = vadd.f32 1.0, %v3075_v15 }
 0x611   :  { %v1497_v63 = vmul.f32 %v3073_v2, %v1486_v20 }
 0x612   :  { %v1496_v28 = vmul.f32 %v1490_v25, %v1199_v17  ;;  %v1495_v1 = vmul.f32 0.5, %v1494_v12 }
 0x614   :  { %v3879_v10 = vadd.f32 %v1497_v63, %v1496_v28 }
 0x616   :  { %3076 = vtanh.f32 %v3879_v10 }
 0x620   :  { %v3077_v24 = vpop.eup %3076 }
 0x621   :  { %v1500_v21 = vmul.f32 %v3077_v24, %v1495_v1 }
 0x623   :  { %v1501_v29 = vpack.c.bf16 %v1500_v21, %v1500_v21 }
 0x625   :  { %1535 = vmatmul.mubr.bf16.vlgmr.msra.gmra.mrb[36].mxu0 %v1501_v29  ;;  %1576 = vmatmul.mubr.bf16.vlgmr.msra.gmra.mrb[40].mxu1 %v1501_v29 }
 0x626   :  { %1608 = vmatpush1.bf16.msra.mxu0 %v3630_v37  ;;  %1649 = vmatpush1.bf16.msra.mxu1 %v3632_v38 }
 0x627   :  { %1609 = vmatprep.subr.bf16.mxu0 %v3638_v41  ;;  %1650 = vmatprep.subr.bf16.mxu1 %v3640_v36 }
 0x628   :  { %1639 = vmatprep.mubr.bf16.mxu0 %v4305_v0  ;;  %1680 = vmatprep.mubr.bf16.mxu1 %v4305_v0 }
 0x62a   :  { %1610 = vmatpush1.bf16.msra.mxu0 %v3642_v42  ;;  %1651 = vmatpush1.bf16.msra.mxu1 %v3644_v43 }
 0x62b   :  { %1611 = vmatprep.subr.bf16.mxu0 %v3650_v39  ;;  %1652 = vmatprep.subr.bf16.mxu1 %v3652_v44 }
 0x62e   :  { %1612 = vmatpush1.bf16.msra.mxu0 %v3654_v45  ;;  %1653 = vmatpush1.bf16.msra.mxu1 %v3656_v46 }
 0x62f   :  { %1613 = vmatprep.subr.bf16.mxu0 %v3662_v40  ;;  %1654 = vmatprep.subr.bf16.mxu1 %v3664_v47 }
 0x632   :  { %1614 = vmatpush1.bf16.msra.mxu0 %v3666_v49  ;;  %1655 = vmatpush1.bf16.msra.mxu1 %v3668_v50 }
 0x633   :  { %1615 = vmatprep.subr.bf16.mxu0 %v3674_v53  ;;  %1656 = vmatprep.subr.bf16.mxu1 %v3676_v54 }
 0x636   :  { %1616 = vmatpush1.bf16.msra.mxu0 %v3678_v56  ;;  %1657 = vmatpush1.bf16.msra.mxu1 %v3680_v48 }
 0x637   :  { %1617 = vmatprep.subr.bf16.mxu0 %v3686_v51  ;;  %1658 = vmatprep.subr.bf16.mxu1 %v3688_v6 }
 0x63a   :  { %1618 = vmatpush1.bf16.msra.mxu0 %v3690_v57  ;;  %1659 = vmatpush1.bf16.msra.mxu1 %v3692_v58 }
 0x63b   :  { %1619 = vmatprep.subr.bf16.mxu0 %v3698_v52  ;;  %1660 = vmatprep.subr.bf16.mxu1 %v3700_v59 }
 0x63e   :  { %1620 = vmatpush1.bf16.msra.mxu0 %v3702_v55  ;;  %1661 = vmatpush1.bf16.msra.mxu1 %v3704_v3 }
 0x63f   :  { %1621 = vmatprep.subr.bf16.mxu0 %v3710_v60  ;;  %1662 = vmatprep.subr.bf16.mxu1 %v3712_v11 }
 0x642   :  { %1622 = vmatpush1.bf16.msra.mxu0 %v3714_v13  ;;  %1663 = vmatpush1.bf16.msra.mxu1 %v3716_v8 }
 0x643   :  { %1712 = vmatprep.subr.bf16.mxu0 %v3626_v34  ;;  %1753 = vmatprep.subr.bf16.mxu1 %v3628_v35 }
 0x6f8   :  { %v1536_v30 = vpop.f32.mrb[36].mxu0  ;;  %v1577_v33 = vpop.f32.mrb[40].mxu1 }
 0x6f9   :  { %v1584_v4 = vadd.f32 %v1536_v30, %v3745_v22  ;;  %v1586_v5 = vadd.f32 %v1577_v33, %v3748_v23  ;;  %v1538_v16 = vpop.f32.mrb[37].mxu0  ;;  %v1579_v7 = vpop.f32.mrb[41].mxu1 }
 0x6fa   :  { %v1585_v9 = vadd.f32 %v1538_v16, %v3751_v26  ;;  %v1587_v14 = vadd.f32 %v1579_v7, %v3754_v27  ;;  %v1540_v18 = vpop.f32.mrb[38].mxu0  ;;  %v1581_v19 = vpop.f32.mrb[42].mxu1 }
 0x6fb   :  { %v1588_v61 = vmul.f32 0.5, %v1584_v4  ;;  %v1541_v20 = vpop.f32.mrb[39].mxu0  ;;  %v1582_v2 = vpop.f32.mrb[43].mxu1 }
 0x6fc   :  { %v1592_v17 = vmul.f32 0.5, %v1585_v9  ;;  %v1597_v25 = vmul.f32 0.5, %v1587_v14 }
 0x6fd   :  { %3078 = vtanh.f32 %v1588_v61  ;;  %v4306_v61 = vld [vmem:[#allocation13_spill] sm:$0xff] }
 0x6fe   :  { %3080 = vtanh.f32 %v1592_v17 }
 0x6ff   :  { %3082 = vtanh.f32 %v1586_v5 }
 0x700   :  { %3084 = vtanh.f32 %v1597_v25 }
 0x707   :  { %v3079_v63 = vpop.eup %3078 }
 0x708   :  { %v3081_v22 = vpop.eup %3080  ;;  %v1590_v28 = vadd.f32 1.0, %v3079_v63 }
 0x709   :  { %v1594_v23 = vadd.f32 1.0, %v3081_v22  ;;  %v3083_v12 = vpop.eup %3082 }
 0x70a   :  { %v1591_v15 = vmul.f32 0.5, %v1590_v28  ;;  %v3085_v21 = vpop.eup %3084 }
 0x70b   :  { %v1595_v26 = vmul.f32 0.5, %v1594_v23  ;;  %v1599_v29 = vadd.f32 1.0, %v3085_v21 }
 0x70c   :  { %v1602_v1 = vmul.f32 %v3083_v12, %v1591_v15 }
 0x70d   :  { %v1601_v27 = vmul.f32 %v1595_v26, %v3879_v10  ;;  %v1600_v30 = vmul.f32 0.5, %v1599_v29 }
 0x70f   :  { %v3921_v24 = vadd.f32 %v1602_v1, %v1601_v27 }
 0x711   :  { %3086 = vtanh.f32 %v3921_v24 }
 0x71b   :  { %v3087_v33 = vpop.eup %3086 }
 0x71c   :  { %v1605_v4 = vmul.f32 %v3087_v33, %v1600_v30 }
 0x71e   :  { %v1606_v5 = vpack.c.bf16 %v1605_v4, %v1605_v4 }
 0x720   :  { %1640 = vmatmul.mubr.bf16.vlgmr.msra.gmra.mrb[40].mxu0 %v1606_v5  ;;  %1681 = vmatmul.mubr.bf16.vlgmr.msra.gmra.mrb[44].mxu1 %v1606_v5 }
 0x721   :  { %1713 = vmatpush1.bf16.msra.mxu0 %v3630_v37  ;;  %1754 = vmatpush1.bf16.msra.mxu1 %v3632_v38 }
 0x722   :  { %1714 = vmatprep.subr.bf16.mxu0 %v3638_v41  ;;  %1755 = vmatprep.subr.bf16.mxu1 %v3640_v36 }
 0x723   :  { %1744 = vmatprep.mubr.bf16.mxu0 %v4305_v0  ;;  %1785 = vmatprep.mubr.bf16.mxu1 %v4305_v0 }
 0x725   :  { %1715 = vmatpush1.bf16.msra.mxu0 %v3642_v42  ;;  %1756 = vmatpush1.bf16.msra.mxu1 %v3644_v43 }
 0x726   :  { %1716 = vmatprep.subr.bf16.mxu0 %v3650_v39  ;;  %1757 = vmatprep.subr.bf16.mxu1 %v3652_v44 }
 0x729   :  { %1717 = vmatpush1.bf16.msra.mxu0 %v3654_v45  ;;  %1758 = vmatpush1.bf16.msra.mxu1 %v3656_v46 }
 0x72a   :  { %1718 = vmatprep.subr.bf16.mxu0 %v3662_v40  ;;  %1759 = vmatprep.subr.bf16.mxu1 %v3664_v47 }
 0x72d   :  { %1719 = vmatpush1.bf16.msra.mxu0 %v3666_v49  ;;  %1760 = vmatpush1.bf16.msra.mxu1 %v3668_v50 }
 0x72e   :  { %1720 = vmatprep.subr.bf16.mxu0 %v3674_v53  ;;  %1761 = vmatprep.subr.bf16.mxu1 %v3676_v54 }
 0x731   :  { %1721 = vmatpush1.bf16.msra.mxu0 %v3678_v56  ;;  %1762 = vmatpush1.bf16.msra.mxu1 %v3680_v48 }
 0x732   :  { %1722 = vmatprep.subr.bf16.mxu0 %v3686_v51  ;;  %1763 = vmatprep.subr.bf16.mxu1 %v3688_v6 }
 0x735   :  { %1723 = vmatpush1.bf16.msra.mxu0 %v3690_v57  ;;  %1764 = vmatpush1.bf16.msra.mxu1 %v3692_v58 }
 0x736   :  { %1724 = vmatprep.subr.bf16.mxu0 %v3698_v52  ;;  %1765 = vmatprep.subr.bf16.mxu1 %v3700_v59 }
 0x739   :  { %1725 = vmatpush1.bf16.msra.mxu0 %v3702_v55  ;;  %1766 = vmatpush1.bf16.msra.mxu1 %v3704_v3 }
 0x73a   :  { %1726 = vmatprep.subr.bf16.mxu0 %v3710_v60  ;;  %1767 = vmatprep.subr.bf16.mxu1 %v3712_v11 }
 0x73d   :  { %1727 = vmatpush1.bf16.msra.mxu0 %v3714_v13  ;;  %1768 = vmatpush1.bf16.msra.mxu1 %v3716_v8 }
 0x73e   :  { %1817 = vmatprep.subr.bf16.mxu0 %v3626_v34  ;;  %1858 = vmatprep.subr.bf16.mxu1 %v3628_v35 }
 0x7f3   :  { %v1641_v10 = vpop.f32.mrb[40].mxu0  ;;  %v1682_v16 = vpop.f32.mrb[44].mxu1 }
 0x7f4   :  { %v1689_v7 = vadd.f32 %v1641_v10, %v3757_v31  ;;  %v1691_v9 = vadd.f32 %v1682_v16, %v3760_v32  ;;  %v1643_v14 = vpop.f32.mrb[41].mxu0  ;;  %v1684_v18 = vpop.f32.mrb[45].mxu1 }
 0x7f5   :  { %v1690_v19 = vadd.f32 %v1643_v14, %v3763_v62  ;;  %v1692_v20 = vadd.f32 %v1684_v18, %v4306_v61  ;;  %v1645_v2 = vpop.f32.mrb[42].mxu0  ;;  %v1686_v17 = vpop.f32.mrb[46].mxu1  ;;  %v4308_v18 = vld [vmem:[#allocation15_spill] sm:$0xff] }
 0x7f6   :  { %v1693_v25 = vmul.f32 0.5, %v1689_v7  ;;  %v1646_v63 = vpop.f32.mrb[43].mxu0  ;;  %v1687_v22 = vpop.f32.mrb[47].mxu1  ;;  %v4309_v2 = vld [vmem:[#allocation16_spill] sm:$0xff] }
 0x7f7   :  { %v1697_v28 = vmul.f32 0.5, %v1690_v19  ;;  %v1702_v23 = vmul.f32 0.5, %v1692_v20 }
 0x7f8   :  { %3088 = vtanh.f32 %v1693_v25  ;;  %v4310_v25 = vld [vmem:[#allocation17_spill] sm:$0xff] }
 0x7f9   :  { %3090 = vtanh.f32 %v1697_v28 }
 0x7fa   :  { %3092 = vtanh.f32 %v1691_v9  ;;  %v4307_v9 = vld [vmem:[#allocation14_spill] sm:$0xff] }
 0x7fb   :  { %3094 = vtanh.f32 %v1702_v23 }
 0x802   :  { %v3089_v15 = vpop.eup %3088 }
 0x803   :  { %v3091_v31 = vpop.eup %3090  ;;  %v1695_v12 = vadd.f32 1.0, %v3089_v15 }
 0x804   :  { %v1699_v32 = vadd.f32 1.0, %v3091_v31  ;;  %v3093_v1 = vpop.eup %3092 }
 0x805   :  { %v1696_v26 = vmul.f32 0.5, %v1695_v12  ;;  %v3095_v30 = vpop.eup %3094 }
 0x806   :  { %v1700_v62 = vmul.f32 0.5, %v1699_v32  ;;  %v1704_v33 = vadd.f32 1.0, %v3095_v30 }
 0x807   :  { %v1707_v27 = vmul.f32 %v3093_v1, %v1696_v26 }
 0x808   :  { %v1706_v21 = vmul.f32 %v1700_v62, %v3921_v24  ;;  %v1705_v4 = vmul.f32 0.5, %v1704_v33 }
 0x80a   :  { %v3963_v29 = vadd.f32 %v1707_v27, %v1706_v21 }
 0x80c   :  { %3096 = vtanh.f32 %v3963_v29 }
 0x816   :  { %v3097_v5 = vpop.eup %3096 }
 0x817   :  { %v1710_v10 = vmul.f32 %v3097_v5, %v1705_v4 }
 0x819   :  { %v1711_v16 = vpack.c.bf16 %v1710_v10, %v1710_v10 }
 0x81b   :  { %1745 = vmatmul.mubr.bf16.vlgmr.msra.gmra.mrb[44].mxu0 %v1711_v16  ;;  %1786 = vmatmul.mubr.bf16.vlgmr.msra.gmra.mrb[48].mxu1 %v1711_v16 }
 0x81c   :  { %1818 = vmatpush1.bf16.msra.mxu0 %v3630_v37  ;;  %1859 = vmatpush1.bf16.msra.mxu1 %v3632_v38 }
 0x81d   :  { %1819 = vmatprep.subr.bf16.mxu0 %v3638_v41  ;;  %1860 = vmatprep.subr.bf16.mxu1 %v3640_v36 }
 0x81e   :  { %1849 = vmatprep.mubr.bf16.mxu0 %v4305_v0  ;;  %1890 = vmatprep.mubr.bf16.mxu1 %v4305_v0 }
 0x820   :  { %1820 = vmatpush1.bf16.msra.mxu0 %v3642_v42  ;;  %1861 = vmatpush1.bf16.msra.mxu1 %v3644_v43 }
 0x821   :  { %1821 = vmatprep.subr.bf16.mxu0 %v3650_v39  ;;  %1862 = vmatprep.subr.bf16.mxu1 %v3652_v44 }
 0x824   :  { %1822 = vmatpush1.bf16.msra.mxu0 %v3654_v45  ;;  %1863 = vmatpush1.bf16.msra.mxu1 %v3656_v46 }
 0x825   :  { %1823 = vmatprep.subr.bf16.mxu0 %v3662_v40  ;;  %1864 = vmatprep.subr.bf16.mxu1 %v3664_v47 }
 0x828   :  { %1824 = vmatpush1.bf16.msra.mxu0 %v3666_v49  ;;  %1865 = vmatpush1.bf16.msra.mxu1 %v3668_v50 }
 0x829   :  { %1825 = vmatprep.subr.bf16.mxu0 %v3674_v53  ;;  %1866 = vmatprep.subr.bf16.mxu1 %v3676_v54 }
 0x82c   :  { %1826 = vmatpush1.bf16.msra.mxu0 %v3678_v56  ;;  %1867 = vmatpush1.bf16.msra.mxu1 %v3680_v48 }
 0x82d   :  { %1827 = vmatprep.subr.bf16.mxu0 %v3686_v51  ;;  %1868 = vmatprep.subr.bf16.mxu1 %v3688_v6 }
 0x830   :  { %1828 = vmatpush1.bf16.msra.mxu0 %v3690_v57  ;;  %1869 = vmatpush1.bf16.msra.mxu1 %v3692_v58 }
 0x831   :  { %1829 = vmatprep.subr.bf16.mxu0 %v3698_v52  ;;  %1870 = vmatprep.subr.bf16.mxu1 %v3700_v59 }
 0x834   :  { %1830 = vmatpush1.bf16.msra.mxu0 %v3702_v55  ;;  %1871 = vmatpush1.bf16.msra.mxu1 %v3704_v3 }
 0x835   :  { %1831 = vmatprep.subr.bf16.mxu0 %v3710_v60  ;;  %1872 = vmatprep.subr.bf16.mxu1 %v3712_v11 }
 0x838   :  { %1832 = vmatpush1.bf16.msra.mxu0 %v3714_v13  ;;  %1873 = vmatpush1.bf16.msra.mxu1 %v3716_v8 }
 0x839   :  { %1922 = vmatprep.subr.bf16.mxu0 %v3626_v34  ;;  %1963 = vmatprep.subr.bf16.mxu1 %v3628_v35 }
 0x8ee   :  { %v1746_v24 = vpop.f32.mrb[44].mxu0  ;;  %v1787_v7 = vpop.f32.mrb[48].mxu1 }
 0x8ef   :  { %v1794_v14 = vadd.f32 %v1746_v24, %v4307_v9  ;;  %v1796_v19 = vadd.f32 %v1787_v7, %v4308_v18  ;;  %v1748_v61 = vpop.f32.mrb[45].mxu0  ;;  %v1789_v20 = vpop.f32.mrb[49].mxu1 }
 0x8f0   :  { %v1795_v17 = vadd.f32 %v1748_v61, %v4309_v2  ;;  %v1797_v63 = vadd.f32 %v1789_v20, %v4310_v25  ;;  %v1750_v22 = vpop.f32.mrb[46].mxu0  ;;  %v1791_v28 = vpop.f32.mrb[50].mxu1  ;;  %v4313_v2 = vld [vmem:[#allocation20_spill] sm:$0xff]  ;;  %v4314_v25 = vld [vmem:[#allocation21_spill] sm:$0xff] }
 0x8f1   :  { %v1798_v23 = vmul.f32 0.5, %v1794_v14  ;;  %v1751_v15 = vpop.f32.mrb[47].mxu0  ;;  %v1792_v31 = vpop.f32.mrb[51].mxu1 }
 0x8f2   :  { %v1802_v12 = vmul.f32 0.5, %v1795_v17  ;;  %v1807_v32 = vmul.f32 0.5, %v1797_v63 }
 0x8f3   :  { %3098 = vtanh.f32 %v1798_v23 }
 0x8f4   :  { %3100 = vtanh.f32 %v1802_v12 }
 0x8f5   :  { %3102 = vtanh.f32 %v1796_v19 }
 0x8f6   :  { %3104 = vtanh.f32 %v1807_v32 }
 0x8fd   :  { %v3099_v26 = vpop.eup %3098 }
 0x8fe   :  { %v3101_v1 = vpop.eup %3100  ;;  %v1800_v62 = vadd.f32 1.0, %v3099_v26 }
 0x8ff   :  { %v1804_v27 = vadd.f32 1.0, %v3101_v1  ;;  %v3103_v30 = vpop.eup %3102 }
 0x900   :  { %v1801_v21 = vmul.f32 0.5, %v1800_v62  ;;  %v3105_v16 = vpop.eup %3104 }
 0x901   :  { %v1805_v33 = vmul.f32 0.5, %v1804_v27  ;;  %v1809_v24 = vadd.f32 1.0, %v3105_v16 }
 0x902   :  { %v1812_v4 = vmul.f32 %v3103_v30, %v1801_v21 }
 0x903   :  { %v1811_v5 = vmul.f32 %v1805_v33, %v3963_v29  ;;  %v1810_v7 = vmul.f32 0.5, %v1809_v24  ;;  %v4312_v29 = vld [vmem:[#allocation19_spill] sm:$0xff] }
 0x905   :  { %v4005_v10 = vadd.f32 %v1812_v4, %v1811_v5 }
 0x907   :  { %3106 = vtanh.f32 %v4005_v10 }
 0x911   :  { %v3107_v9 = vpop.eup %3106 }
 0x912   :  { %v1815_v14 = vmul.f32 %v3107_v9, %v1810_v7 }
 0x914   :  { %v1816_v18 = vpack.c.bf16 %v1815_v14, %v1815_v14 }
 0x916   :  { %1850 = vmatmul.mubr.bf16.vlgmr.msra.gmra.mrb[48].mxu0 %v1816_v18  ;;  %1891 = vmatmul.mubr.bf16.vlgmr.msra.gmra.mrb[52].mxu1 %v1816_v18  ;;  %v4050_v18 = vld [vmem:[#allocation5] ss:$16 sps:$4 sm:$0xff]  }
 0x917   :  { %1923 = vmatpush1.bf16.msra.mxu0 %v3630_v37  ;;  %1964 = vmatpush1.bf16.msra.mxu1 %v3632_v38 }
 0x918   :  { %1924 = vmatprep.subr.bf16.mxu0 %v3638_v41  ;;  %1965 = vmatprep.subr.bf16.mxu1 %v3640_v36 }
 0x919   :  { %1954 = vmatprep.mubr.bf16.mxu0 %v4305_v0  ;;  %1995 = vmatprep.mubr.bf16.mxu1 %v4305_v0 }
 0x91b   :  { %1925 = vmatpush1.bf16.msra.mxu0 %v3642_v42  ;;  %1966 = vmatpush1.bf16.msra.mxu1 %v3644_v43  ;;  %v4311_v42 = vld [vmem:[#allocation18_spill] sm:$0xff] }
 0x91c   :  { %1926 = vmatprep.subr.bf16.mxu0 %v3650_v39  ;;  %1967 = vmatprep.subr.bf16.mxu1 %v3652_v44 }
 0x91f   :  { %1927 = vmatpush1.bf16.msra.mxu0 %v3654_v45  ;;  %1968 = vmatpush1.bf16.msra.mxu1 %v3656_v46 }
 0x920   :  { %1928 = vmatprep.subr.bf16.mxu0 %v3662_v40  ;;  %1969 = vmatprep.subr.bf16.mxu1 %v3664_v47 }
 0x923   :  { %1929 = vmatpush1.bf16.msra.mxu0 %v3666_v49  ;;  %1970 = vmatpush1.bf16.msra.mxu1 %v3668_v50 }
 0x924   :  { %1930 = vmatprep.subr.bf16.mxu0 %v3674_v53  ;;  %1971 = vmatprep.subr.bf16.mxu1 %v3676_v54 }
 0x927   :  { %1931 = vmatpush1.bf16.msra.mxu0 %v3678_v56  ;;  %1972 = vmatpush1.bf16.msra.mxu1 %v3680_v48 }
 0x928   :  { %1932 = vmatprep.subr.bf16.mxu0 %v3686_v51  ;;  %1973 = vmatprep.subr.bf16.mxu1 %v3688_v6 }
 0x92b   :  { %1933 = vmatpush1.bf16.msra.mxu0 %v3690_v57  ;;  %1974 = vmatpush1.bf16.msra.mxu1 %v3692_v58 }
 0x92c   :  { %1934 = vmatprep.subr.bf16.mxu0 %v3698_v52  ;;  %1975 = vmatprep.subr.bf16.mxu1 %v3700_v59 }
 0x92f   :  { %1935 = vmatpush1.bf16.msra.mxu0 %v3702_v55  ;;  %1976 = vmatpush1.bf16.msra.mxu1 %v3704_v3 }
 0x930   :  { %1936 = vmatprep.subr.bf16.mxu0 %v3710_v60  ;;  %1977 = vmatprep.subr.bf16.mxu1 %v3712_v11 }
 0x933   :  { %1937 = vmatpush1.bf16.msra.mxu0 %v3714_v13  ;;  %1978 = vmatpush1.bf16.msra.mxu1 %v3716_v8 }
 0x934   :  { %2027 = vmatprep.subr.bf16.mxu0 %v3626_v34  ;;  %2068 = vmatprep.subr.bf16.mxu1 %v3628_v35 }
 0x9e9   :  { %v1851_v37 = vpop.f32.mrb[48].mxu0  ;;  %v1892_v38 = vpop.f32.mrb[52].mxu1 }
 0x9ea   :  { %v1899_v43 = vadd.f32 %v1851_v37, %v4311_v42  ;;  %v1901_v19 = vadd.f32 %v1892_v38, %v4312_v29  ;;  %v1853_v61 = vpop.f32.mrb[49].mxu0  ;;  %v1894_v20 = vpop.f32.mrb[53].mxu1  ;;  %v4053_v37 = vld [vmem:[#allocation5 + $0x8] ss:$16 sps:$4 sm:$0xff]  }
 0x9eb   :  { %v1900_v17 = vadd.f32 %v1853_v61, %v4313_v2  ;;  %v1902_v63 = vadd.f32 %v1894_v20, %v4314_v25  ;;  %v1855_v22 = vpop.f32.mrb[50].mxu0  ;;  %v1896_v28 = vpop.f32.mrb[54].mxu1  ;;  %v4063_v38 = vld [vmem:[#allocation5 + $0x28] ss:$16 sps:$4 sm:$0xff]  }
 0x9ec   :  { %v1903_v23 = vmul.f32 0.5, %v1899_v43  ;;  %v1856_v15 = vpop.f32.mrb[51].mxu0  ;;  %v1897_v31 = vpop.f32.mrb[55].mxu1  ;;  %v3160_v28 = vld [vmem:[#allocation5 + $0x24] ss:$16 sps:$4 sm:$0xff]  }
 0x9ed   :  { %v1907_v34 = vmul.f32 0.5, %v1900_v17  ;;  %v1912_v35 = vmul.f32 0.5, %v1902_v63  ;;  %v3162_v15 = vld [vmem:[#allocation5 + $0x44] ss:$16 sps:$4 sm:$0xff]   ;;  %v3163_v31 = vld [vmem:[#allocation5 + $0x4c] ss:$16 sps:$4 sm:$0xff]  }
 0x9ee   :  { %3108 = vtanh.f32 %v1903_v23  ;;  %v3161_v23 = vld [vmem:[#allocation5 + $0x2c] ss:$16 sps:$4 sm:$0xff]  }
 0x9ef   :  { %3110 = vtanh.f32 %v1907_v34  ;;  %v3164_v34 = vld [vmem:[#allocation5 + $0x40] ss:$16 sps:$4 sm:$0xff]  }
 0x9f0   :  { %3112 = vtanh.f32 %v1901_v19 }
 0x9f1   :  { %3114 = vtanh.f32 %v1912_v35  ;;  %v3165_v35 = vld [vmem:[#allocation5 + $0x48] ss:$16 sps:$4 sm:$0xff]  }
 0x9f8   :  { %v3109_v12 = vpop.eup %3108 }
 0x9f9   :  { %v3111_v32 = vpop.eup %3110  ;;  %v1905_v26 = vadd.f32 1.0, %v3109_v12  ;;  %v3166_v12 = vld [vmem:[#allocation5 + $0x64] ss:$16 sps:$4 sm:$0xff]  }
 0x9fa   :  { %v1909_v1 = vadd.f32 1.0, %v3111_v32  ;;  %v3113_v27 = vpop.eup %3112  ;;  %v3167_v32 = vld [vmem:[#allocation5 + $0x6c] ss:$16 sps:$4 sm:$0xff]  }
 0x9fb   :  { %v1906_v62 = vmul.f32 0.5, %v1905_v26  ;;  %v3115_v5 = vpop.eup %3114  ;;  %v3168_v26 = vld [vmem:[#allocation5 + $0x60] ss:$16 sps:$4 sm:$0xff]  }
 0x9fc   :  { %v1910_v21 = vmul.f32 0.5, %v1909_v1  ;;  %v1914_v16 = vadd.f32 1.0, %v3115_v5  ;;  %v3169_v1 = vld [vmem:[#allocation5 + $0x68] ss:$16 sps:$4 sm:$0xff]  }
 0x9fd   :  { %v1917_v30 = vmul.f32 %v3113_v27, %v1906_v62  ;;  %v3171_v62 = vld [vmem:[#allocation5 + $0x8c] ss:$16 sps:$4 sm:$0xff]   ;;  %v3172_v27 = vld [vmem:[#allocation5 + $0x80] ss:$16 sps:$4 sm:$0xff]   ;;  %v3177_v5 = vld [vmem:[#allocation5 + $0xa8] ss:$16 sps:$4 sm:$0xff]  }
 0x9fe   :  { %v1916_v33 = vmul.f32 %v1910_v21, %v4005_v10  ;;  %v1915_v24 = vmul.f32 0.5, %v1914_v16  ;;  %v4060_v10 = vld [vmem:[#allocation5 + $0x20] ss:$16 sps:$4 sm:$0xff]   ;;  %v3173_v21 = vld [vmem:[#allocation5 + $0x88] ss:$16 sps:$4 sm:$0xff]  }
 0x9ff   :  { %v3178_v16 = vld [vmem:[#allocation5 + $0xc4] ss:$16 sps:$4 sm:$0xff]  }
 0xa00   :  { %v4047_v4 = vadd.f32 %v1917_v30, %v1916_v33  ;;  %v3174_v30 = vld [vmem:[#allocation5 + $0xa4] ss:$16 sps:$4 sm:$0xff]   ;;  %v3175_v33 = vld [vmem:[#allocation5 + $0xac] ss:$16 sps:$4 sm:$0xff]  }
 0xa02   :  { %3116 = vtanh.f32 %v4047_v4 }
 0xa0c   :  { %v3117_v7 = vpop.eup %3116 }
 0xa0d   :  { %v1920_v9 = vmul.f32 %v3117_v7, %v1915_v24  ;;  %v3179_v24 = vld [vmem:[#allocation5 + $0xcc] ss:$16 sps:$4 sm:$0xff]   ;;  %v3180_v7 = vld [vmem:[#allocation5 + $0xc0] ss:$16 sps:$4 sm:$0xff]  }
 0xa0f   :  { %v1921_v14 = vpack.c.bf16 %v1920_v9, %v1920_v9  ;;  %v3181_v9 = vld [vmem:[#allocation5 + $0xc8] ss:$16 sps:$4 sm:$0xff]  }
 0xa11   :  { %1955 = vmatmul.mubr.bf16.vlgmr.msra.gmra.mrb[52].mxu0 %v1921_v14  ;;  %1996 = vmatmul.mubr.bf16.vlgmr.msra.gmra.mrb[56].mxu1 %v1921_v14  ;;  %v3182_v14 = vld [vmem:[#allocation5 + $0xe4] ss:$16 sps:$4 sm:$0xff]  }
 0xa12   :  { %2028 = vmatpush1.bf16.msra.mxu0 %v4050_v18  ;;  %2069 = vmatpush1.bf16.msra.mxu1 %v4053_v37 }
 0xa13   :  { %2029 = vmatprep.subr.bf16.mxu0 %v3638_v41  ;;  %2070 = vmatprep.subr.bf16.mxu1 %v3640_v36  ;;  %v3158_v41 = vld [vmem:[#allocation5 + $0x4] ss:$16 sps:$4 sm:$0xff]   ;;  %v3159_v36 = vld [vmem:[#allocation5 + $0xc] ss:$16 sps:$4 sm:$0xff]  }
 0xa14   :  { %2059 = vmatprep.mubr.bf16.mxu0 %v4305_v0  ;;  %2100 = vmatprep.mubr.bf16.mxu1 %v4305_v0 }
 0xa16   :  { %2030 = vmatpush1.bf16.msra.mxu0 %v4060_v10  ;;  %2071 = vmatpush1.bf16.msra.mxu1 %v4063_v38 }
 0xa17   :  { %2031 = vmatprep.subr.bf16.mxu0 %v3650_v39  ;;  %2072 = vmatprep.subr.bf16.mxu1 %v3652_v44 }
 0xa1a   :  { %2032 = vmatpush1.bf16.msra.mxu0 %v3654_v45  ;;  %2073 = vmatpush1.bf16.msra.mxu1 %v3656_v46  ;;  %v4315_v45 = vld [vmem:[#allocation22_spill] sm:$0xff] }
 0xa1b   :  { %2033 = vmatprep.subr.bf16.mxu0 %v3662_v40  ;;  %2074 = vmatprep.subr.bf16.mxu1 %v3664_v47  ;;  %v4316_v40 = vld [vmem:[#allocation23_spill] sm:$0xff] }
 0xa1e   :  { %2034 = vmatpush1.bf16.msra.mxu0 %v3666_v49  ;;  %2075 = vmatpush1.bf16.msra.mxu1 %v3668_v50 }
 0xa1f   :  { %2035 = vmatprep.subr.bf16.mxu0 %v3674_v53  ;;  %2076 = vmatprep.subr.bf16.mxu1 %v3676_v54  ;;  %v4317_v53 = vld [vmem:[#allocation24_spill] sm:$0xff] }
 0xa22   :  { %2036 = vmatpush1.bf16.msra.mxu0 %v3678_v56  ;;  %2077 = vmatpush1.bf16.msra.mxu1 %v3680_v48  ;;  %v4318_v56 = vld [vmem:[#allocation25_spill] sm:$0xff] }
 0xa23   :  { %2037 = vmatprep.subr.bf16.mxu0 %v3686_v51  ;;  %2078 = vmatprep.subr.bf16.mxu1 %v3688_v6 }
 0xa26   :  { %2038 = vmatpush1.bf16.msra.mxu0 %v3690_v57  ;;  %2079 = vmatpush1.bf16.msra.mxu1 %v3692_v58 }
 0xa27   :  { %2039 = vmatprep.subr.bf16.mxu0 %v3698_v52  ;;  %2080 = vmatprep.subr.bf16.mxu1 %v3700_v59 }
 0xa2a   :  { %2040 = vmatpush1.bf16.msra.mxu0 %v3702_v55  ;;  %2081 = vmatpush1.bf16.msra.mxu1 %v3704_v3 }
 0xa2b   :  { %2041 = vmatprep.subr.bf16.mxu0 %v3710_v60  ;;  %2082 = vmatprep.subr.bf16.mxu1 %v3712_v11 }
 0xa2e   :  { %2042 = vmatpush1.bf16.msra.mxu0 %v3714_v13  ;;  %2083 = vmatpush1.bf16.msra.mxu1 %v3716_v8 }
 0xa2f   :  { %2132 = vmatprep.subr.bf16.mxu0 %v3158_v41  ;;  %2173 = vmatprep.subr.bf16.mxu1 %v3159_v36 }
 0xae4   :  { %v1956_v39 = vpop.f32.mrb[52].mxu0  ;;  %v1997_v44 = vpop.f32.mrb[56].mxu1 }
 0xae5   :  { %v2004_v46 = vadd.f32 %v1956_v39, %v4315_v45  ;;  %v2006_v47 = vadd.f32 %v1997_v44, %v4316_v40  ;;  %v1958_v49 = vpop.f32.mrb[53].mxu0  ;;  %v1999_v50 = vpop.f32.mrb[57].mxu1  ;;  %v4320_v39 = vld [vmem:[#allocation26_spill] sm:$0xff]  ;;  %v4321_v45 = vld [vmem:[#allocation27_spill] sm:$0xff] }
 0xae6   :  { %v2005_v54 = vadd.f32 %v1958_v49, %v4317_v53  ;;  %v2007_v48 = vadd.f32 %v1999_v50, %v4318_v56  ;;  %v1960_v51 = vpop.f32.mrb[54].mxu0  ;;  %v2001_v6 = vpop.f32.mrb[58].mxu1  ;;  %v4322_v49 = vld [vmem:[#allocation28_spill] sm:$0xff]  ;;  %v4323_v53 = vld [vmem:[#allocation29_spill] sm:$0xff] }
 0xae7   :  { %v2008_v57 = vmul.f32 0.5, %v2004_v46  ;;  %v1961_v58 = vpop.f32.mrb[55].mxu0  ;;  %v2002_v52 = vpop.f32.mrb[59].mxu1 }
 0xae8   :  { %v2012_v59 = vmul.f32 0.5, %v2005_v54  ;;  %v2017_v55 = vmul.f32 0.5, %v2007_v48 }
 0xae9   :  { %3118 = vtanh.f32 %v2008_v57 }
 0xaea   :  { %3120 = vtanh.f32 %v2012_v59 }
 0xaeb   :  { %3122 = vtanh.f32 %v2006_v47 }
 0xaec   :  { %3124 = vtanh.f32 %v2017_v55 }
 0xaf3   :  { %v3119_v3 = vpop.eup %3118 }
 0xaf4   :  { %v3121_v60 = vpop.eup %3120  ;;  %v2010_v11 = vadd.f32 1.0, %v3119_v3 }
 0xaf5   :  { %v2014_v13 = vadd.f32 1.0, %v3121_v60  ;;  %v3123_v42 = vpop.eup %3122 }
 0xaf6   :  { %v2011_v8 = vmul.f32 0.5, %v2010_v11  ;;  %v3125_v20 = vpop.eup %3124 }
 0xaf7   :  { %v2015_v43 = vmul.f32 0.5, %v2014_v13  ;;  %v2019_v2 = vadd.f32 1.0, %v3125_v20 }
 0xaf8   :  { %v2022_v29 = vmul.f32 %v3123_v42, %v2011_v8 }
 0xaf9   :  { %v2021_v19 = vmul.f32 %v2015_v43, %v4047_v4  ;;  %v2020_v17 = vmul.f32 0.5, %v2019_v2  ;;  %v3176_v4 = vld [vmem:[#allocation5 + $0xa0] ss:$16 sps:$4 sm:$0xff]  }
 0xafb   :  { %v4095_v61 = vadd.f32 %v2022_v29, %v2021_v19 }
 0xafd   :  { %3126 = vtanh.f32 %v4095_v61 }
 0xb07   :  { %v3127_v25 = vpop.eup %3126 }
 0xb08   :  { %v2025_v63 = vmul.f32 %v3127_v25, %v2020_v17 }
 0xb0a   :  { %v2026_v22 = vpack.c.bf16 %v2025_v63, %v2025_v63 }
 0xb0c   :  { %2060 = vmatmul.mubr.bf16.vlgmr.msra.gmra.mrb[56].mxu0 %v2026_v22  ;;  %2101 = vmatmul.mubr.bf16.vlgmr.msra.gmra.mrb[60].mxu1 %v2026_v22 }
 0xb0d   :  { %2133 = vmatpush1.bf16.msra.mxu0 %v4050_v18  ;;  %2174 = vmatpush1.bf16.msra.mxu1 %v4053_v37  ;;  %v3183_v18 = vld [vmem:[#allocation5 + $0xec] ss:$16 sps:$4 sm:$0xff]   ;;  %v3184_v37 = vld [vmem:[#allocation5 + $0xe0] ss:$16 sps:$4 sm:$0xff]  }
 0xb0e   :  { %2134 = vmatprep.subr.bf16.mxu0 %v3160_v28  ;;  %2175 = vmatprep.subr.bf16.mxu1 %v3161_v23  ;;  %v4324_v23 = vld [vmem:[#allocation30_spill] sm:$0xff] }
 0xb0f   :  { %2164 = vmatprep.mubr.bf16.mxu0 %v4305_v0  ;;  %2205 = vmatprep.mubr.bf16.mxu1 %v4305_v0  ;;  %v3170_v0 = vld [vmem:[#allocation5 + $0x84] ss:$16 sps:$4 sm:$0xff]  }
 0xb11   :  { %2135 = vmatpush1.bf16.msra.mxu0 %v4060_v10  ;;  %2176 = vmatpush1.bf16.msra.mxu1 %v4063_v38  ;;  %v3185_v10 = vld [vmem:[#allocation5 + $0xe8] ss:$16 sps:$4 sm:$0xff]   ;;  %v4319_v38 = vmov 0.0  }
 0xb12   :  { %2136 = vmatprep.subr.bf16.mxu0 %v3162_v15  ;;  %2177 = vmatprep.subr.bf16.mxu1 %v3163_v31  ;;  %v4325_v15 = vld [vmem:[#allocation31_spill] sm:$0xff] }
 0xb15   :  { %2137 = vmatpush1.bf16.msra.mxu0 %v3164_v34  ;;  %2178 = vmatpush1.bf16.msra.mxu1 %v3165_v35 }
 0xb16   :  { %2138 = vmatprep.subr.bf16.mxu0 %v3166_v12  ;;  %2179 = vmatprep.subr.bf16.mxu1 %v3167_v32  ;;  %v4326_v12 = vld [vmem:[#allocation32_spill] sm:$0xff] }
 0xb19   :  { %2139 = vmatpush1.bf16.msra.mxu0 %v3168_v26  ;;  %2180 = vmatpush1.bf16.msra.mxu1 %v3169_v1  ;;  %v4327_v26 = vld [vmem:[#allocation33_spill] sm:$0xff] }
 0xb1a   :  { %2140 = vmatprep.subr.bf16.mxu0 %v3170_v0  ;;  %2181 = vmatprep.subr.bf16.mxu1 %v3171_v62 }
 0xb1d   :  { %2141 = vmatpush1.bf16.msra.mxu0 %v3172_v27  ;;  %2182 = vmatpush1.bf16.msra.mxu1 %v3173_v21 }
 0xb1e   :  { %2142 = vmatprep.subr.bf16.mxu0 %v3174_v30  ;;  %2183 = vmatprep.subr.bf16.mxu1 %v3175_v33 }
 0xb21   :  { %2143 = vmatpush1.bf16.msra.mxu0 %v3176_v4  ;;  %2184 = vmatpush1.bf16.msra.mxu1 %v3177_v5 }
 0xb22   :  { %2144 = vmatprep.subr.bf16.mxu0 %v3178_v16  ;;  %2185 = vmatprep.subr.bf16.mxu1 %v3179_v24 }
 0xb25   :  { %2145 = vmatpush1.bf16.msra.mxu0 %v3180_v7  ;;  %2186 = vmatpush1.bf16.msra.mxu1 %v3181_v9 }
 0xb26   :  { %2146 = vmatprep.subr.bf16.mxu0 %v3182_v14  ;;  %2187 = vmatprep.subr.bf16.mxu1 %v3183_v18 }
 0xb29   :  { %2147 = vmatpush1.bf16.msra.mxu0 %v3184_v37  ;;  %2188 = vmatpush1.bf16.msra.mxu1 %v3185_v10 }
 0xb2a   :  { %2841 = vmatprep.subr.bf16.mxu1 %v4319_v38  ;;  %2835 = vmatprep.subr.bf16.mxu0 %v4319_v38 }
 0xbdf   :  { %v2061_v41 = vpop.f32.mrb[56].mxu0  ;;  %v2102_v36 = vpop.f32.mrb[60].mxu1 }
 0xbe0   :  { %v2109_v44 = vadd.f32 %v2061_v41, %v4320_v39  ;;  %v2111_v46 = vadd.f32 %v2102_v36, %v4321_v45  ;;  %v2063_v40 = vpop.f32.mrb[57].mxu0  ;;  %v2104_v47 = vpop.f32.mrb[61].mxu1 }
 0xbe1   :  { %v2110_v50 = vadd.f32 %v2063_v40, %v4322_v49  ;;  %v2112_v54 = vadd.f32 %v2104_v47, %v4323_v53  ;;  %v2065_v56 = vpop.f32.mrb[58].mxu0  ;;  %v2106_v48 = vpop.f32.mrb[62].mxu1  ;;  %v4328_v40 = vld [vmem:[#allocation12_spill] sm:$0xff]  ;;  %v3004_v49 = vld [vmem:[%s4245_s18] sm:$0xff]   ;;  %v4329_v53 = vlaneseq }
 0xbe2   :  { %v2113_v51 = vmul.f32 0.5, %v2109_v44  ;;  %v2066_v6 = vpop.f32.mrb[59].mxu0  ;;  %v2107_v57 = vpop.f32.mrb[63].mxu1 }
 0xbe3   :  { %v2117_v58 = vmul.f32 0.5, %v2110_v50  ;;  %v2122_v52 = vmul.f32 0.5, %v2112_v54  ;;  %v3005_v50 = vld [vmem:[%s4245_s18 + $0x8] sm:$0xff]   ;;  %v125_v54 = vand.u32 127, %v4329_v53 }
 0xbe4   :  { %3128 = vtanh.f32 %v2113_v51 }
 0xbe5   :  { %3130 = vtanh.f32 %v2117_v58  ;;  %vm126_vm13 = vcmp.lt.s32.totalorder %v125_v54, 32 }
 0xbe6   :  { %3132 = vtanh.f32 %v2111_v46  ;;  %v4130_v51 = vsel %vm126_vm13, 1.0, %v4319_v38 }
 0xbe7   :  { %3134 = vtanh.f32 %v2122_v52  ;;  %v3006_v52 = vld [vmem:[%s4245_s18 + $0x10] sm:$0xff]  }
 0xbee   :  { %v3129_v59 = vpop.eup %3128 }
 0xbef   :  { %v3131_v55 = vpop.eup %3130  ;;  %v2115_v3 = vadd.f32 1.0, %v3129_v59  ;;  %v3007_v59 = vld [vmem:[%s4245_s18 + $0x18] sm:$0xff]  }
 0xbf0   :  { %v2119_v60 = vadd.f32 1.0, %v3131_v55  ;;  %v3133_v13 = vpop.eup %3132  ;;  %v3008_v55 = vld [vmem:[%s4245_s18 + $0x20] sm:$0xff]  }
 0xbf1   :  { %v2116_v11 = vmul.f32 0.5, %v2115_v3  ;;  %v3135_v19 = vpop.eup %3134  ;;  %v3009_v3 = vld [vmem:[%s4245_s18 + $0x28] sm:$0xff]  }
 0xbf2   :  { %v2120_v8 = vmul.f32 0.5, %v2119_v60  ;;  %v2124_v20 = vadd.f32 1.0, %v3135_v19  ;;  %v2282_v60 = vld [vmem:[%s4246_s19] sm:$0xf]  ;;  %s3265_s19 = smov [#allocation7]  }
 0xbf3   :  { %v2127_v42 = vmul.f32 %v3133_v13, %v2116_v11  ;;  %v3010_v11 = vld [vmem:[%s4245_s18 + $0x30] sm:$0xff]   ;;  %v2284_v13 = vsel %vm134_vm2, %v2282_v60, 0  ;;  %s2576_s26 = sshll.u32 %s3265_s19, 4  ;;  %s2577_s26 = int_to_ptr.vmem [resolvable:$true] %s2576_s26 }
 0xbf4   :  { %v2126_v43 = vmul.f32 %v2120_v8, %v4095_v61  ;;  %v2125_v2 = vmul.f32 0.5, %v2124_v20  ;;  %v3011_v8 = vld [vmem:[%s4245_s18 + $0x38] sm:$0xff]   ;;  %s3230_s10 = scalar_lea.vmem %s2577_s26, 128  ;;  %p3235_p3 = scmp.lt.s32.totalorder %s2577_s26, %s2577_s26 }
 0xbf5   :  { %p3231_p2 = scmp.ne.s32.totalorder %s2577_s26, %s3230_s10  ;;  %p3236_p4 = scmp.lt.s32.totalorder %s3230_s10, %s3230_s10 }
 0xbf6   :  { %v2128_v29 = vadd.f32 %v2127_v42, %v2126_v43  ;;  %v4330_v42 = vld [vmem:[#allocation11_spill] sm:$0xff]  ;;  %v3012_v43 = vld [vmem:[%s4248_s21] sm:$0xff]  }
 0xbf7   :  { %p3237_p5 = por %p3236_p4, %p3235_p3 }
 0xbf8   :  { %3136 = vtanh.f32 %v2128_v29 }
 0xbf9   :  { %p3238_p6 = pnand %p3237_p5, %p3231_p2 }
 0xc02   :  { %v3137_v17 = vpop.eup %3136 }
 0xc03   :  { %v2130_v25 = vmul.f32 %v3137_v17, %v2125_v2 }
 0xc05   :  { %v2131_v63 = vpack.c.bf16 %v2130_v25, %v2130_v25  ;;  %v2686_v25 = vld [vmem:[%s4243_s16] ss:$0 sm:$0xff] }
 0xc07   :  { %2165 = vmatmul.mubr.bf16.vlgmr.msra.gmra.mrb[60].mxu0 %v2131_v63  ;;  %2206 = vmatmul.mubr.bf16.vlgmr.msra.gmra.mrb[64].mxu1 %v2131_v63 }
 0xc08   :  { %2837 = vmatprep.mubr.msk.bf16.mxu0 %vm3263_vm0, %v4319_v38  ;;  %2857 = vmatprep.mubr.msk.bf16.mxu1 %vm3263_vm0, %v4319_v38 }
 0xc09   :  { %2842 = vmatpush3.bf16.msra.mxu1 %v3004_v49  ;;  %2836 = vmatpush3.bf16.msra.mxu0 %v2284_v13 }
 0xc0a   :  { %2843 = vmatprep.subr.bf16.mxu1 %v4319_v38  ;;  %2861 = vmatprep.subr.bf16.mxu0 %v4319_v38 }
 0xc0d   :  { %2844 = vmatpush3.bf16.msra.mxu1 %v3005_v50 }
 0xc0e   :  { %2845 = vmatprep.subr.bf16.mxu1 %v4319_v38 }
 0xc0f   :  { %2838 = vmatmul.mubr.msk.bf16.vlgmr.msra.gmra.mrb[64].mxu0 %vm130_vm4, %v4330_v42 }
 0xc10   :  { %2877 = vmatprep.mubr.msk.bf16.mxu0 %vm3263_vm0, %v4319_v38  ;;  %2862 = vmatpush3.bf16.msra.mxu0 %v3012_v43 }
 0xc11   :  { %2846 = vmatpush3.bf16.msra.mxu1 %v3006_v52  ;;  %2863 = vmatprep.subr.bf16.mxu0 %v4319_v38 }
 0xc12   :  { %2847 = vmatprep.subr.bf16.mxu1 %v4319_v38 }
 0xc15   :  { %2848 = vmatpush3.bf16.msra.mxu1 %v3007_v59 }
 0xc16   :  { %2849 = vmatprep.subr.bf16.mxu1 %v4319_v38 }
 0xc19   :  { %2850 = vmatpush3.bf16.msra.mxu1 %v3008_v55 }
 0xc1a   :  { %2851 = vmatprep.subr.bf16.mxu1 %v4319_v38 }
 0xc1d   :  { %2852 = vmatpush3.bf16.msra.mxu1 %v3009_v3 }
 0xc1e   :  { %2853 = vmatprep.subr.bf16.mxu1 %v4319_v38 }
 0xc21   :  { %2854 = vmatpush3.bf16.msra.mxu1 %v3010_v11 }
 0xc22   :  { %2855 = vmatprep.subr.bf16.mxu1 %v4319_v38 }
 0xc25   :  { %2856 = vmatpush3.bf16.msra.mxu1 %v3011_v8 }
 0xcda   :  { %v2166_v22 = vpop.f32.mrb[60].mxu0  ;;  %v2207_v28 = vpop.f32.mrb[64].mxu1 }
 0xcdb   :  { %v2214_v61 = vadd.f32 %v2166_v22, %v4324_v23  ;;  %v2216_v31 = vadd.f32 %v2207_v28, %v4325_v15  ;;  %v2168_v34 = vpop.f32.mrb[61].mxu0  ;;  %v2209_v35 = vpop.f32.mrb[65].mxu1  ;;  %v2687_v22 = vld [vmem:[%s4244_s17] ss:$0 sm:$0xff] }
 0xcdc   :  { %v2215_v32 = vadd.f32 %v2168_v34, %v4326_v12  ;;  %v2217_v1 = vadd.f32 %v2209_v35, %v4327_v26  ;;  %v2170_v0 = vpop.f32.mrb[62].mxu0  ;;  %v2211_v62 = vpop.f32.mrb[66].mxu1  ;;  %v3014_v12 = vld [vmem:[%s4248_s21 + $0x10] sm:$0xff]   ;;  %v3016_v26 = vld [vmem:[%s4248_s21 + $0x20] sm:$0xff]  }
 0xcdd   :  { %v2218_v27 = vmul.f32 0.5, %v2214_v61  ;;  %v2171_v21 = vpop.f32.mrb[63].mxu0  ;;  %v2212_v30 = vpop.f32.mrb[67].mxu1  ;;  %v3018_v0 = vld [vmem:[%s4248_s21 + $0x30] sm:$0xff]   ;;  %v3019_v62 = vld [vmem:[%s4248_s21 + $0x38] sm:$0xff]  }
 0xcde   :  { %v2222_v33 = vmul.f32 0.5, %v2215_v32  ;;  %v2227_v4 = vmul.f32 0.5, %v2217_v1  ;;  %v3015_v32 = vld [vmem:[%s4248_s21 + $0x18] sm:$0xff]   ;;  %v3017_v1 = vld [vmem:[%s4248_s21 + $0x28] sm:$0xff]   ;;  %v2697_v21 = vld [vmem:[%s4247_s20] ss:$0 sm:$0xff] }
 0xcdf   :  { %3138 = vtanh.f32 %v2218_v27 }
 0xce0   :  { %3140 = vtanh.f32 %v2222_v33 }
 0xce1   :  { %3142 = vtanh.f32 %v2216_v31 }
 0xce2   :  { %3144 = vtanh.f32 %v2227_v4  ;;  %v2320_v15 = vpop.f32.mrb[64].mxu0 }
 0xce3   :  { %v2839_v31 = vpop.f32.mrb[65].mxu0 }
 0xce4   :  { %v2323_v34 = vpop.f32.mrb[66].mxu0 }
 0xce5   :  { %v2840_v35 = vpop.f32.mrb[67].mxu0 }
 0xce9   :  { %v3139_v5 = vpop.eup %3138 }
 0xcea   :  { %v3141_v16 = vpop.eup %3140  ;;  %v2220_v24 = vadd.f32 1.0, %v3139_v5 }
 0xceb   :  { %v2224_v7 = vadd.f32 1.0, %v3141_v16  ;;  %v3143_v14 = vpop.eup %3142 }
 0xcec   :  { %v2221_v9 = vmul.f32 0.5, %v2220_v24  ;;  %v3145_v36 = vpop.eup %3144 }
 0xced   :  { %v2225_v18 = vmul.f32 0.5, %v2224_v7  ;;  %v2229_v39 = vadd.f32 1.0, %v3145_v36 }
 0xcee   :  { %v2232_v37 = vmul.f32 %v3143_v14, %v2221_v9 }
 0xcef   :  { %v2231_v10 = vmul.f32 %v2225_v18, %v2128_v29  ;;  %v2230_v44 = vmul.f32 0.5, %v2229_v39  ;;  %v3013_v29 = vld [vmem:[%s4248_s21 + $0x8] sm:$0xff]  }
 0xcf0   :  { %2864 = vmatpush3.bf16.msra.mxu0 %v3013_v29 }
 0xcf1   :  { %v2233_v41 = vadd.f32 %v2232_v37, %v2231_v10  ;;  %2865 = vmatprep.subr.bf16.mxu0 %v4319_v38  ;;  %v2699_v37 = vld [vmem:[%s4249_s22] ss:$0 sm:$0xff] }
 0xcf3   :  { %3146 = vtanh.f32 %v2233_v41 }
 0xcf4   :  { %2866 = vmatpush3.bf16.msra.mxu0 %v3014_v12 }
 0xcf5   :  { %2867 = vmatprep.subr.bf16.mxu0 %v4319_v38 }
 0xcf8   :  { %2868 = vmatpush3.bf16.msra.mxu0 %v3015_v32 }
 0xcf9   :  { %2869 = vmatprep.subr.bf16.mxu0 %v4319_v38 }
 0xcfc   :  { %2870 = vmatpush3.bf16.msra.mxu0 %v3016_v26 }
 0xcfd   :  { %v3147_v45 = vpop.eup %3146  ;;  %2871 = vmatprep.subr.bf16.mxu0 %v4319_v38 }
 0xcfe   :  { %v2235_v46 = vmul.f32 %v3147_v45, %v2230_v44 }
 0xd00   :  { %v2236_v47 = vadd.f32 %v4328_v40, %v2235_v46  ;;  %2872 = vmatpush3.bf16.msra.mxu0 %v3017_v1 }
 0xd01   :  { %2873 = vmatprep.subr.bf16.mxu0 %v4319_v38 }
 0xd02   :  { %2239 = vadd.xlane.f32.xlu0 %v2236_v47 }
 0xd04   :  { %2874 = vmatpush3.bf16.msra.mxu0 %v3018_v0 }
 0xd05   :  { %2875 = vmatprep.subr.bf16.mxu0 %v4319_v38 }
 0xd08   :  { %2876 = vmatpush3.bf16.msra.mxu0 %v3019_v62 }
 0xd8f   :  { %v2240_v56 = vpop.xlane.xlu0 %2239 }
 0xd90   :  { %v2241_v48 = vmul.f32 0.03125, %v2240_v56 }
 0xd92   :  { %v2242_v6 = vsub.f32 %v2236_v47, %v2241_v48 }
 0xd94   :  { %v2243_v57 = vmul.f32 %v4130_v51, %v2242_v6 }
 0xd96   :  { %v2244_v58 = vmul.f32 %v2243_v57, %v2243_v57 }
 0xd98   :  { %2245 = vadd.xlane.f32.xlu1 %v2244_v58  ;;  %v2709_v58 = vld [vmem:[%s4251_s24] ss:$0 sm:$0xff] }
 0xe25   :  { %v2246_v19 = vpop.xlane.xlu1 %2245 }
 0xe26   :  { %v2247_v20 = vmul.f32 0.03125, %v2246_v19 }
 0xe28   :  { %v2248_v2 = vadd.f32 1e-05, %v2247_v20 }
 0xe2a   :  { %3148 = vrsqrt.f32 %v2248_v2 }
 0xe34   :  { %v3149_v17 = vpop.eup %3148 }
 0xe35   :  { %v2250_v63 = vmul.f32 %v3149_v17, %v2242_v6  ;;  %v2708_v6 = vld [vmem:[%s4250_s23] ss:$0 sm:$0xff] }
 0xe37   :  { %v2257_v28 = vmul.f32 %v2686_v25, %v2250_v63 }
 0xe39   :  { %v2264_v23 = vadd.f32 %v2687_v22, %v2257_v28 }
 0xe3b   :  { %v2265_v61 = vpack.c.bf16 %v2264_v23, %v2264_v23 }
 0xe3d   :  { %2858 = vmatmul.mubr.bf16.vlgmr.msra.gmra.mrb[68].mxu1 %v2265_v61 }
 0xf10   :  { %v2408_v27 = vpop.f32.mrb[68].mxu1 }
 0xf11   :  { %v2409_v30 = vadd.f32 %v2408_v27, %v2320_v15  ;;  %v2859_v33 = vpop.f32.mrb[69].mxu1 }
 0xf12   :  { %v2411_v4 = vpop.f32.mrb[70].mxu1 }
 0xf13   :  { %v2421_v5 = vadd.f32 %v2697_v21, %v2409_v30  ;;  %v2860_v16 = vpop.f32.mrb[71].mxu1 }
 0xf15   :  { %v2423_v24 = vmin.f32 %v2421_v5, 0.0  ;;  %vm2422_vm14 = vcmp.gt.f32.partialorder %v2421_v5, 0.0 }
 0xf17   :  { %v2424_v7 = vmul.f32 1.442695, %v2423_v24 }
 0xf19   :  { %3150 = vpow2.f32 %v2424_v7 }
 0xf23   :  { %v3151_v9 = vpop.eup %3150 }
 0xf24   :  { %v2698_v38 = vadd.f32 -1.0, %v3151_v9 }
 0xf26   :  { %v2427_v14 = vsel %vm2422_vm14, %v2421_v5, %v2698_v38 }
 0xf27   :  { %v2428_v18 = vpack.c.bf16 %v2427_v14, %v2427_v14 }
 0xf29   :  { %2878 = vmatmul.mubr.bf16.vlgmr.msra.gmra.mrb[68].mxu0 %v2428_v18 }
 0xffc   :  { %v2534_v10 = vpop.f32.mrb[68].mxu0 }
 0xffd   :  { %v2535_v41 = vadd.f32 %v2699_v37, %v2534_v10  ;;  %v2879_v36 = vpop.f32.mrb[69].mxu0 }
 0xffe   :  { %v2537_v39 = vpop.f32.mrb[70].mxu0 }
 0xfff   :  { %v2880_v44 = vpop.f32.mrb[71].mxu0  ;;  %v2540_v45 = vadd.f32 %v2535_v41, %v2264_v23 }
0x1001   :  { %2543 = vadd.xlane.f32.xlu0 %v2540_v45 }
0x108e   :  { %v2544_v46 = vpop.xlane.xlu0 %2543 }
0x108f   :  { %v2545_v40 = vmul.f32 0.03125, %v2544_v46 }
0x1091   :  { %v2546_v47 = vsub.f32 %v2540_v45, %v2545_v40 }
0x1093   :  { %v2547_v49 = vmul.f32 %v4130_v51, %v2546_v47 }
0x1095   :  { %v2548_v50 = vmul.f32 %v2547_v49, %v2547_v49 }
0x1097   :  { %2549 = vadd.xlane.f32.xlu1 %v2548_v50 }
0x1124   :  { %v2550_v53 = vpop.xlane.xlu1 %2549 }
0x1125   :  { %v2551_v54 = vmul.f32 0.03125, %v2550_v53 }
0x1127   :  { %v2552_v56 = vadd.f32 1e-05, %v2551_v54 }
0x1129   :  { %3152 = vrsqrt.f32 %v2552_v56 }
0x1133   :  { %v3153_v48 = vpop.eup %3152 }
0x1134   :  { %v2554_v57 = vmul.f32 %v3153_v48, %v2546_v47 }
0x1136   :  { %v2561_v52 = vmul.f32 %v2708_v6, %v2554_v57 }
0x1138   :  { %v2568_v51 = vadd.f32 %v2709_v58, %v2561_v52 }
0x113a   :  { %2569 = vst [vmem:[#allocation7] sm:$0xff] %v2568_v51 }
0x113b   :  { %3241 = shalt.err (!%p3238_p6)
}
0x113c   :  { %s3242_s29 = scalar_lea.hbm %s4252_s25, 128 }
0x113d   :  { %p3243_p7 = scmp.ne.s32.totalorder %s4252_s25, %s3242_s29  ;;  %p3246_p8 = scmp.lt.u32.totalorder %s3242_s29, %s4252_s25 }
0x113f   :  { %p3248_p9 = pnand %p3246_p8, %p3243_p7 }
0x1141   :  { %3251 = shalt.err (!%p3248_p9)
}
0x1142   :  { %2579 = dma.vmem_to_hbm [thread:$0]  %s2577_s26, 128, %s4252_s25, [#allocation4]  }
0x1143   :  { %3256 = dma.done.wait [#allocation4], 128  }
0x1144   :  { %3257 = vsyncadd [#allocation4], 4294967168 }
0x1145   :  { %2583 = vsyncpa [#allocation3], 1 }
0x1146   :  { %2584 = vsyncpa [#allocation6], 1 }
0x1147   :  { %2585 = vsyncpa [#allocation4], 1 }

</bundles_post_ra>
